<compile_context>
chip_gen: v7x
topology: tpu7x:2x2x1
jax: 0.10.0
libtpu: 0.0.40
codegen_flags: <defaults>
</compile_context>

<pallas_src>
import functools

import jax
import jax.numpy as jnp
from jax.experimental import pallas as pl
from jax.experimental.pallas import tpu as pltpu

# Explicit scoped-VMEM budget: 32 MiB = default on v6e/v7x, above v5e's 16 MiB
# default, below v7x's 64 MiB physical -> safe everywhere.
_VMEM_LIMIT = 32 * 1024 * 1024


# ------------------------------ tiling helpers ------------------------------

def _pick_tile(n, cap, multiple=8, min_steps=2):
    """Largest tile t dividing n with t % multiple == 0 and t <= cap, preferring
    n // t >= min_steps so the 'parallel' grid has >= 2 steps (v7x: 2 TCs).
    Falls back to the full dimension (always a legal block) if no divisor."""
    cands = [t for t in range(multiple, n + 1, multiple) if n % t == 0]
    if not cands:
        return n
    pref = [t for t in cands if t <= cap and n // t >= min_steps]
    if pref:
        return max(pref)
    ok = [t for t in cands if t <= cap]
    if ok:
        return max(ok)
    return min(cands)


def _spectral_group(width, m1, m2, m3):
    """Modes packed per block-diag spectral matmul so G*2C approaches 128 lanes."""
    M = 4 * m1 * m2 * m3
    gmax = max(1, 128 // (2 * width))
    for g in range(gmax, 0, -1):
        if M % g == 0:
            return g
    return 1


def _block_diag(w, g):
    """(K, O) -> (g*K, g*O) block-diagonal replication of w."""
    eye = jnp.eye(g, dtype=w.dtype)
    return jnp.einsum('ij,gh->gihj', w, eye).reshape(g * w.shape[0], g * w.shape[1])


# ------------------------------ Pallas kernels ------------------------------

def _linear_kernel(x_ref, w_ref, b_ref, o_ref, *, apply_relu):
    y = jnp.dot(x_ref[...], w_ref[...], preferred_element_type=jnp.float32)
    y = y + b_ref[...]
    if apply_relu:
        y = jnp.maximum(y, 0.0)
    o_ref[...] = y


def linear_pallas(x, w, b, *, apply_relu, cap=2048):
    R, K = x.shape
    Nw = w.shape[1]
    t = _pick_tile(R, cap)
    return pl.pallas_call(
        functools.partial(_linear_kernel, apply_relu=apply_relu),
        out_shape=jax.ShapeDtypeStruct((R, Nw), jnp.float32),
        grid=(R // t,),
        in_specs=[
            pl.BlockSpec((t, K), lambda i: (i, 0)),
            pl.BlockSpec((K, Nw), lambda i: (0, 0)),
            pl.BlockSpec((1, Nw), lambda i: (0, 0)),
        ],
        out_specs=pl.BlockSpec((t, Nw), lambda i: (i, 0)),
        compiler_params=pltpu.CompilerParams(
            dimension_semantics=("parallel",), vmem_limit_bytes=_VMEM_LIMIT),
    )(x, w, b)


def _block_kernel(x_ref, x1_ref, w_ref, b_ref, o_ref, *, apply_relu):
    # y = BN( conv1x1(x) + x1 ), BN already folded into w/b and into x1.
    y = jnp.dot(x_ref[...], w_ref[...], preferred_element_type=jnp.float32)
    y = y + b_ref[...] + x1_ref[...]
    if apply_relu:
        y = jnp.maximum(y, 0.0)
    o_ref[...] = y


def block_pallas(x, x1, w, b, *, apply_relu, cap=4096):
    R, W = x.shape
    t = _pick_tile(R, cap)
    return pl.pallas_call(
        functools.partial(_block_kernel, apply_relu=apply_relu),
        out_shape=jax.ShapeDtypeStruct((R, W), jnp.float32),
        grid=(R // t,),
        in_specs=[
            pl.BlockSpec((t, W), lambda i: (i, 0)),
            pl.BlockSpec((t, W), lambda i: (i, 0)),
            pl.BlockSpec((W, W), lambda i: (0, 0)),
            pl.BlockSpec((1, W), lambda i: (0, 0)),
        ],
        out_specs=pl.BlockSpec((t, W), lambda i: (i, 0)),
        compiler_params=pltpu.CompilerParams(
            dimension_semantics=("parallel",), vmem_limit_bytes=_VMEM_LIMIT),
    )(x, x1, w, b)


def _fc12_kernel(xt_ref, w1t_ref, b1_ref, w2_ref, b2_ref, o_ref):
    # Transposed orientation: xt (C, t) with spatial points on lanes.
    h = jnp.dot(w1t_ref[...], xt_ref[...], preferred_element_type=jnp.float32)  # (128, t)
    h = jnp.maximum(h + b1_ref[...], 0.0)
    # fc2 = VPU multiply + sublane reduce -> lane-dense (1, t) output block.
    o_ref[...] = jnp.sum(h * w2_ref[...], axis=0, keepdims=True) + b2_ref[...]


def fc12_pallas(xt, w1t, b1, w2, b2, *, cap=2048):
    C, Ntot = xt.shape
    H = w1t.shape[0]
    t = _pick_tile(Ntot, cap, multiple=128)
    return pl.pallas_call(
        _fc12_kernel,
        out_shape=jax.ShapeDtypeStruct((1, Ntot), jnp.float32),
        grid=(Ntot // t,),
        in_specs=[
            pl.BlockSpec((C, t), lambda i: (0, i)),
            pl.BlockSpec((H, C), lambda i: (0, 0)),
            pl.BlockSpec((H, 1), lambda i: (0, 0)),
            pl.BlockSpec((H, 1), lambda i: (0, 0)),
            pl.BlockSpec((1, 1), lambda i: (0, 0)),
        ],
        out_specs=pl.BlockSpec((1, t), lambda i: (0, i)),
        compiler_params=pltpu.CompilerParams(
            dimension_semantics=("parallel",), vmem_limit_bytes=_VMEM_LIMIT),
    )(xt, w1t, b1, w2, b2)


def _compl_mul_kernel(x_ref, w_ref, o_ref):
    # One dense (B, G*2C)@(G*2C, G*2C) MXU matmul per super-mode.  The loop is
    # statically unrolled (perf feedback) so consecutive MXU pushes overlap.
    for m in range(x_ref.shape[0]):
        o_ref[m] = jnp.dot(x_ref[m], w_ref[m], preferred_element_type=jnp.float32)


def compl_mul_pallas(xg, wbd, *, cap=64):
    Ms, B, GK = xg.shape
    t = _pick_tile(Ms, cap, multiple=1)
    return pl.pallas_call(
        _compl_mul_kernel,
        out_shape=jax.ShapeDtypeStruct((Ms, B, GK), jnp.float32),
        grid=(Ms // t,),
        in_specs=[
            pl.BlockSpec((t, B, GK), lambda i: (i, 0, 0)),
            pl.BlockSpec((t, GK, GK), lambda i: (i, 0, 0)),
        ],
        out_specs=pl.BlockSpec((t, B, GK), lambda i: (i, 0, 0)),
        compiler_params=pltpu.CompilerParams(
            dimension_semantics=("parallel",), vmem_limit_bytes=_VMEM_LIMIT),
    )(xg, wbd)


# ------------------------------- model pieces -------------------------------

def spectral_conv3d(h, wbd, G, B, X, Y, Z, C, m1, m2, m3):
    """Channels-last SpectralConv3d_fast; h holds (N, C) activations (any
    contiguous reshape).  wbd: (M/G, G*2C, G*2C) block-diag packed weights."""
    Zf = Z // 2 + 1
    x = h.reshape(B, X, Y, Z, C)
    # TODO(synk): FFT has no Pallas primitive; stays in XLA (channels-last, no transpose).
    x_ft = jnp.fft.rfftn(x, axes=(1, 2, 3), norm='ortho')             # (B,X,Y,Zf,C) c64

    corners = jnp.stack([                                             # (4,B,m1,m2,m3,C)
        x_ft[:, :m1, :m2, :m3, :],
        x_ft[:, X - m1:, :m2, :m3, :],
        x_ft[:, :m1, Y - m2:, :m3, :],
        x_ft[:, X - m1:, Y - m2:, :m3, :],
    ], axis=0)
    xc = jnp.transpose(corners, (0, 2, 3, 4, 1, 5)).reshape(-1, B, C)   # (M,B,C) mode-major
    xcat = jnp.concatenate([jnp.real(xc), jnp.imag(xc)], axis=-1)       # (M,B,2C)
    M = xcat.shape[0]
    Ms = M // G
    xg = xcat.reshape(Ms, G, B, 2 * C).transpose(0, 2, 1, 3).reshape(Ms, B, G * 2 * C)

    og = compl_mul_pallas(xg, wbd)                                      # (Ms,B,G*2C)
    out = og.reshape(Ms, B, G, 2 * C).transpose(0, 2, 1, 3).reshape(M, B, 2 * C)
    out_c = jax.lax.complex(out[..., :C], out[..., C:])                 # (M,B,C) c64
    out_c = jnp.transpose(out_c.reshape(4, m1, m2, m3, B, C), (0, 4, 1, 2, 3, 5))

    out_ft = jnp.zeros((B, X, Y, Zf, C), jnp.complex64)
    out_ft = out_ft.at[:, :m1, :m2, :m3, :].set(out_c[0])
    out_ft = out_ft.at[:, X - m1:, :m2, :m3, :].set(out_c[1])
    out_ft = out_ft.at[:, :m1, Y - m2:, :m3, :].set(out_c[2])
    out_ft = out_ft.at[:, X - m1:, Y - m2:, :m3, :].set(out_c[3])

    x1 = jnp.fft.irfftn(out_ft, s=(X, Y, Z), axes=(1, 2, 3), norm='ortho')
    return x1.reshape(-1, C)


def make_net2d(width, m1, m2, m3, meta):
    pack0, packw, G = meta['pack0'], meta['packw'], meta['G']
    C = width

    def forward(x, params):
        B, X, Y, Z, _ = x.shape
        N = B * X * Y * Z
        assert N % pack0 == 0 and N % packw == 0
        # Corner slices must not overlap (matches the standard FNO regime).
        assert 2 * m1 <= X and 2 * m2 <= Y and m3 <= Z // 2 + 1

        # fc0: Linear(4 -> C) as a pack0-way lane-dense block-diagonal matmul.
        h = linear_pallas(x.reshape(N // pack0, pack0 * 4),
                          params['fc0_w'], params['fc0_b'], apply_relu=False)
        h = h.reshape(N // packw, packw * C)        # free row-major reinterpretation

        for l in range(4):
            x1 = spectral_conv3d(h, params[f'spec{l}'], G, B, X, Y, Z, C, m1, m2, m3)
            h = block_pallas(h, x1.reshape(N // packw, packw * C),
                             params[f'w{l}_w'], params[f'w{l}_b'],
                             apply_relu=(l < 3))

        # fc1 (C->128) + ReLU + fc2 (128->1) fused; transposed orientation so the
        # final store is a lane-dense (1, N) slab (single XLA transpose of h).
        ht = h.reshape(N, C).T                      # (C, N)
        out = fc12_pallas(ht, params['fc1_wt'], params['fc1_b'],
                          params['fc2_w'], params['fc2_b'])
        return out.reshape(B, X, Y, Z, 1)

    return jax.jit(forward)


# ------------------------------ parameter prep ------------------------------

def init_params(key, width, m1, m2, m3):
    """Raw parameters in PyTorch-like shapes (internally self-consistent)."""
    C = width
    keys = jax.random.split(key, 64)
    it = iter(keys)

    def u(shape, scale, offset=0.0):
        return scale * jax.random.uniform(next(it), shape, jnp.float32) + offset

    p = {}
    p['fc0_w'] = u((4, C), 0.5, -0.25)                 # stored (in, out)
    p['fc0_b'] = u((C,), 0.1, -0.05)
    spec_scale = 1.0 / (C * C)
    for l in range(4):
        p[f'conv{l}'] = tuple(u((C, C, m1, m2, m3, 2), spec_scale) for _ in range(4))
        p[f'w{l}_w'] = u((C, C), 2.0 / C, -1.0 / C)    # nn.Conv1d(width,width,1) weight (out,in)
        p[f'w{l}_b'] = u((C,), 0.1, -0.05)
        p[f'bn{l}_gamma'] = jnp.ones((C,), jnp.float32)
        p[f'bn{l}_beta'] = jnp.zeros((C,), jnp.float32)
        p[f'bn{l}_mean'] = jnp.zeros((C,), jnp.float32)
        p[f'bn{l}_var'] = jnp.ones((C,), jnp.float32)
    p['fc1_w'] = u((C, 128), 2.0 / C, -1.0 / C)
    p['fc1_b'] = u((128,), 0.1, -0.05)
    p['fc2_w'] = u((128, 1), 2.0 / 128, -1.0 / 128)
    p['fc2_b'] = u((1,), 0.1, -0.05)
    return p


def prepare_params(raw, width, m1, m2, m3, n_rows, eps=1e-5):
    """One-time host-side weight transform:
      - fold eval-mode BatchNorm3d into the 1x1-conv weight/bias and the
        spectral weights,
      - expand pointwise weights into lane-dense block-diagonal matrices
        (8-way for the 1x1-conv blocks, 32-way for fc0),
      - pack each layer's spectral weights mode-major as [[Wr Wi],[-Wi Wr]] and
        group G modes per block-diagonal (G*2C, G*2C) matrix."""
    C = width
    pack0 = 32 if n_rows % 32 == 0 else (8 if n_rows % 8 == 0 else 1)
    packw = 8 if n_rows % 8 == 0 else 1
    G = _spectral_group(C, m1, m2, m3)

    p = {
        'fc0_w': _block_diag(raw['fc0_w'], pack0),                 # (pack0*4, pack0*C)
        'fc0_b': jnp.tile(raw['fc0_b'], pack0)[None, :],           # (1, pack0*C)
        'fc1_wt': raw['fc1_w'].T,                                  # (128, C)
        'fc1_b': raw['fc1_b'][:, None],                            # (128, 1)
        'fc2_w': raw['fc2_w'],                                     # (128, 1)
        'fc2_b': raw['fc2_b'][None, :],                            # (1, 1)
    }
    for l in range(4):
        scale = raw[f'bn{l}_gamma'] / jnp.sqrt(raw[f'bn{l}_var'] + eps)   # (C,)
        shift = raw[f'bn{l}_beta'] - raw[f'bn{l}_mean'] * scale
        w = raw[f'w{l}_w'].T * scale[None, :]           # (in, out), BN folded
        b = raw[f'w{l}_b'] * scale + shift
        p[f'w{l}_w'] = _block_diag(w, packw)            # (packw*C, packw*C)
        p[f'w{l}_b'] = jnp.tile(b, packw)[None, :]      # (1, packw*C)

        # Spectral weights: (4, Ci, Co, m1, m2, m3, 2) -> mode-major packed real,
        # then G-way block-diagonal grouping over modes.
        ws = jnp.stack(raw[f'conv{l}'], axis=0)
        ws = ws * scale[None, None, :, None, None, None, None]           # fold BN into Co
        wr = jnp.transpose(ws[..., 0], (0, 3, 4, 5, 1, 2))               # (4,m1,m2,m3,Ci,Co)
        wi = jnp.transpose(ws[..., 1], (0, 3, 4, 5, 1, 2))
        wcat = jnp.concatenate(
            [jnp.concatenate([wr, wi], axis=-1),
             jnp.concatenate([-wi, wr], axis=-1)], axis=-2)              # (4,m1,m2,m3,2C,2C)
        wcat = wcat.reshape(-1, 2 * C, 2 * C)                            # (M, 2C, 2C)
        M = wcat.shape[0]
        Ms = M // G
        eye = jnp.eye(G, dtype=wcat.dtype)
        wbd = jnp.einsum('sgij,gh->sgihj', wcat.reshape(Ms, G, 2 * C, 2 * C), eye)
        p[f'spec{l}'] = wbd.reshape(Ms, G * 2 * C, G * 2 * C)            # (Ms, G*2C, G*2C)
    meta = {'pack0': pack0, 'packw': packw, 'G': G}
    return p, meta


# ----------------------------------- main ------------------------------------

if __name__ == "__main__":
    # Small shapes consistent with Net2d(modes, width):
    # SimpleBlock2d(modes, modes, 4, width) -> modes1 = modes2 = modes, modes3 = 4.
    B, X, Y, Z = 2, 8, 8, 8
    MODES, WIDTH, MODES3 = 4, 16, 4

    key_params, key_x = jax.random.split(jax.random.PRNGKey(0))
    raw = init_params(key_params, WIDTH, MODES, MODES, MODES3)
    params, meta = prepare_params(raw, WIDTH, MODES, MODES, MODES3, B * X * Y * Z)
    x = jax.random.normal(key_x, (B, X, Y, Z, 4), jnp.float32)

    fwd = make_net2d(WIDTH, MODES, MODES, MODES3, meta)
    out = jax.block_until_ready(fwd(x, params))

    assert out.shape == (B, X, Y, Z, 1), out.shape
    assert out.dtype == jnp.float32
    assert bool(jnp.all(jnp.isfinite(out)))
    print("KERNEL_OK")
</pallas_src>

<mosaic_0001>
module attributes {stable_mosaic.version = 11 : i64} {
  func.func @_linear_kernel(%arg0: i32, %arg1: memref<16x128xf32, #tpu.memory_space<vmem>>, %arg2: memref<128x512xf32, #tpu.memory_space<vmem>>, %arg3: memref<1x512xf32, #tpu.memory_space<vmem>>, %arg4: memref<16x512xf32, #tpu.memory_space<vmem>>) attributes {dimension_semantics = [#tpu.dimension_semantics<parallel>], iteration_bounds = array<i64: 2>, scalar_prefetch = 0 : i64, scratch_operands = 0 : i64, tpu.core_type = #tpu.core_type<tc>, window_params = [{transform_indices = @transform_0, window_bounds = array<i64: 16, 128>}, {pipeline_mode = #tpu.pipeline_mode<synchronous>, transform_indices = @transform_1, window_bounds = array<i64: 128, 512>}, {pipeline_mode = #tpu.pipeline_mode<synchronous>, transform_indices = @transform_2, window_bounds = array<i64: 1, 512>}, {transform_indices = @transform_3, window_bounds = array<i64: 16, 512>}]} {
    %c0 = arith.constant 0 : index
    %c0_0 = arith.constant 0 : index
    %0 = vector.load %arg1[%c0, %c0_0] : memref<16x128xf32, #tpu.memory_space<vmem>>, vector<16x128xf32>
    %c0_1 = arith.constant 0 : index
    %c0_2 = arith.constant 0 : index
    %1 = vector.load %arg2[%c0_1, %c0_2] : memref<128x512xf32, #tpu.memory_space<vmem>>, vector<128x512xf32>
    %cst = arith.constant dense<0.000000e+00> : vector<16x512xf32>
    %2 = tpu.matmul %0, %1, %cst {dimension_numbers = #tpu.dot_dimension_numbers<[1], [0], [0], [1], [0, 0, 1, 1], [], []>} : vector<16x128xf32>, vector<128x512xf32>, vector<16x512xf32> -> vector<16x512xf32>
    %c0_3 = arith.constant 0 : index
    %c0_4 = arith.constant 0 : index
    %3 = vector.load %arg3[%c0_3, %c0_4] : memref<1x512xf32, #tpu.memory_space<vmem>>, vector<1x512xf32>
    %4 = vector.broadcast %3 : vector<1x512xf32> to vector<16x512xf32>
    %5 = arith.addf %2, %4 : vector<16x512xf32>
    %c0_5 = arith.constant 0 : index
    %c0_6 = arith.constant 0 : index
    %6 = vector.load %arg4[%c0_5, %c0_6] : memref<16x512xf32, #tpu.memory_space<vmem>>, vector<16x512xf32>
    tpu.vector_store %arg4[%c0_5, %c0_6], %5 {strides = array<i32>} : memref<16x512xf32, #tpu.memory_space<vmem>>, vector<16x512xf32>,
    return
  }
  func.func @transform_0(%arg0: i32) -> (i32, i32) {
    %c0_i32 = arith.constant 0 : i32
    %c0_i32_0 = arith.constant 0 : i32
    return %arg0, %c0_i32 : i32, i32
  }
  func.func @transform_1(%arg0: i32) -> (i32, i32) {
    %c0_i32 = arith.constant 0 : i32
    %c0_i32_0 = arith.constant 0 : i32
    %c0_i32_1 = arith.constant 0 : i32
    return %c0_i32, %c0_i32_0 : i32, i32
  }
  func.func @transform_2(%arg0: i32) -> (i32, i32) {
    %c0_i32 = arith.constant 0 : i32
    %c0_i32_0 = arith.constant 0 : i32
    %c0_i32_1 = arith.constant 0 : i32
    return %c0_i32, %c0_i32_0 : i32, i32
  }
  func.func @transform_3(%arg0: i32) -> (i32, i32) {
    %c0_i32 = arith.constant 0 : i32
    %c0_i32_0 = arith.constant 0 : i32
    return %arg0, %c0_i32 : i32, i32
  }
}

module attributes {stable_mosaic.version = 11 : i64} {
  func.func @_compl_mul_kernel(%arg0: i32, %arg1: memref<32x2x128xf32, #tpu.memory_space<vmem>>, %arg2: memref<32x128x128xf32, #tpu.memory_space<vmem>>, %arg3: memref<32x2x128xf32, #tpu.memory_space<vmem>>) attributes {dimension_semantics = [#tpu.dimension_semantics<parallel>], iteration_bounds = array<i64: 2>, scalar_prefetch = 0 : i64, scratch_operands = 0 : i64, tpu.core_type = #tpu.core_type<tc>, window_params = [{transform_indices = @transform_0, window_bounds = array<i64: 32, 2, 128>}, {transform_indices = @transform_1, window_bounds = array<i64: 32, 128, 128>}, {transform_indices = @transform_2, window_bounds = array<i64: 32, 2, 128>}]} {
    %c0 = arith.constant 0 : index
    %c0_0 = arith.constant 0 : index
    %c0_1 = arith.constant 0 : index
    %0 = vector.load %arg1[%c0, %c0_0, %c0_1] : memref<32x2x128xf32, #tpu.memory_space<vmem>>, vector<1x2x128xf32>
    %1 = vector.shape_cast %0 : vector<1x2x128xf32> to vector<2x128xf32>
    %c0_2 = arith.constant 0 : index
    %c0_3 = arith.constant 0 : index
    %c0_4 = arith.constant 0 : index
    %2 = vector.load %arg2[%c0_2, %c0_3, %c0_4] : memref<32x128x128xf32, #tpu.memory_space<vmem>>, vector<1x128x128xf32>
    %3 = vector.shape_cast %2 : vector<1x128x128xf32> to vector<128x128xf32>
    %cst = arith.constant dense<0.000000e+00> : vector<2x128xf32>
    %4 = tpu.matmul %1, %3, %cst {dimension_numbers = #tpu.dot_dimension_numbers<[1], [0], [0], [1], [0, 0, 1, 1], [], []>} : vector<2x128xf32>, vector<128x128xf32>, vector<2x128xf32> -> vector<2x128xf32>
    %c0_5 = arith.constant 0 : index
    %c0_6 = arith.constant 0 : index
    %c0_7 = arith.constant 0 : index
    %5 = vector.load %arg3[%c0_5, %c0_6, %c0_7] : memref<32x2x128xf32, #tpu.memory_space<vmem>>, vector<1x2x128xf32>
    %6 = vector.shape_cast %5 : vector<1x2x128xf32> to vector<2x128xf32>
    %7 = vector.shape_cast %4 : vector<2x128xf32> to vector<1x2x128xf32>
    tpu.vector_store %arg3[%c0_5, %c0_6, %c0_7], %7 {strides = array<i32>} : memref<32x2x128xf32, #tpu.memory_space<vmem>>, vector<1x2x128xf32>,
    %c1 = arith.constant 1 : index
    %c0_8 = arith.constant 0 : index
    %c0_9 = arith.constant 0 : index
    %8 = vector.load %arg1[%c1, %c0_8, %c0_9] : memref<32x2x128xf32, #tpu.memory_space<vmem>>, vector<1x2x128xf32>
    %9 = vector.shape_cast %8 : vector<1x2x128xf32> to vector<2x128xf32>
    %c1_10 = arith.constant 1 : index
    %c0_11 = arith.constant 0 : index
    %c0_12 = arith.constant 0 : index
    %10 = vector.load %arg2[%c1_10, %c0_11, %c0_12] : memref<32x128x128xf32, #tpu.memory_space<vmem>>, vector<1x128x128xf32>
    %11 = vector.shape_cast %10 : vector<1x128x128xf32> to vector<128x128xf32>
    %cst_13 = arith.constant dense<0.000000e+00> : vector<2x128xf32>
    %12 = tpu.matmul %9, %11, %cst_13 {dimension_numbers = #tpu.dot_dimension_numbers<[1], [0], [0], [1], [0, 0, 1, 1], [], []>} : vector<2x128xf32>, vector<128x128xf32>, vector<2x128xf32> -> vector<2x128xf32>
    %c1_14 = arith.constant 1 : index
    %c0_15 = arith.constant 0 : index
    %c0_16 = arith.constant 0 : index
    %13 = vector.load %arg3[%c1_14, %c0_15, %c0_16] : memref<32x2x128xf32, #tpu.memory_space<vmem>>, vector<1x2x128xf32>
    %14 = vector.shape_cast %13 : vector<1x2x128xf32> to vector<2x128xf32>
    %15 = vector.shape_cast %12 : vector<2x128xf32> to vector<1x2x128xf32>
    tpu.vector_store %arg3[%c1_14, %c0_15, %c0_16], %15 {strides = array<i32>} : memref<32x2x128xf32, #tpu.memory_space<vmem>>, vector<1x2x128xf32>,
    %c2 = arith.constant 2 : index
    %c0_17 = arith.constant 0 : index
    %c0_18 = arith.constant 0 : index
    %16 = vector.load %arg1[%c2, %c0_17, %c0_18] : memref<32x2x128xf32, #tpu.memory_space<vmem>>, vector<1x2x128xf32>
    %17 = vector.shape_cast %16 : vector<1x2x128xf32> to vector<2x128xf32>
    %c2_19 = arith.constant 2 : index
    %c0_20 = arith.constant 0 : index
    %c0_21 = arith.constant 0 : index
    %18 = vector.load %arg2[%c2_19, %c0_20, %c0_21] : memref<32x128x128xf32, #tpu.memory_space<vmem>>, vector<1x128x128xf32>
    %19 = vector.shape_cast %18 : vector<1x128x128xf32> to vector<128x128xf32>
    %cst_22 = arith.constant dense<0.000000e+00> : vector<2x128xf32>
    %20 = tpu.matmul %17, %19, %cst_22 {dimension_numbers = #tpu.dot_dimension_numbers<[1], [0], [0], [1], [0, 0, 1, 1], [], []>} : vector<2x128xf32>, vector<128x128xf32>, vector<2x128xf32> -> vector<2x128xf32>
    %c2_23 = arith.constant 2 : index
    %c0_24 = arith.constant 0 : index
    %c0_25 = arith.constant 0 : index
    %21 = vector.load %arg3[%c2_23, %c0_24, %c0_25] : memref<32x2x128xf32, #tpu.memory_space<vmem>>, vector<1x2x128xf32>
    %22 = vector.shape_cast %21 : vector<1x2x128xf32> to vector<2x128xf32>
    %23 = vector.shape_cast %20 : vector<2x128xf32> to vector<1x2x128xf32>
    tpu.vector_store %arg3[%c2_23, %c0_24, %c0_25], %23 {strides = array<i32>} : memref<32x2x128xf32, #tpu.memory_space<vmem>>, vector<1x2x128xf32>,
    %c3 = arith.constant 3 : index
    %c0_26 = arith.constant 0 : index
    %c0_27 = arith.constant 0 : index
    %24 = vector.load %arg1[%c3, %c0_26, %c0_27] : memref<32x2x128xf32, #tpu.memory_space<vmem>>, vector<1x2x128xf32>
    %25 = vector.shape_cast %24 : vector<1x2x128xf32> to vector<2x128xf32>
    %c3_28 = arith.constant 3 : index
    %c0_29 = arith.constant 0 : index
    %c0_30 = arith.constant 0 : index
    %26 = vector.load %arg2[%c3_28, %c0_29, %c0_30] : memref<32x128x128xf32, #tpu.memory_space<vmem>>, vector<1x128x128xf32>
    %27 = vector.shape_cast %26 : vector<1x128x128xf32> to vector<128x128xf32>
    %cst_31 = arith.constant dense<0.000000e+00> : vector<2x128xf32>
    %28 = tpu.matmul %25, %27, %cst_31 {dimension_numbers = #tpu.dot_dimension_numbers<[1], [0], [0], [1], [0, 0, 1, 1], [], []>} : vector<2x128xf32>, vector<128x128xf32>, vector<2x128xf32> -> vector<2x128xf32>
    %c3_32 = arith.constant 3 : index
    %c0_33 = arith.constant 0 : index
    %c0_34 = arith.constant 0 : index
    %29 = vector.load %arg3[%c3_32, %c0_33, %c0_34] : memref<32x2x128xf32, #tpu.memory_space<vmem>>, vector<1x2x128xf32>
    %30 = vector.shape_cast %29 : vector<1x2x128xf32> to vector<2x128xf32>
    %31 = vector.shape_cast %28 : vector<2x128xf32> to vector<1x2x128xf32>
    tpu.vector_store %arg3[%c3_32, %c0_33, %c0_34], %31 {strides = array<i32>} : memref<32x2x128xf32, #tpu.memory_space<vmem>>, vector<1x2x128xf32>,
    %c4 = arith.constant 4 : index
    %c0_35 = arith.constant 0 : index
    %c0_36 = arith.constant 0 : index
    %32 = vector.load %arg1[%c4, %c0_35, %c0_36] : memref<32x2x128xf32, #tpu.memory_space<vmem>>, vector<1x2x128xf32>
    %33 = vector.shape_cast %32 : vector<1x2x128xf32> to vector<2x128xf32>
    %c4_37 = arith.constant 4 : index
    %c0_38 = arith.constant 0 : index
    %c0_39 = arith.constant 0 : index
    %34 = vector.load %arg2[%c4_37, %c0_38, %c0_39] : memref<32x128x128xf32, #tpu.memory_space<vmem>>, vector<1x128x128xf32>
    %35 = vector.shape_cast %34 : vector<1x128x128xf32> to vector<128x128xf32>
    %cst_40 = arith.constant dense<0.000000e+00> : vector<2x128xf32>
    %36 = tpu.matmul %33, %35, %cst_40 {dimension_numbers = #tpu.dot_dimension_numbers<[1], [0], [0], [1], [0, 0, 1, 1], [], []>} : vector<2x128xf32>, vector<128x128xf32>, vector<2x128xf32> -> vector<2x128xf32>
    %c4_41 = arith.constant 4 : index
    %c0_42 = arith.constant 0 : index
    %c0_43 = arith.constant 0 : index
    %37 = vector.load %arg3[%c4_41, %c0_42, %c0_43] : memref<32x2x128xf32, #tpu.memory_space<vmem>>, vector<1x2x128xf32>
    %38 = vector.shape_cast %37 : vector<1x2x128xf32> to vector<2x128xf32>
    %39 = vector.shape_cast %36 : vector<2x128xf32> to vector<1x2x128xf32>
    tpu.vector_store %arg3[%c4_41, %c0_42, %c0_43], %39 {strides = array<i32>} : memref<32x2x128xf32, #tpu.memory_space<vmem>>, vector<1x2x128xf32>,
    %c5 = arith.constant 5 : index
    %c0_44 = arith.constant 0 : index
    %c0_45 = arith.constant 0 : index
    %40 = vector.load %arg1[%c5, %c0_44, %c0_45] : memref<32x2x128xf32, #tpu.memory_space<vmem>>, vector<1x2x128xf32>
    %41 = vector.shape_cast %40 : vector<1x2x128xf32> to vector<2x128xf32>
    %c5_46 = arith.constant 5 : index
    %c0_47 = arith.constant 0 : index
    %c0_48 = arith.constant 0 : index
    %42 = vector.load %arg2[%c5_46, %c0_47, %c0_48] : memref<32x128x128xf32, #tpu.memory_space<vmem>>, vector<1x128x128xf32>
    %43 = vector.shape_cast %42 : vector<1x128x128xf32> to vector<128x128xf32>
    %cst_49 = arith.constant dense<0.000000e+00> : vector<2x128xf32>
    %44 = tpu.matmul %41, %43, %cst_49 {dimension_numbers = #tpu.dot_dimension_numbers<[1], [0], [0], [1], [0, 0, 1, 1], [], []>} : vector<2x128xf32>, vector<128x128xf32>, vector<2x128xf32> -> vector<2x128xf32>
    %c5_50 = arith.constant 5 : index
    %c0_51 = arith.constant 0 : index
    %c0_52 = arith.constant 0 : index
    %45 = vector.load %arg3[%c5_50, %c0_51, %c0_52] : memref<32x2x128xf32, #tpu.memory_space<vmem>>, vector<1x2x128xf32>
    %46 = vector.shape_cast %45 : vector<1x2x128xf32> to vector<2x128xf32>
    %47 = vector.shape_cast %44 : vector<2x128xf32> to vector<1x2x128xf32>
    tpu.vector_store %arg3[%c5_50, %c0_51, %c0_52], %47 {strides = array<i32>} : memref<32x2x128xf32, #tpu.memory_space<vmem>>, vector<1x2x128xf32>,
    %c6 = arith.constant 6 : index
    %c0_53 = arith.constant 0 : index
    %c0_54 = arith.constant 0 : index
    %48 = vector.load %arg1[%c6, %c0_53, %c0_54] : memref<32x2x128xf32, #tpu.memory_space<vmem>>, vector<1x2x128xf32>
    %49 = vector.shape_cast %48 : vector<1x2x128xf32> to vector<2x128xf32>
    %c6_55 = arith.constant 6 : index
    %c0_56 = arith.constant 0 : index
    %c0_57 = arith.constant 0 : index
    %50 = vector.load %arg2[%c6_55, %c0_56, %c0_57] : memref<32x128x128xf32, #tpu.memory_space<vmem>>, vector<1x128x128xf32>
    %51 = vector.shape_cast %50 : vector<1x128x128xf32> to vector<128x128xf32>
    %cst_58 = arith.constant dense<0.000000e+00> : vector<2x128xf32>
    %52 = tpu.matmul %49, %51, %cst_58 {dimension_numbers = #tpu.dot_dimension_numbers<[1], [0], [0], [1], [0, 0, 1, 1], [], []>} : vector<2x128xf32>, vector<128x128xf32>, vector<2x128xf32> -> vector<2x128xf32>
    %c6_59 = arith.constant 6 : index
    %c0_60 = arith.constant 0 : index
    %c0_61 = arith.constant 0 : index
    %53 = vector.load %arg3[%c6_59, %c0_60, %c0_61] : memref<32x2x128xf32, #tpu.memory_space<vmem>>, vector<1x2x128xf32>
    %54 = vector.shape_cast %53 : vector<1x2x128xf32> to vector<2x128xf32>
    %55 = vector.shape_cast %52 : vector<2x128xf32> to vector<1x2x128xf32>
    tpu.vector_store %arg3[%c6_59, %c0_60, %c0_61], %55 {strides = array<i32>} : memref<32x2x128xf32, #tpu.memory_space<vmem>>, vector<1x2x128xf32>,
    %c7 = arith.constant 7 : index
    %c0_62 = arith.constant 0 : index
    %c0_63 = arith.constant 0 : index
    %56 = vector.load %arg1[%c7, %c0_62, %c0_63] : memref<32x2x128xf32, #tpu.memory_space<vmem>>, vector<1x2x128xf32>
    %57 = vector.shape_cast %56 : vector<1x2x128xf32> to vector<2x128xf32>
    %c7_64 = arith.constant 7 : index
    %c0_65 = arith.constant 0 : index
    %c0_66 = arith.constant 0 : index
    %58 = vector.load %arg2[%c7_64, %c0_65, %c0_66] : memref<32x128x128xf32, #tpu.memory_space<vmem>>, vector<1x128x128xf32>
    %59 = vector.shape_cast %58 : vector<1x128x128xf32> to vector<128x128xf32>
    %cst_67 = arith.constant dense<0.000000e+00> : vector<2x128xf32>
    %60 = tpu.matmul %57, %59, %cst_67 {dimension_numbers = #tpu.dot_dimension_numbers<[1], [0], [0], [1], [0, 0, 1, 1], [], []>} : vector<2x128xf32>, vector<128x128xf32>, vector<2x128xf32> -> vector<2x128xf32>
    %c7_68 = arith.constant 7 : index
    %c0_69 = arith.constant 0 : index
    %c0_70 = arith.constant 0 : index
    %61 = vector.load %arg3[%c7_68, %c0_69, %c0_70] : memref<32x2x128xf32, #tpu.memory_space<vmem>>, vector<1x2x128xf32>
    %62 = vector.shape_cast %61 : vector<1x2x128xf32> to vector<2x128xf32>
    %63 = vector.shape_cast %60 : vector<2x128xf32> to vector<1x2x128xf32>
    tpu.vector_store %arg3[%c7_68, %c0_69, %c0_70], %63 {strides = array<i32>} : memref<32x2x128xf32, #tpu.memory_space<vmem>>, vector<1x2x128xf32>,
    %c8 = arith.constant 8 : index
    %c0_71 = arith.constant 0 : index
    %c0_72 = arith.constant 0 : index
    %64 = vector.load %arg1[%c8, %c0_71, %c0_72] : memref<32x2x128xf32, #tpu.memory_space<vmem>>, vector<1x2x128xf32>
    %65 = vector.shape_cast %64 : vector<1x2x128xf32> to vector<2x128xf32>
    %c8_73 = arith.constant 8 : index
    %c0_74 = arith.constant 0 : index
    %c0_75 = arith.constant 0 : index
    %66 = vector.load %arg2[%c8_73, %c0_74, %c0_75] : memref<32x128x128xf32, #tpu.memory_space<vmem>>, vector<1x128x128xf32>
    %67 = vector.shape_cast %66 : vector<1x128x128xf32> to vector<128x128xf32>
    %cst_76 = arith.constant dense<0.000000e+00> : vector<2x128xf32>
    %68 = tpu.matmul %65, %67, %cst_76 {dimension_numbers = #tpu.dot_dimension_numbers<[1], [0], [0], [1], [0, 0, 1, 1], [], []>} : vector<2x128xf32>, vector<128x128xf32>, vector<2x128xf32> -> vector<2x128xf32>
    %c8_77 = arith.constant 8 : index
    %c0_78 = arith.constant 0 : index
    %c0_79 = arith.constant 0 : index
    %69 = vector.load %arg3[%c8_77, %c0_78, %c0_79] : memref<32x2x128xf32, #tpu.memory_space<vmem>>, vector<1x2x128xf32>
    %70 = vector.shape_cast %69 : vector<1x2x128xf32> to vector<2x128xf32>
    %71 = vector.shape_cast %68 : vector<2x128xf32> to vector<1x2x128xf32>
    tpu.vector_store %arg3[%c8_77, %c0_78, %c0_79], %71 {strides = array<i32>} : memref<32x2x128xf32, #tpu.memory_space<vmem>>, vector<1x2x128xf32>,
    %c9 = arith.constant 9 : index
    %c0_80 = arith.constant 0 : index
    %c0_81 = arith.constant 0 : index
    %72 = vector.load %arg1[%c9, %c0_80, %c0_81] : memref<32x2x128xf32, #tpu.memory_space<vmem>>, vector<1x2x128xf32>
    %73 = vector.shape_cast %72 : vector<1x2x128xf32> to vector<2x128xf32>
    %c9_82 = arith.constant 9 : index
    %c0_83 = arith.constant 0 : index
    %c0_84 = arith.constant 0 : index
    %74 = vector.load %arg2[%c9_82, %c0_83, %c0_84] : memref<32x128x128xf32, #tpu.memory_space<vmem>>, vector<1x128x128xf32>
    %75 = vector.shape_cast %74 : vector<1x128x128xf32> to vector<128x128xf32>
    %cst_85 = arith.constant dense<0.000000e+00> : vector<2x128xf32>
    %76 = tpu.matmul %73, %75, %cst_85 {dimension_numbers = #tpu.dot_dimension_numbers<[1], [0], [0], [1], [0, 0, 1, 1], [], []>} : vector<2x128xf32>, vector<128x128xf32>, vector<2x128xf32> -> vector<2x128xf32>
    %c9_86 = arith.constant 9 : index
    %c0_87 = arith.constant 0 : index
    %c0_88 = arith.constant 0 : index
    %77 = vector.load %arg3[%c9_86, %c0_87, %c0_88] : memref<32x2x128xf32, #tpu.memory_space<vmem>>, vector<1x2x128xf32>
    %78 = vector.shape_cast %77 : vector<1x2x128xf32> to vector<2x128xf32>
    %79 = vector.shape_cast %76 : vector<2x128xf32> to vector<1x2x128xf32>
    tpu.vector_store %arg3[%c9_86, %c0_87, %c0_88], %79 {strides = array<i32>} : memref<32x2x128xf32, #tpu.memory_space<vmem>>, vector<1x2x128xf32>,
    %c10 = arith.constant 10 : index
    %c0_89 = arith.constant 0 : index
    %c0_90 = arith.constant 0 : index
    %80 = vector.load %arg1[%c10, %c0_89, %c0_90] : memref<32x2x128xf32, #tpu.memory_space<vmem>>, vector<1x2x128xf32>
    %81 = vector.shape_cast %80 : vector<1x2x128xf32> to vector<2x128xf32>
    %c10_91 = arith.constant 10 : index
    %c0_92 = arith.constant 0 : index
    %c0_93 = arith.constant 0 : index
    %82 = vector.load %arg2[%c10_91, %c0_92, %c0_93] : memref<32x128x128xf32, #tpu.memory_space<vmem>>, vector<1x128x128xf32>
    %83 = vector.shape_cast %82 : vector<1x128x128xf32> to vector<128x128xf32>
    %cst_94 = arith.constant dense<0.000000e+00> : vector<2x128xf32>
    %84 = tpu.matmul %81, %83, %cst_94 {dimension_numbers = #tpu.dot_dimension_numbers<[1], [0], [0], [1], [0, 0, 1, 1], [], []>} : vector<2x128xf32>, vector<128x128xf32>, vector<2x128xf32> -> vector<2x128xf32>
    %c10_95 = arith.constant 10 : index
    %c0_96 = arith.constant 0 : index
    %c0_97 = arith.constant 0 : index
    %85 = vector.load %arg3[%c10_95, %c0_96, %c0_97] : memref<32x2x128xf32, #tpu.memory_space<vmem>>, vector<1x2x128xf32>
    %86 = vector.shape_cast %85 : vector<1x2x128xf32> to vector<2x128xf32>
    %87 = vector.shape_cast %84 : vector<2x128xf32> to vector<1x2x128xf32>
    tpu.vector_store %arg3[%c10_95, %c0_96, %c0_97], %87 {strides = array<i32>} : memref<32x2x128xf32, #tpu.memory_space<vmem>>, vector<1x2x128xf32>,
    %c11 = arith.constant 11 : index
    %c0_98 = arith.constant 0 : index
    %c0_99 = arith.constant 0 : index
    %88 = vector.load %arg1[%c11, %c0_98, %c0_99] : memref<32x2x128xf32, #tpu.memory_space<vmem>>, vector<1x2x128xf32>
    %89 = vector.shape_cast %88 : vector<1x2x128xf32> to vector<2x128xf32>
    %c11_100 = arith.constant 11 : index
    %c0_101 = arith.constant 0 : index
    %c0_102 = arith.constant 0 : index
    %90 = vector.load %arg2[%c11_100, %c0_101, %c0_102] : memref<32x128x128xf32, #tpu.memory_space<vmem>>, vector<1x128x128xf32>
    %91 = vector.shape_cast %90 : vector<1x128x128xf32> to vector<128x128xf32>
    %cst_103 = arith.constant dense<0.000000e+00> : vector<2x128xf32>
    %92 = tpu.matmul %89, %91, %cst_103 {dimension_numbers = #tpu.dot_dimension_numbers<[1], [0], [0], [1], [0, 0, 1, 1], [], []>} : vector<2x128xf32>, vector<128x128xf32>, vector<2x128xf32> -> vector<2x128xf32>
    %c11_104 = arith.constant 11 : index
    %c0_105 = arith.constant 0 : index
    %c0_106 = arith.constant 0 : index
    %93 = vector.load %arg3[%c11_104, %c0_105, %c0_106] : memref<32x2x128xf32, #tpu.memory_space<vmem>>, vector<1x2x128xf32>
    %94 = vector.shape_cast %93 : vector<1x2x128xf32> to vector<2x128xf32>
    %95 = vector.shape_cast %92 : vector<2x128xf32> to vector<1x2x128xf32>
    tpu.vector_store %arg3[%c11_104, %c0_105, %c0_106], %95 {strides = array<i32>} : memref<32x2x128xf32, #tpu.memory_space<vmem>>, vector<1x2x128xf32>,
    %c12 = arith.constant 12 : index
    %c0_107 = arith.constant 0 : index
    %c0_108 = arith.constant 0 : index
    %96 = vector.load %arg1[%c12, %c0_107, %c0_108] : memref<32x2x128xf32, #tpu.memory_space<vmem>>, vector<1x2x128xf32>
    %97 = vector.shape_cast %96 : vector<1x2x128xf32> to vector<2x128xf32>
    %c12_109 = arith.constant 12 : index
    %c0_110 = arith.constant 0 : index
    %c0_111 = arith.constant 0 : index
    %98 = vector.load %arg2[%c12_109, %c0_110, %c0_111] : memref<32x128x128xf32, #tpu.memory_space<vmem>>, vector<1x128x128xf32>
    %99 = vector.shape_cast %98 : vector<1x128x128xf32> to vector<128x128xf32>
    %cst_112 = arith.constant dense<0.000000e+00> : vector<2x128xf32>
    %100 = tpu.matmul %97, %99, %cst_112 {dimension_numbers = #tpu.dot_dimension_numbers<[1], [0], [0], [1], [0, 0, 1, 1], [], []>} : vector<2x128xf32>, vector<128x128xf32>, vector<2x128xf32> -> vector<2x128xf32>
    %c12_113 = arith.constant 12 : index
    %c0_114 = arith.constant 0 : index
    %c0_115 = arith.constant 0 : index
    %101 = vector.load %arg3[%c12_113, %c0_114, %c0_115] : memref<32x2x128xf32, #tpu.memory_space<vmem>>, vector<1x2x128xf32>
    %102 = vector.shape_cast %101 : vector<1x2x128xf32> to vector<2x128xf32>
    %103 = vector.shape_cast %100 : vector<2x128xf32> to vector<1x2x128xf32>
    tpu.vector_store %arg3[%c12_113, %c0_114, %c0_115], %103 {strides = array<i32>} : memref<32x2x128xf32, #tpu.memory_space<vmem>>, vector<1x2x128xf32>,
    %c13 = arith.constant 13 : index
    %c0_116 = arith.constant 0 : index
    %c0_117 = arith.constant 0 : index
    %104 = vector.load %arg1[%c13, %c0_116, %c0_117] : memref<32x2x128xf32, #tpu.memory_space<vmem>>, vector<1x2x128xf32>
    %105 = vector.shape_cast %104 : vector<1x2x128xf32> to vector<2x128xf32>
    %c13_118 = arith.constant 13 : index
    %c0_119 = arith.constant 0 : index
    %c0_120 = arith.constant 0 : index
    %106 = vector.load %arg2[%c13_118, %c0_119, %c0_120] : memref<32x128x128xf32, #tpu.memory_space<vmem>>, vector<1x128x128xf32>
    %107 = vector.shape_cast %106 : vector<1x128x128xf32> to vector<128x128xf32>
    %cst_121 = arith.constant dense<0.000000e+00> : vector<2x128xf32>
    %108 = tpu.matmul %105, %107, %cst_121 {dimension_numbers = #tpu.dot_dimension_numbers<[1], [0], [0], [1], [0, 0, 1, 1], [], []>} : vector<2x128xf32>, vector<128x128xf32>, vector<2x128xf32> -> vector<2x128xf32>
    %c13_122 = arith.constant 13 : index
    %c0_123 = arith.constant 0 : index
    %c0_124 = arith.constant 0 : index
    %109 = vector.load %arg3[%c13_122, %c0_123, %c0_124] : memref<32x2x128xf32, #tpu.memory_space<vmem>>, vector<1x2x128xf32>
    %110 = vector.shape_cast %109 : vector<1x2x128xf32> to vector<2x128xf32>
    %111 = vector.shape_cast %108 : vector<2x128xf32> to vector<1x2x128xf32>
    tpu.vector_store %arg3[%c13_122, %c0_123, %c0_124], %111 {strides = array<i32>} : memref<32x2x128xf32, #tpu.memory_space<vmem>>, vector<1x2x128xf32>,
    %c14 = arith.constant 14 : index
    %c0_125 = arith.constant 0 : index
    %c0_126 = arith.constant 0 : index
    %112 = vector.load %arg1[%c14, %c0_125, %c0_126] : memref<32x2x128xf32, #tpu.memory_space<vmem>>, vector<1x2x128xf32>
    %113 = vector.shape_cast %112 : vector<1x2x128xf32> to vector<2x128xf32>
    %c14_127 = arith.constant 14 : index
    %c0_128 = arith.constant 0 : index
    %c0_129 = arith.constant 0 : index
    %114 = vector.load %arg2[%c14_127, %c0_128, %c0_129] : memref<32x128x128xf32, #tpu.memory_space<vmem>>, vector<1x128x128xf32>
    %115 = vector.shape_cast %114 : vector<1x128x128xf32> to vector<128x128xf32>
    %cst_130 = arith.constant dense<0.000000e+00> : vector<2x128xf32>
    %116 = tpu.matmul %113, %115, %cst_130 {dimension_numbers = #tpu.dot_dimension_numbers<[1], [0], [0], [1], [0, 0, 1, 1], [], []>} : vector<2x128xf32>, vector<128x128xf32>, vector<2x128xf32> -> vector<2x128xf32>
    %c14_131 = arith.constant 14 : index
    %c0_132 = arith.constant 0 : index
    %c0_133 = arith.constant 0 : index
    %117 = vector.load %arg3[%c14_131, %c0_132, %c0_133] : memref<32x2x128xf32, #tpu.memory_space<vmem>>, vector<1x2x128xf32>
    %118 = vector.shape_cast %117 : vector<1x2x128xf32> to vector<2x128xf32>
    %119 = vector.shape_cast %116 : vector<2x128xf32> to vector<1x2x128xf32>
    tpu.vector_store %arg3[%c14_131, %c0_132, %c0_133], %119 {strides = array<i32>} : memref<32x2x128xf32, #tpu.memory_space<vmem>>, vector<1x2x128xf32>,
    %c15 = arith.constant 15 : index
    %c0_134 = arith.constant 0 : index
    %c0_135 = arith.constant 0 : index
    %120 = vector.load %arg1[%c15, %c0_134, %c0_135] : memref<32x2x128xf32, #tpu.memory_space<vmem>>, vector<1x2x128xf32>
    %121 = vector.shape_cast %120 : vector<1x2x128xf32> to vector<2x128xf32>
    %c15_136 = arith.constant 15 : index
    %c0_137 = arith.constant 0 : index
    %c0_138 = arith.constant 0 : index
    %122 = vector.load %arg2[%c15_136, %c0_137, %c0_138] : memref<32x128x128xf32, #tpu.memory_space<vmem>>, vector<1x128x128xf32>
    %123 = vector.shape_cast %122 : vector<1x128x128xf32> to vector<128x128xf32>
    %cst_139 = arith.constant dense<0.000000e+00> : vector<2x128xf32>
    %124 = tpu.matmul %121, %123, %cst_139 {dimension_numbers = #tpu.dot_dimension_numbers<[1], [0], [0], [1], [0, 0, 1, 1], [], []>} : vector<2x128xf32>, vector<128x128xf32>, vector<2x128xf32> -> vector<2x128xf32>
    %c15_140 = arith.constant 15 : index
    %c0_141 = arith.constant 0 : index
    %c0_142 = arith.constant 0 : index
    %125 = vector.load %arg3[%c15_140, %c0_141, %c0_142] : memref<32x2x128xf32, #tpu.memory_space<vmem>>, vector<1x2x128xf32>
    %126 = vector.shape_cast %125 : vector<1x2x128xf32> to vector<2x128xf32>
    %127 = vector.shape_cast %124 : vector<2x128xf32> to vector<1x2x128xf32>
    tpu.vector_store %arg3[%c15_140, %c0_141, %c0_142], %127 {strides = array<i32>} : memref<32x2x128xf32, #tpu.memory_space<vmem>>, vector<1x2x128xf32>,
    %c16 = arith.constant 16 : index
    %c0_143 = arith.constant 0 : index
    %c0_144 = arith.constant 0 : index
    %128 = vector.load %arg1[%c16, %c0_143, %c0_144] : memref<32x2x128xf32, #tpu.memory_space<vmem>>, vector<1x2x128xf32>
    %129 = vector.shape_cast %128 : vector<1x2x128xf32> to vector<2x128xf32>
    %c16_145 = arith.constant 16 : index
    %c0_146 = arith.constant 0 : index
    %c0_147 = arith.constant 0 : index
    %130 = vector.load %arg2[%c16_145, %c0_146, %c0_147] : memref<32x128x128xf32, #tpu.memory_space<vmem>>, vector<1x128x128xf32>
    %131 = vector.shape_cast %130 : vector<1x128x128xf32> to vector<128x128xf32>
    %cst_148 = arith.constant dense<0.000000e+00> : vector<2x128xf32>
    %132 = tpu.matmul %129, %131, %cst_148 {dimension_numbers = #tpu.dot_dimension_numbers<[1], [0], [0], [1], [0, 0, 1, 1], [], []>} : vector<2x128xf32>, vector<128x128xf32>, vector<2x128xf32> -> vector<2x128xf32>
    %c16_149 = arith.constant 16 : index
    %c0_150 = arith.constant 0 : index
    %c0_151 = arith.constant 0 : index
    %133 = vector.load %arg3[%c16_149, %c0_150, %c0_151] : memref<32x2x128xf32, #tpu.memory_space<vmem>>, vector<1x2x128xf32>
    %134 = vector.shape_cast %133 : vector<1x2x128xf32> to vector<2x128xf32>
    %135 = vector.shape_cast %132 : vector<2x128xf32> to vector<1x2x128xf32>
    tpu.vector_store %arg3[%c16_149, %c0_150, %c0_151], %135 {strides = array<i32>} : memref<32x2x128xf32, #tpu.memory_space<vmem>>, vector<1x2x128xf32>,
    %c17 = arith.constant 17 : index
    %c0_152 = arith.constant 0 : index
    %c0_153 = arith.constant 0 : index
    %136 = vector.load %arg1[%c17, %c0_152, %c0_153] : memref<32x2x128xf32, #tpu.memory_space<vmem>>, vector<1x2x128xf32>
    %137 = vector.shape_cast %136 : vector<1x2x128xf32> to vector<2x128xf32>
    %c17_154 = arith.constant 17 : index
    %c0_155 = arith.constant 0 : index
    %c0_156 = arith.constant 0 : index
    %138 = vector.load %arg2[%c17_154, %c0_155, %c0_156] : memref<32x128x128xf32, #tpu.memory_space<vmem>>, vector<1x128x128xf32>
    %139 = vector.shape_cast %138 : vector<1x128x128xf32> to vector<128x128xf32>
    %cst_157 = arith.constant dense<0.000000e+00> : vector<2x128xf32>
    %140 = tpu.matmul %137, %139, %cst_157 {dimension_numbers = #tpu.dot_dimension_numbers<[1], [0], [0], [1], [0, 0, 1, 1], [], []>} : vector<2x128xf32>, vector<128x128xf32>, vector<2x128xf32> -> vector<2x128xf32>
    %c17_158 = arith.constant 17 : index
    %c0_159 = arith.constant 0 : index
    %c0_160 = arith.constant 0 : index
    %141 = vector.load %arg3[%c17_158, %c0_159, %c0_160] : memref<32x2x128xf32, #tpu.memory_space<vmem>>, vector<1x2x128xf32>
    %142 = vector.shape_cast %141 : vector<1x2x128xf32> to vector<2x128xf32>
    %143 = vector.shape_cast %140 : vector<2x128xf32> to vector<1x2x128xf32>
    tpu.vector_store %arg3[%c17_158, %c0_159, %c0_160], %143 {strides = array<i32>} : memref<32x2x128xf32, #tpu.memory_space<vmem>>, vector<1x2x128xf32>,
    %c18 = arith.constant 18 : index
    %c0_161 = arith.constant 0 : index
    %c0_162 = arith.constant 0 : index
    %144 = vector.load %arg1[%c18, %c0_161, %c0_162] : memref<32x2x128xf32, #tpu.memory_space<vmem>>, vector<1x2x128xf32>
    %145 = vector.shape_cast %144 : vector<1x2x128xf32> to vector<2x128xf32>
    %c18_163 = arith.constant 18 : index
    %c0_164 = arith.constant 0 : index
    %c0_165 = arith.constant 0 : index
    %146 = vector.load %arg2[%c18_163, %c0_164, %c0_165] : memref<32x128x128xf32, #tpu.memory_space<vmem>>, vector<1x128x128xf32>
    %147 = vector.shape_cast %146 : vector<1x128x128xf32> to vector<128x128xf32>
    %cst_166 = arith.constant dense<0.000000e+00> : vector<2x128xf32>
    %148 = tpu.matmul %145, %147, %cst_166 {dimension_numbers = #tpu.dot_dimension_numbers<[1], [0], [0], [1], [0, 0, 1, 1], [], []>} : vector<2x128xf32>, vector<128x128xf32>, vector<2x128xf32> -> vector<2x128xf32>
    %c18_167 = arith.constant 18 : index
    %c0_168 = arith.constant 0 : index
    %c0_169 = arith.constant 0 : index
    %149 = vector.load %arg3[%c18_167, %c0_168, %c0_169] : memref<32x2x128xf32, #tpu.memory_space<vmem>>, vector<1x2x128xf32>
    %150 = vector.shape_cast %149 : vector<1x2x128xf32> to vector<2x128xf32>
    %151 = vector.shape_cast %148 : vector<2x128xf32> to vector<1x2x128xf32>
    tpu.vector_store %arg3[%c18_167, %c0_168, %c0_169], %151 {strides = array<i32>} : memref<32x2x128xf32, #tpu.memory_space<vmem>>, vector<1x2x128xf32>,
    %c19 = arith.constant 19 : index
    %c0_170 = arith.constant 0 : index
    %c0_171 = arith.constant 0 : index
    %152 = vector.load %arg1[%c19, %c0_170, %c0_171] : memref<32x2x128xf32, #tpu.memory_space<vmem>>, vector<1x2x128xf32>
    %153 = vector.shape_cast %152 : vector<1x2x128xf32> to vector<2x128xf32>
    %c19_172 = arith.constant 19 : index
    %c0_173 = arith.constant 0 : index
    %c0_174 = arith.constant 0 : index
    %154 = vector.load %arg2[%c19_172, %c0_173, %c0_174] : memref<32x128x128xf32, #tpu.memory_space<vmem>>, vector<1x128x128xf32>
    %155 = vector.shape_cast %154 : vector<1x128x128xf32> to vector<128x128xf32>
    %cst_175 = arith.constant dense<0.000000e+00> : vector<2x128xf32>
    %156 = tpu.matmul %153, %155, %cst_175 {dimension_numbers = #tpu.dot_dimension_numbers<[1], [0], [0], [1], [0, 0, 1, 1], [], []>} : vector<2x128xf32>, vector<128x128xf32>, vector<2x128xf32> -> vector<2x128xf32>
    %c19_176 = arith.constant 19 : index
    %c0_177 = arith.constant 0 : index
    %c0_178 = arith.constant 0 : index
    %157 = vector.load %arg3[%c19_176, %c0_177, %c0_178] : memref<32x2x128xf32, #tpu.memory_space<vmem>>, vector<1x2x128xf32>
    %158 = vector.shape_cast %157 : vector<1x2x128xf32> to vector<2x128xf32>
    %159 = vector.shape_cast %156 : vector<2x128xf32> to vector<1x2x128xf32>
    tpu.vector_store %arg3[%c19_176, %c0_177, %c0_178], %159 {strides = array<i32>} : memref<32x2x128xf32, #tpu.memory_space<vmem>>, vector<1x2x128xf32>,
    %c20 = arith.constant 20 : index
    %c0_179 = arith.constant 0 : index
    %c0_180 = arith.constant 0 : index
    %160 = vector.load %arg1[%c20, %c0_179, %c0_180] : memref<32x2x128xf32, #tpu.memory_space<vmem>>, vector<1x2x128xf32>
    %161 = vector.shape_cast %160 : vector<1x2x128xf32> to vector<2x128xf32>
    %c20_181 = arith.constant 20 : index
    %c0_182 = arith.constant 0 : index
    %c0_183 = arith.constant 0 : index
    %162 = vector.load %arg2[%c20_181, %c0_182, %c0_183] : memref<32x128x128xf32, #tpu.memory_space<vmem>>, vector<1x128x128xf32>
    %163 = vector.shape_cast %162 : vector<1x128x128xf32> to vector<128x128xf32>
    %cst_184 = arith.constant dense<0.000000e+00> : vector<2x128xf32>
    %164 = tpu.matmul %161, %163, %cst_184 {dimension_numbers = #tpu.dot_dimension_numbers<[1], [0], [0], [1], [0, 0, 1, 1], [], []>} : vector<2x128xf32>, vector<128x128xf32>, vector<2x128xf32> -> vector<2x128xf32>
    %c20_185 = arith.constant 20 : index
    %c0_186 = arith.constant 0 : index
    %c0_187 = arith.constant 0 : index
    %165 = vector.load %arg3[%c20_185, %c0_186, %c0_187] : memref<32x2x128xf32, #tpu.memory_space<vmem>>, vector<1x2x128xf32>
    %166 = vector.shape_cast %165 : vector<1x2x128xf32> to vector<2x128xf32>
    %167 = vector.shape_cast %164 : vector<2x128xf32> to vector<1x2x128xf32>
    tpu.vector_store %arg3[%c20_185, %c0_186, %c0_187], %167 {strides = array<i32>} : memref<32x2x128xf32, #tpu.memory_space<vmem>>, vector<1x2x128xf32>,
    %c21 = arith.constant 21 : index
    %c0_188 = arith.constant 0 : index
    %c0_189 = arith.constant 0 : index
    %168 = vector.load %arg1[%c21, %c0_188, %c0_189] : memref<32x2x128xf32, #tpu.memory_space<vmem>>, vector<1x2x128xf32>
    %169 = vector.shape_cast %168 : vector<1x2x128xf32> to vector<2x128xf32>
    %c21_190 = arith.constant 21 : index
    %c0_191 = arith.constant 0 : index
    %c0_192 = arith.constant 0 : index
    %170 = vector.load %arg2[%c21_190, %c0_191, %c0_192] : memref<32x128x128xf32, #tpu.memory_space<vmem>>, vector<1x128x128xf32>
    %171 = vector.shape_cast %170 : vector<1x128x128xf32> to vector<128x128xf32>
    %cst_193 = arith.constant dense<0.000000e+00> : vector<2x128xf32>
    %172 = tpu.matmul %169, %171, %cst_193 {dimension_numbers = #tpu.dot_dimension_numbers<[1], [0], [0], [1], [0, 0, 1, 1], [], []>} : vector<2x128xf32>, vector<128x128xf32>, vector<2x128xf32> -> vector<2x128xf32>
    %c21_194 = arith.constant 21 : index
    %c0_195 = arith.constant 0 : index
    %c0_196 = arith.constant 0 : index
    %173 = vector.load %arg3[%c21_194, %c0_195, %c0_196] : memref<32x2x128xf32, #tpu.memory_space<vmem>>, vector<1x2x128xf32>
    %174 = vector.shape_cast %173 : vector<1x2x128xf32> to vector<2x128xf32>
    %175 = vector.shape_cast %172 : vector<2x128xf32> to vector<1x2x128xf32>
    tpu.vector_store %arg3[%c21_194, %c0_195, %c0_196], %175 {strides = array<i32>} : memref<32x2x128xf32, #tpu.memory_space<vmem>>, vector<1x2x128xf32>,
    %c22 = arith.constant 22 : index
    %c0_197 = arith.constant 0 : index
    %c0_198 = arith.constant 0 : index
    %176 = vector.load %arg1[%c22, %c0_197, %c0_198] : memref<32x2x128xf32, #tpu.memory_space<vmem>>, vector<1x2x128xf32>
    %177 = vector.shape_cast %176 : vector<1x2x128xf32> to vector<2x128xf32>
    %c22_199 = arith.constant 22 : index
    %c0_200 = arith.constant 0 : index
    %c0_201 = arith.constant 0 : index
    %178 = vector.load %arg2[%c22_199, %c0_200, %c0_201] : memref<32x128x128xf32, #tpu.memory_space<vmem>>, vector<1x128x128xf32>
    %179 = vector.shape_cast %178 : vector<1x128x128xf32> to vector<128x128xf32>
    %cst_202 = arith.constant dense<0.000000e+00> : vector<2x128xf32>
    %180 = tpu.matmul %177, %179, %cst_202 {dimension_numbers = #tpu.dot_dimension_numbers<[1], [0], [0], [1], [0, 0, 1, 1], [], []>} : vector<2x128xf32>, vector<128x128xf32>, vector<2x128xf32> -> vector<2x128xf32>
    %c22_203 = arith.constant 22 : index
    %c0_204 = arith.constant 0 : index
    %c0_205 = arith.constant 0 : index
    %181 = vector.load %arg3[%c22_203, %c0_204, %c0_205] : memref<32x2x128xf32, #tpu.memory_space<vmem>>, vector<1x2x128xf32>
    %182 = vector.shape_cast %181 : vector<1x2x128xf32> to vector<2x128xf32>
    %183 = vector.shape_cast %180 : vector<2x128xf32> to vector<1x2x128xf32>
    tpu.vector_store %arg3[%c22_203, %c0_204, %c0_205], %183 {strides = array<i32>} : memref<32x2x128xf32, #tpu.memory_space<vmem>>, vector<1x2x128xf32>,
    %c23 = arith.constant 23 : index
    %c0_206 = arith.constant 0 : index
    %c0_207 = arith.constant 0 : index
    %184 = vector.load %arg1[%c23, %c0_206, %c0_207] : memref<32x2x128xf32, #tpu.memory_space<vmem>>, vector<1x2x128xf32>
    %185 = vector.shape_cast %184 : vector<1x2x128xf32> to vector<2x128xf32>
    %c23_208 = arith.constant 23 : index
    %c0_209 = arith.constant 0 : index
    %c0_210 = arith.constant 0 : index
    %186 = vector.load %arg2[%c23_208, %c0_209, %c0_210] : memref<32x128x128xf32, #tpu.memory_space<vmem>>, vector<1x128x128xf32>
    %187 = vector.shape_cast %186 : vector<1x128x128xf32> to vector<128x128xf32>
    %cst_211 = arith.constant dense<0.000000e+00> : vector<2x128xf32>
    %188 = tpu.matmul %185, %187, %cst_211 {dimension_numbers = #tpu.dot_dimension_numbers<[1], [0], [0], [1], [0, 0, 1, 1], [], []>} : vector<2x128xf32>, vector<128x128xf32>, vector<2x128xf32> -> vector<2x128xf32>
    %c23_212 = arith.constant 23 : index
    %c0_213 = arith.constant 0 : index
    %c0_214 = arith.constant 0 : index
    %189 = vector.load %arg3[%c23_212, %c0_213, %c0_214] : memref<32x2x128xf32, #tpu.memory_space<vmem>>, vector<1x2x128xf32>
    %190 = vector.shape_cast %189 : vector<1x2x128xf32> to vector<2x128xf32>
    %191 = vector.shape_cast %188 : vector<2x128xf32> to vector<1x2x128xf32>
    tpu.vector_store %arg3[%c23_212, %c0_213, %c0_214], %191 {strides = array<i32>} : memref<32x2x128xf32, #tpu.memory_space<vmem>>, vector<1x2x128xf32>,
    %c24 = arith.constant 24 : index
    %c0_215 = arith.constant 0 : index
    %c0_216 = arith.constant 0 : index
    %192 = vector.load %arg1[%c24, %c0_215, %c0_216] : memref<32x2x128xf32, #tpu.memory_space<vmem>>, vector<1x2x128xf32>
    %193 = vector.shape_cast %192 : vector<1x2x128xf32> to vector<2x128xf32>
    %c24_217 = arith.constant 24 : index
    %c0_218 = arith.constant 0 : index
    %c0_219 = arith.constant 0 : index
    %194 = vector.load %arg2[%c24_217, %c0_218, %c0_219] : memref<32x128x128xf32, #tpu.memory_space<vmem>>, vector<1x128x128xf32>
    %195 = vector.shape_cast %194 : vector<1x128x128xf32> to vector<128x128xf32>
    %cst_220 = arith.constant dense<0.000000e+00> : vector<2x128xf32>
    %196 = tpu.matmul %193, %195, %cst_220 {dimension_numbers = #tpu.dot_dimension_numbers<[1], [0], [0], [1], [0, 0, 1, 1], [], []>} : vector<2x128xf32>, vector<128x128xf32>, vector<2x128xf32> -> vector<2x128xf32>
    %c24_221 = arith.constant 24 : index
    %c0_222 = arith.constant 0 : index
    %c0_223 = arith.constant 0 : index
    %197 = vector.load %arg3[%c24_221, %c0_222, %c0_223] : memref<32x2x128xf32, #tpu.memory_space<vmem>>, vector<1x2x128xf32>
    %198 = vector.shape_cast %197 : vector<1x2x128xf32> to vector<2x128xf32>
    %199 = vector.shape_cast %196 : vector<2x128xf32> to vector<1x2x128xf32>
    tpu.vector_store %arg3[%c24_221, %c0_222, %c0_223], %199 {strides = array<i32>} : memref<32x2x128xf32, #tpu.memory_space<vmem>>, vector<1x2x128xf32>,
    %c25 = arith.constant 25 : index
    %c0_224 = arith.constant 0 : index
    %c0_225 = arith.constant 0 : index
    %200 = vector.load %arg1[%c25, %c0_224, %c0_225] : memref<32x2x128xf32, #tpu.memory_space<vmem>>, vector<1x2x128xf32>
    %201 = vector.shape_cast %200 : vector<1x2x128xf32> to vector<2x128xf32>
    %c25_226 = arith.constant 25 : index
    %c0_227 = arith.constant 0 : index
    %c0_228 = arith.constant 0 : index
    %202 = vector.load %arg2[%c25_226, %c0_227, %c0_228] : memref<32x128x128xf32, #tpu.memory_space<vmem>>, vector<1x128x128xf32>
    %203 = vector.shape_cast %202 : vector<1x128x128xf32> to vector<128x128xf32>
    %cst_229 = arith.constant dense<0.000000e+00> : vector<2x128xf32>
    %204 = tpu.matmul %201, %203, %cst_229 {dimension_numbers = #tpu.dot_dimension_numbers<[1], [0], [0], [1], [0, 0, 1, 1], [], []>} : vector<2x128xf32>, vector<128x128xf32>, vector<2x128xf32> -> vector<2x128xf32>
    %c25_230 = arith.constant 25 : index
    %c0_231 = arith.constant 0 : index
    %c0_232 = arith.constant 0 : index
    %205 = vector.load %arg3[%c25_230, %c0_231, %c0_232] : memref<32x2x128xf32, #tpu.memory_space<vmem>>, vector<1x2x128xf32>
    %206 = vector.shape_cast %205 : vector<1x2x128xf32> to vector<2x128xf32>
    %207 = vector.shape_cast %204 : vector<2x128xf32> to vector<1x2x128xf32>
    tpu.vector_store %arg3[%c25_230, %c0_231, %c0_232], %207 {strides = array<i32>} : memref<32x2x128xf32, #tpu.memory_space<vmem>>, vector<1x2x128xf32>,
    %c26 = arith.constant 26 : index
    %c0_233 = arith.constant 0 : index
    %c0_234 = arith.constant 0 : index
    %208 = vector.load %arg1[%c26, %c0_233, %c0_234] : memref<32x2x128xf32, #tpu.memory_space<vmem>>, vector<1x2x128xf32>
    %209 = vector.shape_cast %208 : vector<1x2x128xf32> to vector<2x128xf32>
    %c26_235 = arith.constant 26 : index
    %c0_236 = arith.constant 0 : index
    %c0_237 = arith.constant 0 : index
    %210 = vector.load %arg2[%c26_235, %c0_236, %c0_237] : memref<32x128x128xf32, #tpu.memory_space<vmem>>, vector<1x128x128xf32>
    %211 = vector.shape_cast %210 : vector<1x128x128xf32> to vector<128x128xf32>
    %cst_238 = arith.constant dense<0.000000e+00> : vector<2x128xf32>
    %212 = tpu.matmul %209, %211, %cst_238 {dimension_numbers = #tpu.dot_dimension_numbers<[1], [0], [0], [1], [0, 0, 1, 1], [], []>} : vector<2x128xf32>, vector<128x128xf32>, vector<2x128xf32> -> vector<2x128xf32>
    %c26_239 = arith.constant 26 : index
    %c0_240 = arith.constant 0 : index
    %c0_241 = arith.constant 0 : index
    %213 = vector.load %arg3[%c26_239, %c0_240, %c0_241] : memref<32x2x128xf32, #tpu.memory_space<vmem>>, vector<1x2x128xf32>
    %214 = vector.shape_cast %213 : vector<1x2x128xf32> to vector<2x128xf32>
    %215 = vector.shape_cast %212 : vector<2x128xf32> to vector<1x2x128xf32>
    tpu.vector_store %arg3[%c26_239, %c0_240, %c0_241], %215 {strides = array<i32>} : memref<32x2x128xf32, #tpu.memory_space<vmem>>, vector<1x2x128xf32>,
    %c27 = arith.constant 27 : index
    %c0_242 = arith.constant 0 : index
    %c0_243 = arith.constant 0 : index
    %216 = vector.load %arg1[%c27, %c0_242, %c0_243] : memref<32x2x128xf32, #tpu.memory_space<vmem>>, vector<1x2x128xf32>
    %217 = vector.shape_cast %216 : vector<1x2x128xf32> to vector<2x128xf32>
    %c27_244 = arith.constant 27 : index
    %c0_245 = arith.constant 0 : index
    %c0_246 = arith.constant 0 : index
    %218 = vector.load %arg2[%c27_244, %c0_245, %c0_246] : memref<32x128x128xf32, #tpu.memory_space<vmem>>, vector<1x128x128xf32>
    %219 = vector.shape_cast %218 : vector<1x128x128xf32> to vector<128x128xf32>
    %cst_247 = arith.constant dense<0.000000e+00> : vector<2x128xf32>
    %220 = tpu.matmul %217, %219, %cst_247 {dimension_numbers = #tpu.dot_dimension_numbers<[1], [0], [0], [1], [0, 0, 1, 1], [], []>} : vector<2x128xf32>, vector<128x128xf32>, vector<2x128xf32> -> vector<2x128xf32>
    %c27_248 = arith.constant 27 : index
    %c0_249 = arith.constant 0 : index
    %c0_250 = arith.constant 0 : index
    %221 = vector.load %arg3[%c27_248, %c0_249, %c0_250] : memref<32x2x128xf32, #tpu.memory_space<vmem>>, vector<1x2x128xf32>
    %222 = vector.shape_cast %221 : vector<1x2x128xf32> to vector<2x128xf32>
    %223 = vector.shape_cast %220 : vector<2x128xf32> to vector<1x2x128xf32>
    tpu.vector_store %arg3[%c27_248, %c0_249, %c0_250], %223 {strides = array<i32>} : memref<32x2x128xf32, #tpu.memory_space<vmem>>, vector<1x2x128xf32>,
    %c28 = arith.constant 28 : index
    %c0_251 = arith.constant 0 : index
    %c0_252 = arith.constant 0 : index
    %224 = vector.load %arg1[%c28, %c0_251, %c0_252] : memref<32x2x128xf32, #tpu.memory_space<vmem>>, vector<1x2x128xf32>
    %225 = vector.shape_cast %224 : vector<1x2x128xf32> to vector<2x128xf32>
    %c28_253 = arith.constant 28 : index
    %c0_254 = arith.constant 0 : index
    %c0_255 = arith.constant 0 : index
    %226 = vector.load %arg2[%c28_253, %c0_254, %c0_255] : memref<32x128x128xf32, #tpu.memory_space<vmem>>, vector<1x128x128xf32>
    %227 = vector.shape_cast %226 : vector<1x128x128xf32> to vector<128x128xf32>
    %cst_256 = arith.constant dense<0.000000e+00> : vector<2x128xf32>
    %228 = tpu.matmul %225, %227, %cst_256 {dimension_numbers = #tpu.dot_dimension_numbers<[1], [0], [0], [1], [0, 0, 1, 1], [], []>} : vector<2x128xf32>, vector<128x128xf32>, vector<2x128xf32> -> vector<2x128xf32>
    %c28_257 = arith.constant 28 : index
    %c0_258 = arith.constant 0 : index
    %c0_259 = arith.constant 0 : index
    %229 = vector.load %arg3[%c28_257, %c0_258, %c0_259] : memref<32x2x128xf32, #tpu.memory_space<vmem>>, vector<1x2x128xf32>
    %230 = vector.shape_cast %229 : vector<1x2x128xf32> to vector<2x128xf32>
    %231 = vector.shape_cast %228 : vector<2x128xf32> to vector<1x2x128xf32>
    tpu.vector_store %arg3[%c28_257, %c0_258, %c0_259], %231 {strides = array<i32>} : memref<32x2x128xf32, #tpu.memory_space<vmem>>, vector<1x2x128xf32>,
    %c29 = arith.constant 29 : index
    %c0_260 = arith.constant 0 : index
    %c0_261 = arith.constant 0 : index
    %232 = vector.load %arg1[%c29, %c0_260, %c0_261] : memref<32x2x128xf32, #tpu.memory_space<vmem>>, vector<1x2x128xf32>
    %233 = vector.shape_cast %232 : vector<1x2x128xf32> to vector<2x128xf32>
    %c29_262 = arith.constant 29 : index
    %c0_263 = arith.constant 0 : index
    %c0_264 = arith.constant 0 : index
    %234 = vector.load %arg2[%c29_262, %c0_263, %c0_264] : memref<32x128x128xf32, #tpu.memory_space<vmem>>, vector<1x128x128xf32>
    %235 = vector.shape_cast %234 : vector<1x128x128xf32> to vector<128x128xf32>
    %cst_265 = arith.constant dense<0.000000e+00> : vector<2x128xf32>
    %236 = tpu.matmul %233, %235, %cst_265 {dimension_numbers = #tpu.dot_dimension_numbers<[1], [0], [0], [1], [0, 0, 1, 1], [], []>} : vector<2x128xf32>, vector<128x128xf32>, vector<2x128xf32> -> vector<2x128xf32>
    %c29_266 = arith.constant 29 : index
    %c0_267 = arith.constant 0 : index
    %c0_268 = arith.constant 0 : index
    %237 = vector.load %arg3[%c29_266, %c0_267, %c0_268] : memref<32x2x128xf32, #tpu.memory_space<vmem>>, vector<1x2x128xf32>
    %238 = vector.shape_cast %237 : vector<1x2x128xf32> to vector<2x128xf32>
    %239 = vector.shape_cast %236 : vector<2x128xf32> to vector<1x2x128xf32>
    tpu.vector_store %arg3[%c29_266, %c0_267, %c0_268], %239 {strides = array<i32>} : memref<32x2x128xf32, #tpu.memory_space<vmem>>, vector<1x2x128xf32>,
    %c30 = arith.constant 30 : index
    %c0_269 = arith.constant 0 : index
    %c0_270 = arith.constant 0 : index
    %240 = vector.load %arg1[%c30, %c0_269, %c0_270] : memref<32x2x128xf32, #tpu.memory_space<vmem>>, vector<1x2x128xf32>
    %241 = vector.shape_cast %240 : vector<1x2x128xf32> to vector<2x128xf32>
    %c30_271 = arith.constant 30 : index
    %c0_272 = arith.constant 0 : index
    %c0_273 = arith.constant 0 : index
    %242 = vector.load %arg2[%c30_271, %c0_272, %c0_273] : memref<32x128x128xf32, #tpu.memory_space<vmem>>, vector<1x128x128xf32>
    %243 = vector.shape_cast %242 : vector<1x128x128xf32> to vector<128x128xf32>
    %cst_274 = arith.constant dense<0.000000e+00> : vector<2x128xf32>
    %244 = tpu.matmul %241, %243, %cst_274 {dimension_numbers = #tpu.dot_dimension_numbers<[1], [0], [0], [1], [0, 0, 1, 1], [], []>} : vector<2x128xf32>, vector<128x128xf32>, vector<2x128xf32> -> vector<2x128xf32>
    %c30_275 = arith.constant 30 : index
    %c0_276 = arith.constant 0 : index
    %c0_277 = arith.constant 0 : index
    %245 = vector.load %arg3[%c30_275, %c0_276, %c0_277] : memref<32x2x128xf32, #tpu.memory_space<vmem>>, vector<1x2x128xf32>
    %246 = vector.shape_cast %245 : vector<1x2x128xf32> to vector<2x128xf32>
    %247 = vector.shape_cast %244 : vector<2x128xf32> to vector<1x2x128xf32>
    tpu.vector_store %arg3[%c30_275, %c0_276, %c0_277], %247 {strides = array<i32>} : memref<32x2x128xf32, #tpu.memory_space<vmem>>, vector<1x2x128xf32>,
    %c31 = arith.constant 31 : index
    %c0_278 = arith.constant 0 : index
    %c0_279 = arith.constant 0 : index
    %248 = vector.load %arg1[%c31, %c0_278, %c0_279] : memref<32x2x128xf32, #tpu.memory_space<vmem>>, vector<1x2x128xf32>
    %249 = vector.shape_cast %248 : vector<1x2x128xf32> to vector<2x128xf32>
    %c31_280 = arith.constant 31 : index
    %c0_281 = arith.constant 0 : index
    %c0_282 = arith.constant 0 : index
    %250 = vector.load %arg2[%c31_280, %c0_281, %c0_282] : memref<32x128x128xf32, #tpu.memory_space<vmem>>, vector<1x128x128xf32>
    %251 = vector.shape_cast %250 : vector<1x128x128xf32> to vector<128x128xf32>
    %cst_283 = arith.constant dense<0.000000e+00> : vector<2x128xf32>
    %252 = tpu.matmul %249, %251, %cst_283 {dimension_numbers = #tpu.dot_dimension_numbers<[1], [0], [0], [1], [0, 0, 1, 1], [], []>} : vector<2x128xf32>, vector<128x128xf32>, vector<2x128xf32> -> vector<2x128xf32>
    %c31_284 = arith.constant 31 : index
    %c0_285 = arith.constant 0 : index
    %c0_286 = arith.constant 0 : index
    %253 = vector.load %arg3[%c31_284, %c0_285, %c0_286] : memref<32x2x128xf32, #tpu.memory_space<vmem>>, vector<1x2x128xf32>
    %254 = vector.shape_cast %253 : vector<1x2x128xf32> to vector<2x128xf32>
    %255 = vector.shape_cast %252 : vector<2x128xf32> to vector<1x2x128xf32>
    tpu.vector_store %arg3[%c31_284, %c0_285, %c0_286], %255 {strides = array<i32>} : memref<32x2x128xf32, #tpu.memory_space<vmem>>, vector<1x2x128xf32>,
    return
  }
  func.func @transform_0(%arg0: i32) -> (i32, i32, i32) {
    %c0_i32 = arith.constant 0 : i32
    %c0_i32_0 = arith.constant 0 : i32
    %c0_i32_1 = arith.constant 0 : i32
    return %arg0, %c0_i32, %c0_i32_0 : i32, i32, i32
  }
  func.func @transform_1(%arg0: i32) -> (i32, i32, i32) {
    %c0_i32 = arith.constant 0 : i32
    %c0_i32_0 = arith.constant 0 : i32
    %c0_i32_1 = arith.constant 0 : i32
    return %arg0, %c0_i32, %c0_i32_0 : i32, i32, i32
  }
  func.func @transform_2(%arg0: i32) -> (i32, i32, i32) {
    %c0_i32 = arith.constant 0 : i32
    %c0_i32_0 = arith.constant 0 : i32
    %c0_i32_1 = arith.constant 0 : i32
    return %arg0, %c0_i32, %c0_i32_0 : i32, i32, i32
  }
}

module attributes {stable_mosaic.version = 11 : i64} {
  func.func @_block_kernel(%arg0: i32, %arg1: memref<64x128xf32, #tpu.memory_space<vmem>>, %arg2: memref<64x128xf32, #tpu.memory_space<vmem>>, %arg3: memref<128x128xf32, #tpu.memory_space<vmem>>, %arg4: memref<1x128xf32, #tpu.memory_space<vmem>>, %arg5: memref<64x128xf32, #tpu.memory_space<vmem>>) attributes {dimension_semantics = [#tpu.dimension_semantics<parallel>], iteration_bounds = array<i64: 2>, scalar_prefetch = 0 : i64, scratch_operands = 0 : i64, tpu.core_type = #tpu.core_type<tc>, window_params = [{transform_indices = @transform_0, window_bounds = array<i64: 64, 128>}, {transform_indices = @transform_1, window_bounds = array<i64: 64, 128>}, {pipeline_mode = #tpu.pipeline_mode<synchronous>, transform_indices = @transform_2, window_bounds = array<i64: 128, 128>}, {pipeline_mode = #tpu.pipeline_mode<synchronous>, transform_indices = @transform_3, window_bounds = array<i64: 1, 128>}, {transform_indices = @transform_4, window_bounds = array<i64: 64, 128>}]} {
    %c0 = arith.constant 0 : index
    %c0_0 = arith.constant 0 : index
    %0 = vector.load %arg1[%c0, %c0_0] : memref<64x128xf32, #tpu.memory_space<vmem>>, vector<64x128xf32>
    %c0_1 = arith.constant 0 : index
    %c0_2 = arith.constant 0 : index
    %1 = vector.load %arg3[%c0_1, %c0_2] : memref<128x128xf32, #tpu.memory_space<vmem>>, vector<128x128xf32>
    %cst = arith.constant dense<0.000000e+00> : vector<64x128xf32>
    %2 = tpu.matmul %0, %1, %cst {dimension_numbers = #tpu.dot_dimension_numbers<[1], [0], [0], [1], [0, 0, 1, 1], [], []>} : vector<64x128xf32>, vector<128x128xf32>, vector<64x128xf32> -> vector<64x128xf32>
    %c0_3 = arith.constant 0 : index
    %c0_4 = arith.constant 0 : index
    %3 = vector.load %arg4[%c0_3, %c0_4] : memref<1x128xf32, #tpu.memory_space<vmem>>, vector<1x128xf32>
    %4 = vector.broadcast %3 : vector<1x128xf32> to vector<64x128xf32>
    %5 = arith.addf %2, %4 : vector<64x128xf32>
    %c0_5 = arith.constant 0 : index
    %c0_6 = arith.constant 0 : index
    %6 = vector.load %arg2[%c0_5, %c0_6] : memref<64x128xf32, #tpu.memory_space<vmem>>, vector<64x128xf32>
    %7 = arith.addf %5, %6 : vector<64x128xf32>
    %cst_7 = arith.constant 0.000000e+00 : f32
    %8 = vector.broadcast %cst_7 : f32 to vector<64x128xf32>
    %9 = arith.maximumf %7, %8 : vector<64x128xf32>
    %c0_8 = arith.constant 0 : index
    %c0_9 = arith.constant 0 : index
    %10 = vector.load %arg5[%c0_8, %c0_9] : memref<64x128xf32, #tpu.memory_space<vmem>>, vector<64x128xf32>
    tpu.vector_store %arg5[%c0_8, %c0_9], %9 {strides = array<i32>} : memref<64x128xf32, #tpu.memory_space<vmem>>, vector<64x128xf32>,
    return
  }
  func.func @transform_0(%arg0: i32) -> (i32, i32) {
    %c0_i32 = arith.constant 0 : i32
    %c0_i32_0 = arith.constant 0 : i32
    return %arg0, %c0_i32 : i32, i32
  }
  func.func @transform_1(%arg0: i32) -> (i32, i32) {
    %c0_i32 = arith.constant 0 : i32
    %c0_i32_0 = arith.constant 0 : i32
    return %arg0, %c0_i32 : i32, i32
  }
  func.func @transform_2(%arg0: i32) -> (i32, i32) {
    %c0_i32 = arith.constant 0 : i32
    %c0_i32_0 = arith.constant 0 : i32
    %c0_i32_1 = arith.constant 0 : i32
    return %c0_i32, %c0_i32_0 : i32, i32
  }
  func.func @transform_3(%arg0: i32) -> (i32, i32) {
    %c0_i32 = arith.constant 0 : i32
    %c0_i32_0 = arith.constant 0 : i32
    %c0_i32_1 = arith.constant 0 : i32
    return %c0_i32, %c0_i32_0 : i32, i32
  }
  func.func @transform_4(%arg0: i32) -> (i32, i32) {
    %c0_i32 = arith.constant 0 : i32
    %c0_i32_0 = arith.constant 0 : i32
    return %arg0, %c0_i32 : i32, i32
  }
}

module attributes {stable_mosaic.version = 11 : i64} {
  func.func @_block_kernel(%arg0: i32, %arg1: memref<64x128xf32, #tpu.memory_space<vmem>>, %arg2: memref<64x128xf32, #tpu.memory_space<vmem>>, %arg3: memref<128x128xf32, #tpu.memory_space<vmem>>, %arg4: memref<1x128xf32, #tpu.memory_space<vmem>>, %arg5: memref<64x128xf32, #tpu.memory_space<vmem>>) attributes {dimension_semantics = [#tpu.dimension_semantics<parallel>], iteration_bounds = array<i64: 2>, scalar_prefetch = 0 : i64, scratch_operands = 0 : i64, tpu.core_type = #tpu.core_type<tc>, window_params = [{transform_indices = @transform_0, window_bounds = array<i64: 64, 128>}, {transform_indices = @transform_1, window_bounds = array<i64: 64, 128>}, {pipeline_mode = #tpu.pipeline_mode<synchronous>, transform_indices = @transform_2, window_bounds = array<i64: 128, 128>}, {pipeline_mode = #tpu.pipeline_mode<synchronous>, transform_indices = @transform_3, window_bounds = array<i64: 1, 128>}, {transform_indices = @transform_4, window_bounds = array<i64: 64, 128>}]} {
    %c0 = arith.constant 0 : index
    %c0_0 = arith.constant 0 : index
    %0 = vector.load %arg1[%c0, %c0_0] : memref<64x128xf32, #tpu.memory_space<vmem>>, vector<64x128xf32>
    %c0_1 = arith.constant 0 : index
    %c0_2 = arith.constant 0 : index
    %1 = vector.load %arg3[%c0_1, %c0_2] : memref<128x128xf32, #tpu.memory_space<vmem>>, vector<128x128xf32>
    %cst = arith.constant dense<0.000000e+00> : vector<64x128xf32>
    %2 = tpu.matmul %0, %1, %cst {dimension_numbers = #tpu.dot_dimension_numbers<[1], [0], [0], [1], [0, 0, 1, 1], [], []>} : vector<64x128xf32>, vector<128x128xf32>, vector<64x128xf32> -> vector<64x128xf32>
    %c0_3 = arith.constant 0 : index
    %c0_4 = arith.constant 0 : index
    %3 = vector.load %arg4[%c0_3, %c0_4] : memref<1x128xf32, #tpu.memory_space<vmem>>, vector<1x128xf32>
    %4 = vector.broadcast %3 : vector<1x128xf32> to vector<64x128xf32>
    %5 = arith.addf %2, %4 : vector<64x128xf32>
    %c0_5 = arith.constant 0 : index
    %c0_6 = arith.constant 0 : index
    %6 = vector.load %arg2[%c0_5, %c0_6] : memref<64x128xf32, #tpu.memory_space<vmem>>, vector<64x128xf32>
    %7 = arith.addf %5, %6 : vector<64x128xf32>
    %c0_7 = arith.constant 0 : index
    %c0_8 = arith.constant 0 : index
    %8 = vector.load %arg5[%c0_7, %c0_8] : memref<64x128xf32, #tpu.memory_space<vmem>>, vector<64x128xf32>
    tpu.vector_store %arg5[%c0_7, %c0_8], %7 {strides = array<i32>} : memref<64x128xf32, #tpu.memory_space<vmem>>, vector<64x128xf32>,
    return
  }
  func.func @transform_0(%arg0: i32) -> (i32, i32) {
    %c0_i32 = arith.constant 0 : i32
    %c0_i32_0 = arith.constant 0 : i32
    return %arg0, %c0_i32 : i32, i32
  }
  func.func @transform_1(%arg0: i32) -> (i32, i32) {
    %c0_i32 = arith.constant 0 : i32
    %c0_i32_0 = arith.constant 0 : i32
    return %arg0, %c0_i32 : i32, i32
  }
  func.func @transform_2(%arg0: i32) -> (i32, i32) {
    %c0_i32 = arith.constant 0 : i32
    %c0_i32_0 = arith.constant 0 : i32
    %c0_i32_1 = arith.constant 0 : i32
    return %c0_i32, %c0_i32_0 : i32, i32
  }
  func.func @transform_3(%arg0: i32) -> (i32, i32) {
    %c0_i32 = arith.constant 0 : i32
    %c0_i32_0 = arith.constant 0 : i32
    %c0_i32_1 = arith.constant 0 : i32
    return %c0_i32, %c0_i32_0 : i32, i32
  }
  func.func @transform_4(%arg0: i32) -> (i32, i32) {
    %c0_i32 = arith.constant 0 : i32
    %c0_i32_0 = arith.constant 0 : i32
    return %arg0, %c0_i32 : i32, i32
  }
}

module attributes {stable_mosaic.version = 11 : i64} {
  func.func @_fc12_kernel(%arg0: i32, %arg1: memref<16x512xf32, #tpu.memory_space<vmem>>, %arg2: memref<128x16xf32, #tpu.memory_space<vmem>>, %arg3: memref<128x1xf32, #tpu.memory_space<vmem>>, %arg4: memref<128x1xf32, #tpu.memory_space<vmem>>, %arg5: memref<1x1xf32, #tpu.memory_space<vmem>>, %arg6: memref<1x512xf32, #tpu.memory_space<vmem>>) attributes {dimension_semantics = [#tpu.dimension_semantics<parallel>], iteration_bounds = array<i64: 2>, scalar_prefetch = 0 : i64, scratch_operands = 0 : i64, tpu.core_type = #tpu.core_type<tc>, window_params = [{transform_indices = @transform_0, window_bounds = array<i64: 16, 512>}, {pipeline_mode = #tpu.pipeline_mode<synchronous>, transform_indices = @transform_1, window_bounds = array<i64: 128, 16>}, {pipeline_mode = #tpu.pipeline_mode<synchronous>, transform_indices = @transform_2, window_bounds = array<i64: 128, 1>}, {pipeline_mode = #tpu.pipeline_mode<synchronous>, transform_indices = @transform_3, window_bounds = array<i64: 128, 1>}, {pipeline_mode = #tpu.pipeline_mode<synchronous>, transform_indices = @transform_4, window_bounds = array<i64: 1, 1>}, {transform_indices = @transform_5, window_bounds = array<i64: 1, 512>}]} {
    %c0 = arith.constant 0 : index
    %c0_0 = arith.constant 0 : index
    %0 = vector.load %arg2[%c0, %c0_0] : memref<128x16xf32, #tpu.memory_space<vmem>>, vector<128x16xf32>
    %c0_1 = arith.constant 0 : index
    %c0_2 = arith.constant 0 : index
    %1 = vector.load %arg1[%c0_1, %c0_2] : memref<16x512xf32, #tpu.memory_space<vmem>>, vector<16x512xf32>
    %cst = arith.constant dense<0.000000e+00> : vector<128x512xf32>
    %2 = tpu.matmul %0, %1, %cst {dimension_numbers = #tpu.dot_dimension_numbers<[1], [0], [0], [1], [0, 0, 1, 1], [], []>} : vector<128x16xf32>, vector<16x512xf32>, vector<128x512xf32> -> vector<128x512xf32>
    %c0_3 = arith.constant 0 : index
    %c0_4 = arith.constant 0 : index
    %3 = vector.load %arg3[%c0_3, %c0_4] : memref<128x1xf32, #tpu.memory_space<vmem>>, vector<128x1xf32>
    %4 = vector.broadcast %3 : vector<128x1xf32> to vector<128x512xf32>
    %5 = arith.addf %2, %4 : vector<128x512xf32>
    %cst_5 = arith.constant 0.000000e+00 : f32
    %6 = vector.broadcast %cst_5 : f32 to vector<128x512xf32>
    %7 = arith.maximumf %5, %6 : vector<128x512xf32>
    %c0_6 = arith.constant 0 : index
    %c0_7 = arith.constant 0 : index
    %8 = vector.load %arg4[%c0_6, %c0_7] : memref<128x1xf32, #tpu.memory_space<vmem>>, vector<128x1xf32>
    %9 = vector.broadcast %8 : vector<128x1xf32> to vector<128x512xf32>
    %10 = arith.mulf %7, %9 : vector<128x512xf32>
    %cst_8 = arith.constant dense<0.000000e+00> : vector<512xf32>
    %11 = vector.multi_reduction <add>, %10, %cst_8 [0] : vector<128x512xf32> to vector<512xf32>
    %12 = vector.shape_cast %11 : vector<512xf32> to vector<1x512xf32>
    %c0_9 = arith.constant 0 : index
    %c0_10 = arith.constant 0 : index
    %13 = vector.load %arg5[%c0_9, %c0_10] : memref<1x1xf32, #tpu.memory_space<vmem>>, vector<1x1xf32>
    %14 = vector.broadcast %13 : vector<1x1xf32> to vector<1x512xf32>
    %15 = arith.addf %12, %14 : vector<1x512xf32>
    %c0_11 = arith.constant 0 : index
    %c0_12 = arith.constant 0 : index
    %16 = vector.load %arg6[%c0_11, %c0_12] : memref<1x512xf32, #tpu.memory_space<vmem>>, vector<1x512xf32>
    tpu.vector_store %arg6[%c0_11, %c0_12], %15 {strides = array<i32>} : memref<1x512xf32, #tpu.memory_space<vmem>>, vector<1x512xf32>,
    return
  }
  func.func @transform_0(%arg0: i32) -> (i32, i32) {
    %c0_i32 = arith.constant 0 : i32
    %c0_i32_0 = arith.constant 0 : i32
    return %c0_i32, %arg0 : i32, i32
  }
  func.func @transform_1(%arg0: i32) -> (i32, i32) {
    %c0_i32 = arith.constant 0 : i32
    %c0_i32_0 = arith.constant 0 : i32
    %c0_i32_1 = arith.constant 0 : i32
    return %c0_i32, %c0_i32_0 : i32, i32
  }
  func.func @transform_2(%arg0: i32) -> (i32, i32) {
    %c0_i32 = arith.constant 0 : i32
    %c0_i32_0 = arith.constant 0 : i32
    %c0_i32_1 = arith.constant 0 : i32
    return %c0_i32, %c0_i32_0 : i32, i32
  }
  func.func @transform_3(%arg0: i32) -> (i32, i32) {
    %c0_i32 = arith.constant 0 : i32
    %c0_i32_0 = arith.constant 0 : i32
    %c0_i32_1 = arith.constant 0 : i32
    return %c0_i32, %c0_i32_0 : i32, i32
  }
  func.func @transform_4(%arg0: i32) -> (i32, i32) {
    %c0_i32 = arith.constant 0 : i32
    %c0_i32_0 = arith.constant 0 : i32
    %c0_i32_1 = arith.constant 0 : i32
    return %c0_i32, %c0_i32_0 : i32, i32
  }
  func.func @transform_5(%arg0: i32) -> (i32, i32) {
    %c0_i32 = arith.constant 0 : i32
    %c0_i32_0 = arith.constant 0 : i32
    return %c0_i32, %arg0 : i32, i32
  }
}

</mosaic_0001>

<bundles_post_ra>
// kernel: forward.10
= control target key start
LH: loop header
LB: loop body
LE: loop exit
PB: predicated region body
PF: predicated region fallthrough
CT: control target
= control target key end

     0   :  { %8 = vsyncpa [#allocation3], 0  ;;  %s854_s0 = inlined_call_operand.vmem [shape: f32[32,128], index: 0, kind: input, shape index: {}]   ;;  %s855_s1 = inlined_call_operand.hbm [shape: f32[128,512], index: 1, kind: input, shape index: {}]   ;;  %s856_s2 = inlined_call_operand.hbm [shape: f32[1,512], index: 2, kind: input, shape index: {}]   ;;  %s857_s3 = inlined_call_operand.vmem [shape: f32[32,512], index: 3, kind: output, shape index: {}]  }
   0x1   :  { %9 = vsyncpa [#allocation5], 0  ;;  %s744_s12 = smov 0  }
   0x2 LB: > { %s534_s13 = sadd.s32 4294967295, %s717_s12   ;;  %p536_p0 = scmp.ge.s32.totalorder %s717_s12, 1  ;;  %s717_s12 = sphi %s744_s12, %s15_s12  }
   0x3   : > { %p114_p1 = scmp.lt.s32.totalorder %s717_s12, 3  ;;  %s719_s14 = smov [#allocation2]  }
   0x4   : > { %s126_s15 = sshll.u32 %s719_s14, 4  ;;  %p758_p3 = scmp.eq.s32.totalorder %s534_s13, 0  ;;  %s127_s15 = int_to_ptr.vmem [resolvable:$true] %s126_s15 }
   0x5   : > { %p752_p2 = pnand %p536_p0, %p114_p1  ;;  %s720_s18 = smov [#allocation4]  }
   0x6   : > { %s862_s17 = scalar_select %p758_p3, 1, 0 }
   0x7   : > { %s861_s16 = scalar_select %p752_p2, 1, 0 }
   0x8   : > { %p623_p4 = pneg %p752_p2  ;;  %s140_s19 = sshll.u32 %s720_s18, 4  ;;  %s770_s19 = int_to_ptr.vmem [resolvable:$true] %s140_s19 }
   0x9   : > { %s647_s23 = scalar_lea.hbm %s855_s1, 8192 }
   0xa   : > { %p766_p5 = pnand %p758_p3, %p623_p4  ;;  %p648_p6 = scmp.ne.s32.totalorder %s855_s1, %s647_s23 }
   0xb   : > { %p654_p10 = scmp.lt.u32.totalorder %s647_s23, %s855_s1 }
   0xc   : > { %p649_p7 = pneg %p766_p5 }
   0xe   : > { %p650_p8 = pnand %p649_p7, %p648_p6 }
  0x10   : > { %p651_p9 = pneg %p650_p8 }
  0x12   : > { %p656_p11 = pnand %p654_p10, %p651_p9 }
  0x14   : > { %659 = shalt.err (!%p656_p11)
}
  0x15   : > { %s660_s28 = scalar_lea.vmem %s127_s15, 8192  ;;  %p668_p1 = scmp.lt.s32.totalorder %s127_s15, %s127_s15 }
  0x16   : > { %p661_p12 = scmp.ne.s32.totalorder %s127_s15, %s660_s28  ;;  %p669_p4 = scmp.lt.s32.totalorder %s660_s28, %s660_s28 }
  0x18   : > { %p663_p13 = pnand %p661_p12, %p649_p7  ;;  %p670_p3 = por %p669_p4, %p668_p1 }
  0x1a   : > { %p664_p0 = pneg %p663_p13 }
  0x1c   : > { %p671_p2 = pnand %p670_p3, %p664_p0 }
  0x1e   : > { %674 = shalt.err (!%p671_p2)
}
  0x1f   : > { %s721_s29 = smov 512   ;;  %s722_s30 = smov 32  }
  0x20   : > { %626 = dma.hbm_to_vmem [thread:$0]  (!%p766_p5), %s855_s1, 8192, %s127_s15, [#allocation3], %s721_s29, %s721_s29, %s722_s30  }
  0x21   : > { %s675_s8 = scalar_lea.hbm %s856_s2, 64 }
  0x22   : > { %p676_p6 = scmp.ne.s32.totalorder %s856_s2, %s675_s8  ;;  %p682_p8 = scmp.lt.u32.totalorder %s675_s8, %s856_s2 }
  0x24   : > { %p678_p2 = pnand %p676_p6, %p649_p7 }
  0x26   : > { %p679_p3 = pneg %p678_p2 }
  0x28   : > { %p684_p9 = pnand %p682_p8, %p679_p3 }
  0x2a   : > { %687 = shalt.err (!%p684_p9)
}
  0x2b   : > { %s688_s15 = scalar_lea.vmem %s770_s19, 64  ;;  %p696_p13 = scmp.lt.s32.totalorder %s770_s19, %s770_s19 }
  0x2c   : > { %p689_p10 = scmp.ne.s32.totalorder %s770_s19, %s688_s15  ;;  %p697_p0 = scmp.lt.s32.totalorder %s688_s15, %s688_s15 }
  0x2e   : > { %p691_p11 = pnand %p689_p10, %p649_p7  ;;  %p698_p1 = por %p697_p0, %p696_p13 }
  0x30   : > { %p692_p12 = pneg %p691_p11 }
  0x32   : > { %p699_p4 = pnand %p698_p1, %p692_p12 }
  0x34   : > { %702 = shalt.err (!%p699_p4)
}
  0x35   : > { %629 = dma.hbm_to_vmem [thread:$0]  (!%p766_p5), %s856_s2, 64, %s770_s19, [#allocation5]  }
  0x36   : > { %p864_p6 = scmp.ne.s32.totalorder %s861_s16, 0 }
  0x37   : > { %p865_p2 = scmp.ne.s32.totalorder (!%p864_p6), %s862_s17, 0 }
  0x38   : > { %162 = sbr.rel (%p864_p6) target bundleno = 323 (0x143), region = 32 }
  0x3f   : > { %708 = dma.done.wait (%p865_p2), [#allocation3], 8192  }
  0x40   : > { %710 = vsyncadd (%p865_p2), [#allocation3], 4294959104 }
  0x41   : > { %712 = dma.done.wait (%p865_p2), [#allocation5], 64  }
  0x42   : > { %714 = vsyncadd (%p865_p2), [#allocation5], 4294967232  ;;  %v723_v0 = vmov 0.0   ;;  %v207_v1 = vld [vmem:[#allocation2 + $0x8] sm:$0xff]  ;;  %v209_v3 = vld [vmem:[#allocation2 + $0x18] sm:$0xff]  ;;  %s833_s16 = sshll.u32 %s534_s13, 1 }
  0x43   : > { %356 = vmatprep.mubr.f32.mxu0 %v723_v0  ;;  %433 = vmatprep.mubr.f32.mxu1 %v723_v0  ;;  %v211_v2 = vld [vmem:[#allocation2 + $0x28] sm:$0xff]  ;;  %v213_v5 = vld [vmem:[#allocation2 + $0x38] sm:$0xff]  ;;  %v206_v6 = vld [vmem:[#allocation2] sm:$0xff]  ;;  %p192_p5 = scmp.lt.s32.totalorder %s833_s16, 3 }
  0x44   : > { %v551_v4 = vpack.c.bf16 %v211_v2, %v207_v1  ;;  %v210_v7 = vld [vmem:[#allocation2 + $0x20] sm:$0xff]  ;;  %v583_v8 = vpack.c.bf16 %v213_v5, %v209_v3  ;;  %v208_v10 = vld [vmem:[#allocation2 + $0x10] sm:$0xff]  ;;  %v215_v12 = vld [vmem:[#allocation2 + $0x48] sm:$0xff] }
  0x45   : > { %v553_v9 = vpack.c.bf16 %v210_v7, %v206_v6  ;;  %v212_v11 = vld [vmem:[#allocation2 + $0x30] sm:$0xff]  ;;  %v219_v14 = vld [vmem:[#allocation2 + $0x68] sm:$0xff]  ;;  %v217_v15 = vld [vmem:[#allocation2 + $0x58] sm:$0xff]  ;;  %s867_s16 = smov (!%p192_p5, %s833_s16), 3 }
  0x46   : > { %552 = vmatprep.subr.bf16.mxu0 %v551_v4  ;;  %v585_v13 = vpack.c.bf16 %v212_v11, %v208_v10  ;;  %v221_v16 = vld [vmem:[#allocation2 + $0x78] sm:$0xff]  ;;  %584 = vmatprep.subr.bf16.mxu1 %v583_v8  ;;  %v555_v17 = vpack.c.bf16 %v219_v14, %v215_v12  ;;  %v214_v19 = vld [vmem:[#allocation2 + $0x40] sm:$0xff]  ;;  %v216_v21 = vld [vmem:[#allocation2 + $0x50] sm:$0xff]  ;;  %s544_s13 = sshll.u32 %s867_s16, 3  ;;  %s550_s22 = sshll.u32 %s867_s16, 5 }
  0x47   : > { %554 = vmatpush1.bf16.msra.mxu0 %v553_v9  ;;  %v587_v18 = vpack.c.bf16 %v221_v16, %v217_v15  ;;  %v218_v20 = vld [vmem:[#allocation2 + $0x60] sm:$0xff]  ;;  %v220_v23 = vld [vmem:[#allocation2 + $0x70] sm:$0xff]  ;;  %v223_v24 = vld [vmem:[#allocation2 + $0x88] sm:$0xff]  ;;  %s195_s20 = scalar_lea.vmem %s854_s0, %s544_s13  ;;  %s202_s25 = scalar_lea.vmem %s857_s3, %s550_s22 }
  0x48   : > { %586 = vmatpush1.bf16.msra.mxu1 %v585_v13  ;;  %v557_v22 = vpack.c.bf16 %v218_v20, %v214_v19  ;;  %v227_v25 = vld [vmem:[#allocation2 + $0xa8] sm:$0xff]  ;;  %556 = vmatprep.subr.bf16.mxu0 %v555_v17  ;;  %v589_v26 = vpack.c.bf16 %v220_v23, %v216_v21  ;;  %v225_v28 = vld [vmem:[#allocation2 + $0x98] sm:$0xff]  ;;  %v222_v30 = vld [vmem:[#allocation2 + $0x80] sm:$0xff] }
  0x49   : > { %588 = vmatprep.subr.bf16.mxu1 %v587_v18  ;;  %v559_v27 = vpack.c.bf16 %v227_v25, %v223_v24  ;;  %v229_v29 = vld [vmem:[#allocation2 + $0xb8] sm:$0xff]  ;;  %v226_v32 = vld [vmem:[#allocation2 + $0xa0] sm:$0xff]  ;;  %v224_v33 = vld [vmem:[#allocation2 + $0x90] sm:$0xff] }
  0x4a   : > { %v591_v31 = vpack.c.bf16 %v229_v29, %v225_v28  ;;  %v228_v34 = vld [vmem:[#allocation2 + $0xb0] sm:$0xff]  ;;  %v561_v35 = vpack.c.bf16 %v226_v32, %v222_v30  ;;  %v231_v36 = vld [vmem:[#allocation2 + $0xc8] sm:$0xff]  ;;  %v233_v38 = vld [vmem:[#allocation2 + $0xd8] sm:$0xff] }
  0x4b   : > { %558 = vmatpush1.bf16.msra.mxu0 %v557_v22  ;;  %v235_v37 = vld [vmem:[#allocation2 + $0xe8] sm:$0xff]  ;;  %v593_v39 = vpack.c.bf16 %v228_v34, %v224_v33  ;;  %v237_v41 = vld [vmem:[#allocation2 + $0xf8] sm:$0xff]  ;;  %v230_v42 = vld [vmem:[#allocation2 + $0xc0] sm:$0xff] }
  0x4c   : > { %590 = vmatpush1.bf16.msra.mxu1 %v589_v26  ;;  %560 = vmatprep.subr.bf16.mxu0 %v559_v27  ;;  %v563_v40 = vpack.c.bf16 %v235_v37, %v231_v36  ;;  %v234_v43 = vld [vmem:[#allocation2 + $0xe0] sm:$0xff]  ;;  %v595_v44 = vpack.c.bf16 %v237_v41, %v233_v38  ;;  %v232_v45 = vld [vmem:[#allocation2 + $0xd0] sm:$0xff]  ;;  %v239_v47 = vld [vmem:[#allocation2 + $0x108] sm:$0xff]  ;;  %v272_v36 = vlaneseq }
  0x4d   : > { %592 = vmatprep.subr.bf16.mxu1 %v591_v31  ;;  %v236_v46 = vld [vmem:[#allocation2 + $0xf0] sm:$0xff]  ;;  %v243_v48 = vld [vmem:[#allocation2 + $0x128] sm:$0xff]  ;;  %v241_v49 = vld [vmem:[#allocation2 + $0x118] sm:$0xff]  ;;  %v565_v51 = vpack.c.bf16 %v234_v43, %v230_v42 }
  0x4e   : > { %v245_v50 = vld [vmem:[#allocation2 + $0x138] sm:$0xff]  ;;  %v597_v52 = vpack.c.bf16 %v236_v46, %v232_v45  ;;  %v567_v53 = vpack.c.bf16 %v243_v48, %v239_v47  ;;  %v238_v54 = vld [vmem:[#allocation2 + $0x100] sm:$0xff]  ;;  %v240_v56 = vld [vmem:[#allocation2 + $0x110] sm:$0xff]  ;;  %v273_v37 = vshrl.u32 %v272_v36, 7 }
  0x4f   : > { %562 = vmatpush1.bf16.msra.mxu0 %v561_v35  ;;  %v242_v55 = vld [vmem:[#allocation2 + $0x120] sm:$0xff]  ;;  %v599_v57 = vpack.c.bf16 %v245_v50, %v241_v49  ;;  %v244_v58 = vld [vmem:[#allocation2 + $0x130] sm:$0xff]  ;;  %v247_v59 = vld [vmem:[#allocation2 + $0x148] sm:$0xff] }
  0x50   : > { %594 = vmatpush1.bf16.msra.mxu1 %v593_v39  ;;  %564 = vmatprep.subr.bf16.mxu0 %v563_v40  ;;  %v251_v60 = vld [vmem:[#allocation2 + $0x168] sm:$0xff]  ;;  %v249_v61 = vld [vmem:[#allocation2 + $0x158] sm:$0xff]  ;;  %v569_v63 = vpack.c.bf16 %v242_v55, %v238_v54  ;;  %v601_v1 = vpack.c.bf16 %v244_v58, %v240_v56  ;;  %v246_v3 = vld [vmem:[#allocation2 + $0x140] sm:$0xff]  ;;  %v274_v38 = vsub.s32 0, %v273_v37  ;;  %v282_v40 = vsub.s32 2, %v273_v37 }
  0x51   : > { %596 = vmatprep.subr.bf16.mxu1 %v595_v44  ;;  %v253_v62 = vld [vmem:[#allocation2 + $0x178] sm:$0xff]  ;;  %v571_v2 = vpack.c.bf16 %v251_v60, %v247_v59  ;;  %v250_v4 = vld [vmem:[#allocation2 + $0x160] sm:$0xff]  ;;  %v248_v5 = vld [vmem:[#allocation2 + $0x150] sm:$0xff]  ;;  %v278_v41 = vsub.s32 1, %v273_v37  ;;  %v286_v42 = vsub.s32 3, %v273_v37 }
  0x52   : > { %v603_v6 = vpack.c.bf16 %v253_v62, %v249_v61  ;;  %v252_v7 = vld [vmem:[#allocation2 + $0x170] sm:$0xff]  ;;  %v255_v8 = vld [vmem:[#allocation2 + $0x188] sm:$0xff]  ;;  %v257_v10 = vld [vmem:[#allocation2 + $0x198] sm:$0xff]  ;;  %v573_v12 = vpack.c.bf16 %v250_v4, %v246_v3 }
  0x53   : > { %566 = vmatpush1.bf16.msra.mxu0 %v565_v51  ;;  %v259_v9 = vld [vmem:[#allocation2 + $0x1a8] sm:$0xff]  ;;  %v261_v11 = vld [vmem:[#allocation2 + $0x1b8] sm:$0xff]  ;;  %v605_v13 = vpack.c.bf16 %v252_v7, %v248_v5  ;;  %v254_v15 = vld [vmem:[#allocation2 + $0x180] sm:$0xff] }
  0x54   : > { %598 = vmatpush1.bf16.msra.mxu1 %v597_v52  ;;  %568 = vmatprep.subr.bf16.mxu0 %v567_v53  ;;  %v575_v14 = vpack.c.bf16 %v259_v9, %v255_v8  ;;  %v258_v16 = vld [vmem:[#allocation2 + $0x1a0] sm:$0xff]  ;;  %v256_v17 = vld [vmem:[#allocation2 + $0x190] sm:$0xff]  ;;  %v607_v18 = vpack.c.bf16 %v261_v11, %v257_v10  ;;  %v263_v20 = vld [vmem:[#allocation2 + $0x1c8] sm:$0xff] }
  0x55   : > { %600 = vmatprep.subr.bf16.mxu1 %v599_v57  ;;  %v260_v19 = vld [vmem:[#allocation2 + $0x1b0] sm:$0xff]  ;;  %v267_v21 = vld [vmem:[#allocation2 + $0x1e8] sm:$0xff]  ;;  %v265_v22 = vld [vmem:[#allocation2 + $0x1d8] sm:$0xff]  ;;  %v577_v24 = vpack.c.bf16 %v258_v16, %v254_v15 }
  0x56   : > { %v269_v23 = vld [vmem:[#allocation2 + $0x1f8] sm:$0xff]  ;;  %v609_v25 = vpack.c.bf16 %v260_v19, %v256_v17  ;;  %v579_v26 = vpack.c.bf16 %v267_v21, %v263_v20  ;;  %v262_v27 = vld [vmem:[#allocation2 + $0x1c0] sm:$0xff]  ;;  %v264_v30 = vld [vmem:[#allocation2 + $0x1d0] sm:$0xff] }
  0x57   : > { %570 = vmatpush1.bf16.msra.mxu0 %v569_v63  ;;  %v266_v28 = vld [vmem:[#allocation2 + $0x1e0] sm:$0xff]  ;;  %v611_v29 = vpack.c.bf16 %v269_v23, %v265_v22  ;;  %v268_v31 = vld [vmem:[#allocation2 + $0x1f0] sm:$0xff]  ;;  %v205_v35 = vld [vmem:[%s195_s20 + $0x8] sm:$0xff] }
  0x58   : > { %602 = vmatpush1.bf16.msra.mxu1 %v601_v1  ;;  %572 = vmatprep.subr.bf16.mxu0 %v571_v2  ;;  %v581_v32 = vpack.c.bf16 %v266_v28, %v262_v27  ;;  %v613_v33 = vpack.c.bf16 %v268_v31, %v264_v30  ;;  %v204_v34 = vld [vmem:[%s195_s20] sm:$0xff] }
  0x59   : > { %604 = vmatprep.subr.bf16.mxu1 %v603_v6  ;;  %v270_v39 = vld [vmem:[#allocation4] sm:$0xf] }
  0x5a   : > { %v275_v43 = vrot.slane %v270_v39, %v274_v38  ;;  %v283_v44 = vrot.slane %v270_v39, %v282_v40  ;;  %v279_v45 = vrot.slane %v270_v39, %v278_v41  ;;  %v287_v46 = vrot.slane %v270_v39, %v286_v42 }
  0x5b   : > { %574 = vmatpush1.bf16.msra.mxu0 %v573_v12 }
  0x5c   : > { %606 = vmatpush1.bf16.msra.mxu1 %v605_v13  ;;  %576 = vmatprep.subr.bf16.mxu0 %v575_v14 }
  0x5d   : > { %608 = vmatprep.subr.bf16.mxu1 %v607_v18 }
  0x5f   : > { %578 = vmatpush1.bf16.msra.mxu0 %v577_v24 }
  0x60   : > { %610 = vmatpush1.bf16.msra.mxu1 %v609_v25  ;;  %580 = vmatprep.subr.bf16.mxu0 %v579_v26 }
  0x61   : > { %612 = vmatprep.subr.bf16.mxu1 %v611_v29 }
  0x63   : > { %582 = vmatpush1.bf16.msra.mxu0 %v581_v32 }
  0x64   : > { %614 = vmatpush1.bf16.msra.mxu1 %v613_v33 }
  0x66   : > { %357 = vmatmul.mubr.f32.vlgmr.msra.gmra.mrb[0].mxu0 %v204_v34 }
  0x67   : > { %434 = vmatmul.mubr.f32.vlgmr.msra.gmra.mrb[0].mxu1 %v204_v34  ;;  %362 = vmatprep.mubr.f32.mxu0 %v723_v0 }
  0x68   : > { %439 = vmatprep.mubr.f32.mxu1 %v723_v0 }
  0x6a   : > { %363 = vmatmul.mubr.f32.gmra.mrb[2].mxu0 %v205_v35 }
  0x6b   : > { %440 = vmatmul.mubr.f32.gmra.mrb[2].mxu1 %v205_v35 }
 0x139   : > { %v358_v47 = vpop.f32.mrb[0].mxu0 }
 0x13a   : > { %v359_v0 = vadd.f32 %v358_v47, %v275_v43  ;;  %v435_v48 = vpop.f32.mrb[0].mxu1  ;;  %v360_v49 = vpop.f32.mrb[1].mxu0 }
 0x13b   : > { %v436_v50 = vadd.f32 %v435_v48, %v283_v44  ;;  %v361_v51 = vadd.f32 %v360_v49, %v279_v45  ;;  %v437_v52 = vpop.f32.mrb[1].mxu1 }
 0x13c   : > { %446 = vst [vmem:[%s202_s25] sm:$0xff] %v359_v0  ;;  %v438_v53 = vadd.f32 %v437_v52, %v287_v46 }
 0x13d   : > { %448 = vst [vmem:[%s202_s25 + $0x10] sm:$0xff] %v436_v50  ;;  %447 = vst [vmem:[%s202_s25 + $0x8] sm:$0xff] %v361_v51  ;;  %v364_v54 = vpop.f32.mrb[2].mxu0 }
 0x13e   : > { %449 = vst [vmem:[%s202_s25 + $0x18] sm:$0xff] %v438_v53  ;;  %v365_v55 = vadd.f32 %v364_v54, %v275_v43  ;;  %v441_v56 = vpop.f32.mrb[2].mxu1  ;;  %v366_v57 = vpop.f32.mrb[3].mxu0 }
 0x13f   : > { %v442_v58 = vadd.f32 %v441_v56, %v283_v44  ;;  %v367_v59 = vadd.f32 %v366_v57, %v279_v45  ;;  %v443_v60 = vpop.f32.mrb[3].mxu1 }
 0x140   : > { %450 = vst [vmem:[%s202_s25 + $0x20] sm:$0xff] %v365_v55  ;;  %v444_v61 = vadd.f32 %v443_v60, %v287_v46 }
 0x141   : > { %452 = vst [vmem:[%s202_s25 + $0x30] sm:$0xff] %v442_v58  ;;  %451 = vst [vmem:[%s202_s25 + $0x28] sm:$0xff] %v367_v59 }
 0x142   : > { %453 = vst [vmem:[%s202_s25 + $0x38] sm:$0xff] %v444_v61 }
 0x143 PF: > { %s15_s12 = sadd.s32 1, %s717_s12  }
 0x144   : > { %p12_p7 = scmp.ge.s32.totalorder %s15_s12, 4  }
 0x146   :  { %14 = sbr.rel (!%p12_p7) target bundleno = 2 (0x2), region = 71 }
 0x14d   :  { %478 = vsyncpa [#allocation3], 1 }
 0x14e   :  { %480 = vsyncpa [#allocation3 + $0x1], 1 }
 0x14f   :  { %481 = vsyncpa [#allocation5], 1 }

// kernel: forward.11
= control target key start
LH: loop header
LB: loop body
LE: loop exit
PB: predicated region body
PF: predicated region fallthrough
CT: control target
= control target key end

     0   :  { %s6191_s9 = smov 0   ;;  %s7121_s0 = inlined_call_operand.vmem [shape: f32[64,2,128], index: 0, kind: input, shape index: {}]   ;;  %s7122_s1 = inlined_call_operand.vmem [shape: f32[64,128,128], index: 1, kind: input, shape index: {}]   ;;  %s7123_s2 = inlined_call_operand.vmem [shape: f32[64,2,128], index: 2, kind: output, shape index: {}]  }
   0x1 LB: > { %s3149_s10 = sadd.s32 4294967295, %s6171_s9   ;;  %p3153_p0 = scmp.ge.s32.totalorder %s6171_s9, 1  ;;  %s6171_s9 = sphi %s6191_s9, %s12_s9  }
   0x2   : > { %p125_p1 = scmp.lt.s32.totalorder %s6171_s9, 3 }
   0x4   : > { %p126_p2 = pnand %p3153_p0, %p125_p1 }
   0x5   : > { %s3154_s11 = sshll.u32 (!%p126_p2), %s3149_s10, 5  ;;  %v6173_v0 = vmov (!%p126_p2), 0.0|0.0   ;;  %vm6174_vm0 = vmmov (!%p126_p2), 0   ;;  %v6175_v1 = vmov (!%p126_p2), 0.0  }
   0x6   : > { %129 = sbr.rel (%p126_p2) target bundleno = 744 (0x2e8), region = 28  ;;  %5386 = vmatprep.subr.bf16.mxu0 (!%p126_p2), %v6173_v0  ;;  %5410 = vmatprep.subr.bf16.mxu1 (!%p126_p2), %v6173_v0  ;;  %p154_p3 = scmp.lt.s32.totalorder (!%p126_p2), %s3154_s11, 63 }
   0x7   : > { %4298 = vmatprep.mubr.msk.f32.mxu0 (!%p126_p2), %vm6174_vm0, %v6175_v1  ;;  %4333 = vmatprep.mubr.msk.f32.mxu1 (!%p126_p2), %vm6174_vm0, %v6175_v1 }
   0xd   : > { %s7125_s11 = smov (!%p154_p3, %s3154_s11), 63 }
   0xe   : > { %s3721_s12 = sshll.u32 %s7125_s11, 7  ;;  %s3155_s16 = sshll.u32 %s7125_s11, 1 }
   0xf   : > { %s6211_s15 = scalar_lea.vmem %s7122_s1, %s3721_s12  ;;  %s6264_s19 = scalar_lea.vmem %s7121_s0, %s3155_s16 }
  0x10   : > { %v173_v2 = vld [vmem:[%s6211_s15] sm:$0xff]  ;;  %v174_v3 = vld [vmem:[%s6211_s15 + $0x8] sm:$0xff]  ;;  %v175_v7 = vld [vmem:[%s6211_s15 + $0x10] sm:$0xff]  ;;  %s6636_s22 = scalar_lea.vmem %s7123_s2, %s3155_s16 }
  0x11   : > { %v3162_v4 = vld [vmem:[%s6211_s15 + $0x80] sm:$0xff]  ;;  %v5387_v5 = vpack.c.bf16 %v174_v3, %v173_v2  ;;  %v3163_v6 = vld [vmem:[%s6211_s15 + $0x88] sm:$0xff]  ;;  %v176_v8 = vld [vmem:[%s6211_s15 + $0x18] sm:$0xff] }
  0x12   : > { %v5411_v9 = vpack.c.bf16 %v3163_v6, %v3162_v4  ;;  %v3164_v10 = vld [vmem:[%s6211_s15 + $0x90] sm:$0xff]  ;;  %v3165_v11 = vld [vmem:[%s6211_s15 + $0x98] sm:$0xff]  ;;  %v5390_v12 = vpack.c.bf16 %v176_v8, %v175_v7  ;;  %v177_v14 = vld [vmem:[%s6211_s15 + $0x20] sm:$0xff] }
  0x13   : > { %5388 = vmatpush3.bf16.msra.mxu0 %v5387_v5  ;;  %v5414_v13 = vpack.c.bf16 %v3165_v11, %v3164_v10  ;;  %v178_v15 = vld [vmem:[%s6211_s15 + $0x28] sm:$0xff]  ;;  %v3166_v16 = vld [vmem:[%s6211_s15 + $0xa0] sm:$0xff]  ;;  %v179_v20 = vld [vmem:[%s6211_s15 + $0x30] sm:$0xff] }
  0x14   : > { %5412 = vmatpush3.bf16.msra.mxu1 %v5411_v9  ;;  %5389 = vmatprep.subr.bf16.mxu0 %v6173_v0  ;;  %v3167_v17 = vld [vmem:[%s6211_s15 + $0xa8] sm:$0xff]  ;;  %v5393_v18 = vpack.c.bf16 %v178_v15, %v177_v14  ;;  %v180_v21 = vld [vmem:[%s6211_s15 + $0x38] sm:$0xff]  ;;  %v3168_v22 = vld [vmem:[%s6211_s15 + $0xb0] sm:$0xff] }
  0x15   : > { %5413 = vmatprep.subr.bf16.mxu1 %v6173_v0  ;;  %v5417_v19 = vpack.c.bf16 %v3167_v17, %v3166_v16  ;;  %v3169_v23 = vld [vmem:[%s6211_s15 + $0xb8] sm:$0xff]  ;;  %v5396_v24 = vpack.c.bf16 %v180_v21, %v179_v20  ;;  %v181_v26 = vld [vmem:[%s6211_s15 + $0x40] sm:$0xff]  ;;  %v182_v27 = vld [vmem:[%s6211_s15 + $0x48] sm:$0xff] }
  0x16   : > { %v5420_v25 = vpack.c.bf16 %v3169_v23, %v3168_v22  ;;  %v3170_v28 = vld [vmem:[%s6211_s15 + $0xc0] sm:$0xff]  ;;  %v3171_v29 = vld [vmem:[%s6211_s15 + $0xc8] sm:$0xff]  ;;  %v5399_v30 = vpack.c.bf16 %v182_v27, %v181_v26  ;;  %v183_v32 = vld [vmem:[%s6211_s15 + $0x50] sm:$0xff] }
  0x17   : > { %5391 = vmatpush3.bf16.msra.mxu0 %v5390_v12  ;;  %v5423_v31 = vpack.c.bf16 %v3171_v29, %v3170_v28  ;;  %v184_v33 = vld [vmem:[%s6211_s15 + $0x58] sm:$0xff]  ;;  %v3172_v34 = vld [vmem:[%s6211_s15 + $0xd0] sm:$0xff]  ;;  %v185_v38 = vld [vmem:[%s6211_s15 + $0x60] sm:$0xff] }
  0x18   : > { %5415 = vmatpush3.bf16.msra.mxu1 %v5414_v13  ;;  %5392 = vmatprep.subr.bf16.mxu0 %v6173_v0  ;;  %v3173_v35 = vld [vmem:[%s6211_s15 + $0xd8] sm:$0xff]  ;;  %v5402_v36 = vpack.c.bf16 %v184_v33, %v183_v32  ;;  %v186_v39 = vld [vmem:[%s6211_s15 + $0x68] sm:$0xff]  ;;  %v3174_v40 = vld [vmem:[%s6211_s15 + $0xe0] sm:$0xff] }
  0x19   : > { %5416 = vmatprep.subr.bf16.mxu1 %v6173_v0  ;;  %v5426_v37 = vpack.c.bf16 %v3173_v35, %v3172_v34  ;;  %v3175_v41 = vld [vmem:[%s6211_s15 + $0xe8] sm:$0xff]  ;;  %v5405_v42 = vpack.c.bf16 %v186_v39, %v185_v38  ;;  %v187_v44 = vld [vmem:[%s6211_s15 + $0x70] sm:$0xff]  ;;  %v188_v45 = vld [vmem:[%s6211_s15 + $0x78] sm:$0xff] }
  0x1a   : > { %v5429_v43 = vpack.c.bf16 %v3175_v41, %v3174_v40  ;;  %v3176_v46 = vld [vmem:[%s6211_s15 + $0xf0] sm:$0xff]  ;;  %v3177_v47 = vld [vmem:[%s6211_s15 + $0xf8] sm:$0xff]  ;;  %v5408_v48 = vpack.c.bf16 %v188_v45, %v187_v44  ;;  %v3180_v50 = vld [vmem:[%s6211_s15 + $0x100] sm:$0xff] }
  0x1b   : > { %5394 = vmatpush3.bf16.msra.mxu0 %v5393_v18  ;;  %v5432_v49 = vpack.c.bf16 %v3177_v47, %v3176_v46  ;;  %v3181_v51 = vld [vmem:[%s6211_s15 + $0x108] sm:$0xff]  ;;  %v3198_v52 = vld [vmem:[%s6211_s15 + $0x180] sm:$0xff]  ;;  %v3182_v58 = vld [vmem:[%s6211_s15 + $0x110] sm:$0xff] }
  0x1c   : > { %5418 = vmatpush3.bf16.msra.mxu1 %v5417_v19  ;;  %5395 = vmatprep.subr.bf16.mxu0 %v6173_v0  ;;  %v3199_v53 = vld [vmem:[%s6211_s15 + $0x188] sm:$0xff]  ;;  %v172_v54 = vld [vmem:[%s6264_s19] sm:$0x3]  ;;  %v5435_v55 = vpack.c.bf16 %v3181_v51, %v3180_v50  ;;  %v3161_v56 = vld [vmem:[%s6264_s19 + $0x2] sm:$0x3] }
  0x1d   : > { %5419 = vmatprep.subr.bf16.mxu1 %v6173_v0  ;;  %v5459_v57 = vpack.c.bf16 %v3199_v53, %v3198_v52  ;;  %v3183_v59 = vld [vmem:[%s6211_s15 + $0x118] sm:$0xff]  ;;  %v3200_v60 = vld [vmem:[%s6211_s15 + $0x190] sm:$0xff]  ;;  %v3184_v2 = vld [vmem:[%s6211_s15 + $0x120] sm:$0xff] }
  0x1e   : > { %v3201_v61 = vld [vmem:[%s6211_s15 + $0x198] sm:$0xff]  ;;  %v5438_v62 = vpack.c.bf16 %v3183_v59, %v3182_v58  ;;  %v3185_v3 = vld [vmem:[%s6211_s15 + $0x128] sm:$0xff]  ;;  %v3202_v4 = vld [vmem:[%s6211_s15 + $0x1a0] sm:$0xff] }
  0x1f   : > { %5397 = vmatpush3.bf16.msra.mxu0 %v5396_v24  ;;  %v5462_v63 = vpack.c.bf16 %v3201_v61, %v3200_v60  ;;  %v3203_v5 = vld [vmem:[%s6211_s15 + $0x1a8] sm:$0xff]  ;;  %v5441_v6 = vpack.c.bf16 %v3185_v3, %v3184_v2  ;;  %v3186_v8 = vld [vmem:[%s6211_s15 + $0x130] sm:$0xff]  ;;  %v3187_v9 = vld [vmem:[%s6211_s15 + $0x138] sm:$0xff] }
  0x20   : > { %5421 = vmatpush3.bf16.msra.mxu1 %v5420_v25  ;;  %5398 = vmatprep.subr.bf16.mxu0 %v6173_v0  ;;  %v5465_v7 = vpack.c.bf16 %v3203_v5, %v3202_v4  ;;  %v3204_v10 = vld [vmem:[%s6211_s15 + $0x1b0] sm:$0xff]  ;;  %v3205_v11 = vld [vmem:[%s6211_s15 + $0x1b8] sm:$0xff]  ;;  %v5444_v12 = vpack.c.bf16 %v3187_v9, %v3186_v8  ;;  %v3188_v14 = vld [vmem:[%s6211_s15 + $0x140] sm:$0xff] }
  0x21   : > { %5422 = vmatprep.subr.bf16.mxu1 %v6173_v0  ;;  %v5468_v13 = vpack.c.bf16 %v3205_v11, %v3204_v10  ;;  %v3189_v15 = vld [vmem:[%s6211_s15 + $0x148] sm:$0xff]  ;;  %v3206_v16 = vld [vmem:[%s6211_s15 + $0x1c0] sm:$0xff]  ;;  %v3190_v20 = vld [vmem:[%s6211_s15 + $0x150] sm:$0xff] }
  0x22   : > { %v3207_v17 = vld [vmem:[%s6211_s15 + $0x1c8] sm:$0xff]  ;;  %v5447_v18 = vpack.c.bf16 %v3189_v15, %v3188_v14  ;;  %v3191_v21 = vld [vmem:[%s6211_s15 + $0x158] sm:$0xff]  ;;  %v3208_v22 = vld [vmem:[%s6211_s15 + $0x1d0] sm:$0xff] }
  0x23   : > { %5400 = vmatpush3.bf16.msra.mxu0 %v5399_v30  ;;  %v5471_v19 = vpack.c.bf16 %v3207_v17, %v3206_v16  ;;  %v3209_v23 = vld [vmem:[%s6211_s15 + $0x1d8] sm:$0xff]  ;;  %v5450_v24 = vpack.c.bf16 %v3191_v21, %v3190_v20  ;;  %v3192_v26 = vld [vmem:[%s6211_s15 + $0x160] sm:$0xff]  ;;  %v3193_v27 = vld [vmem:[%s6211_s15 + $0x168] sm:$0xff] }
  0x24   : > { %5424 = vmatpush3.bf16.msra.mxu1 %v5423_v31  ;;  %5401 = vmatprep.subr.bf16.mxu0 %v6173_v0  ;;  %v5474_v25 = vpack.c.bf16 %v3209_v23, %v3208_v22  ;;  %v3210_v28 = vld [vmem:[%s6211_s15 + $0x1e0] sm:$0xff]  ;;  %v3211_v29 = vld [vmem:[%s6211_s15 + $0x1e8] sm:$0xff]  ;;  %v5453_v30 = vpack.c.bf16 %v3193_v27, %v3192_v26  ;;  %v3194_v32 = vld [vmem:[%s6211_s15 + $0x170] sm:$0xff] }
  0x25   : > { %5425 = vmatprep.subr.bf16.mxu1 %v6173_v0  ;;  %v5477_v31 = vpack.c.bf16 %v3211_v29, %v3210_v28  ;;  %v3195_v33 = vld [vmem:[%s6211_s15 + $0x178] sm:$0xff]  ;;  %v3212_v34 = vld [vmem:[%s6211_s15 + $0x1f0] sm:$0xff]  ;;  %v3216_v38 = vld [vmem:[%s6211_s15 + $0x200] sm:$0xff] }
  0x26   : > { %v3213_v35 = vld [vmem:[%s6211_s15 + $0x1f8] sm:$0xff]  ;;  %v3217_v39 = vld [vmem:[%s6211_s15 + $0x208] sm:$0xff]  ;;  %v3234_v40 = vld [vmem:[%s6211_s15 + $0x280] sm:$0xff] }
  0x27   : > { %5403 = vmatpush3.bf16.msra.mxu0 %v5402_v36  ;;  %v5456_v36 = vpack.c.bf16 %v3195_v33, %v3194_v32  ;;  %v3235_v41 = vld [vmem:[%s6211_s15 + $0x288] sm:$0xff]  ;;  %v3197_v44 = vld [vmem:[%s6264_s19 + $0x6] sm:$0x3]  ;;  %v3218_v46 = vld [vmem:[%s6211_s15 + $0x210] sm:$0xff] }
  0x28   : > { %5427 = vmatpush3.bf16.msra.mxu1 %v5426_v37  ;;  %5404 = vmatprep.subr.bf16.mxu0 %v6173_v0  ;;  %v5480_v37 = vpack.c.bf16 %v3213_v35, %v3212_v34  ;;  %v5507_v45 = vpack.c.bf16 %v3235_v41, %v3234_v40  ;;  %v3219_v47 = vld [vmem:[%s6211_s15 + $0x218] sm:$0xff]  ;;  %v3220_v52 = vld [vmem:[%s6211_s15 + $0x220] sm:$0xff]  ;;  %v3221_v53 = vld [vmem:[%s6211_s15 + $0x228] sm:$0xff] }
  0x29   : > { %5428 = vmatprep.subr.bf16.mxu1 %v6173_v0  ;;  %v5486_v50 = vpack.c.bf16 %v3219_v47, %v3218_v46  ;;  %v3222_v58 = vld [vmem:[%s6211_s15 + $0x230] sm:$0xff]  ;;  %v3223_v59 = vld [vmem:[%s6211_s15 + $0x238] sm:$0xff]  ;;  %v3224_v2 = vld [vmem:[%s6211_s15 + $0x240] sm:$0xff] }
  0x2a   : > { %v3240_v60 = vld [vmem:[%s6211_s15 + $0x2b0] sm:$0xff]  ;;  %v3241_v61 = vld [vmem:[%s6211_s15 + $0x2b8] sm:$0xff]  ;;  %v3225_v3 = vld [vmem:[%s6211_s15 + $0x248] sm:$0xff] }
  0x2b   : > { %5406 = vmatpush3.bf16.msra.mxu0 %v5405_v42  ;;  %v3179_v42 = vld [vmem:[%s6264_s19 + $0x4] sm:$0x3]  ;;  %v3243_v5 = vld [vmem:[%s6211_s15 + $0x2c8] sm:$0xff]  ;;  %v3226_v8 = vld [vmem:[%s6211_s15 + $0x250] sm:$0xff] }
  0x2c   : > { %5430 = vmatpush3.bf16.msra.mxu1 %v5429_v43  ;;  %5407 = vmatprep.subr.bf16.mxu0 %v6173_v0  ;;  %v5483_v43 = vpack.c.bf16 %v3217_v39, %v3216_v38  ;;  %v3242_v4 = vld [vmem:[%s6211_s15 + $0x2c0] sm:$0xff]  ;;  %v3227_v9 = vld [vmem:[%s6211_s15 + $0x258] sm:$0xff]  ;;  %v3244_v10 = vld [vmem:[%s6211_s15 + $0x2d0] sm:$0xff] }
  0x2d   : > { %5431 = vmatprep.subr.bf16.mxu1 %v6173_v0  ;;  %v3245_v11 = vld [vmem:[%s6211_s15 + $0x2d8] sm:$0xff]  ;;  %v3228_v14 = vld [vmem:[%s6211_s15 + $0x260] sm:$0xff]  ;;  %v3229_v15 = vld [vmem:[%s6211_s15 + $0x268] sm:$0xff] }
  0x2e   : > { %v3246_v16 = vld [vmem:[%s6211_s15 + $0x2e0] sm:$0xff]  ;;  %v3247_v17 = vld [vmem:[%s6211_s15 + $0x2e8] sm:$0xff]  ;;  %v3230_v20 = vld [vmem:[%s6211_s15 + $0x270] sm:$0xff] }
  0x2f   : > { %5409 = vmatpush3.bf16.msra.mxu0 %v5408_v48  ;;  %v3236_v48 = vld [vmem:[%s6211_s15 + $0x290] sm:$0xff]  ;;  %v3231_v21 = vld [vmem:[%s6211_s15 + $0x278] sm:$0xff]  ;;  %v3252_v26 = vld [vmem:[%s6211_s15 + $0x300] sm:$0xff] }
  0x30   : > { %5433 = vmatpush3.bf16.msra.mxu1 %v5432_v49  ;;  %5434 = vmatprep.subr.bf16.mxu0 %v6173_v0  ;;  %v3237_v49 = vld [vmem:[%s6211_s15 + $0x298] sm:$0xff]  ;;  %v3248_v22 = vld [vmem:[%s6211_s15 + $0x2f0] sm:$0xff]  ;;  %v3253_v27 = vld [vmem:[%s6211_s15 + $0x308] sm:$0xff] }
  0x31   : > { %5458 = vmatprep.subr.bf16.mxu1 %v6173_v0  ;;  %v5510_v51 = vpack.c.bf16 %v3237_v49, %v3236_v48  ;;  %v3249_v23 = vld [vmem:[%s6211_s15 + $0x2f8] sm:$0xff]  ;;  %v3270_v28 = vld [vmem:[%s6211_s15 + $0x380] sm:$0xff]  ;;  %v3271_v29 = vld [vmem:[%s6211_s15 + $0x388] sm:$0xff] }
  0x32   : > { %4299 = vmatmul.mubr.f32.vlgmr.msra.gmra.mrb[0].mxu0 %v172_v54  ;;  %v3238_v54 = vld [vmem:[%s6211_s15 + $0x2a0] sm:$0xff]  ;;  %v3233_v32 = vld [vmem:[%s6264_s19 + $0xa] sm:$0x3]  ;;  %v5555_v33 = vpack.c.bf16 %v3271_v29, %v3270_v28  ;;  %v3254_v34 = vld [vmem:[%s6211_s15 + $0x310] sm:$0xff] }
  0x33   : > { %4334 = vmatmul.mubr.f32.vlgmr.msra.gmra.mrb[0].mxu1 %v3161_v56  ;;  %5436 = vmatpush3.bf16.msra.mxu0 %v5435_v55  ;;  %v3239_v55 = vld [vmem:[%s6211_s15 + $0x2a8] sm:$0xff]  ;;  %v5489_v56 = vpack.c.bf16 %v3221_v53, %v3220_v52  ;;  %v3255_v35 = vld [vmem:[%s6211_s15 + $0x318] sm:$0xff]  ;;  %v3256_v40 = vld [vmem:[%s6211_s15 + $0x320] sm:$0xff] }
  0x34   : > { %5460 = vmatpush3.bf16.msra.mxu1 %v5459_v57  ;;  %5437 = vmatprep.subr.bf16.mxu0 %v6173_v0  ;;  %v5513_v57 = vpack.c.bf16 %v3239_v55, %v3238_v54  ;;  %v5534_v38 = vpack.c.bf16 %v3255_v35, %v3254_v34  ;;  %v3257_v41 = vld [vmem:[%s6211_s15 + $0x328] sm:$0xff]  ;;  %v3258_v46 = vld [vmem:[%s6211_s15 + $0x330] sm:$0xff]  ;;  %v3259_v47 = vld [vmem:[%s6211_s15 + $0x338] sm:$0xff] }
  0x35   : > { %5461 = vmatprep.subr.bf16.mxu1 %v6173_v0  ;;  %4368 = vmatprep.mubr.msk.f32.mxu0 %vm6174_vm0, %v6175_v1  ;;  %v3276_v48 = vld [vmem:[%s6211_s15 + $0x3b0] sm:$0xff]  ;;  %v3277_v49 = vld [vmem:[%s6211_s15 + $0x3b8] sm:$0xff]  ;;  %v3260_v52 = vld [vmem:[%s6211_s15 + $0x340] sm:$0xff] }
  0x36   : > { %4403 = vmatprep.mubr.msk.f32.mxu1 %vm6174_vm0, %v6175_v1  ;;  %v3261_v53 = vld [vmem:[%s6211_s15 + $0x348] sm:$0xff]  ;;  %v3278_v54 = vld [vmem:[%s6211_s15 + $0x3c0] sm:$0xff]  ;;  %v3294_v34 = vld [vmem:[%s6211_s15 + $0x430] sm:$0xff] }
  0x37   : > { %5439 = vmatpush3.bf16.msra.mxu0 %v5438_v62  ;;  %v5492_v62 = vpack.c.bf16 %v3223_v59, %v3222_v58  ;;  %v3279_v55 = vld [vmem:[%s6211_s15 + $0x3c8] sm:$0xff]  ;;  %v3262_v58 = vld [vmem:[%s6211_s15 + $0x350] sm:$0xff]  ;;  %v3263_v59 = vld [vmem:[%s6211_s15 + $0x358] sm:$0xff] }
  0x38   : > { %5463 = vmatpush3.bf16.msra.mxu1 %v5462_v63  ;;  %5440 = vmatprep.subr.bf16.mxu0 %v6173_v0  ;;  %v5516_v63 = vpack.c.bf16 %v3241_v61, %v3240_v60  ;;  %v3280_v60 = vld [vmem:[%s6211_s15 + $0x3d0] sm:$0xff]  ;;  %v3281_v61 = vld [vmem:[%s6211_s15 + $0x3d8] sm:$0xff]  ;;  %v3292_v28 = vld [vmem:[%s6211_s15 + $0x420] sm:$0xff] }
  0x39   : > { %5464 = vmatprep.subr.bf16.mxu1 %v6173_v0  ;;  %v3293_v29 = vld [vmem:[%s6211_s15 + $0x428] sm:$0xff]  ;;  %v3295_v35 = vld [vmem:[%s6211_s15 + $0x438] sm:$0xff] }
  0x3b   : > { %5442 = vmatpush3.bf16.msra.mxu0 %v5441_v6  ;;  %v5495_v6 = vpack.c.bf16 %v3225_v3, %v3224_v2  ;;  %v3264_v2 = vld [vmem:[%s6211_s15 + $0x360] sm:$0xff]  ;;  %v3265_v3 = vld [vmem:[%s6211_s15 + $0x368] sm:$0xff] }
  0x3c   : > { %5466 = vmatpush3.bf16.msra.mxu1 %v5465_v7  ;;  %5443 = vmatprep.subr.bf16.mxu0 %v6173_v0  ;;  %v5519_v7 = vpack.c.bf16 %v3243_v5, %v3242_v4  ;;  %v3282_v4 = vld [vmem:[%s6211_s15 + $0x3e0] sm:$0xff]  ;;  %v3283_v5 = vld [vmem:[%s6211_s15 + $0x3e8] sm:$0xff] }
  0x3d   : > { %5467 = vmatprep.subr.bf16.mxu1 %v6173_v0 }
  0x3f   : > { %5445 = vmatpush3.bf16.msra.mxu0 %v5444_v12  ;;  %v5498_v12 = vpack.c.bf16 %v3227_v9, %v3226_v8  ;;  %v3266_v8 = vld [vmem:[%s6211_s15 + $0x370] sm:$0xff]  ;;  %v3267_v9 = vld [vmem:[%s6211_s15 + $0x378] sm:$0xff] }
  0x40   : > { %5469 = vmatpush3.bf16.msra.mxu1 %v5468_v13  ;;  %5446 = vmatprep.subr.bf16.mxu0 %v6173_v0  ;;  %v5522_v13 = vpack.c.bf16 %v3245_v11, %v3244_v10  ;;  %v3284_v10 = vld [vmem:[%s6211_s15 + $0x3f0] sm:$0xff]  ;;  %v3285_v11 = vld [vmem:[%s6211_s15 + $0x3f8] sm:$0xff] }
  0x41   : > { %5470 = vmatprep.subr.bf16.mxu1 %v6173_v0 }
  0x43   : > { %5448 = vmatpush3.bf16.msra.mxu0 %v5447_v18  ;;  %v5501_v18 = vpack.c.bf16 %v3229_v15, %v3228_v14  ;;  %v3288_v14 = vld [vmem:[%s6211_s15 + $0x400] sm:$0xff]  ;;  %v3289_v15 = vld [vmem:[%s6211_s15 + $0x408] sm:$0xff] }
  0x44   : > { %5472 = vmatpush3.bf16.msra.mxu1 %v5471_v19  ;;  %5449 = vmatprep.subr.bf16.mxu0 %v6173_v0  ;;  %v5525_v19 = vpack.c.bf16 %v3247_v17, %v3246_v16  ;;  %v3306_v16 = vld [vmem:[%s6211_s15 + $0x480] sm:$0xff]  ;;  %v3307_v17 = vld [vmem:[%s6211_s15 + $0x488] sm:$0xff] }
  0x45   : > { %5473 = vmatprep.subr.bf16.mxu1 %v6173_v0 }
  0x47   : > { %5451 = vmatpush3.bf16.msra.mxu0 %v5450_v24  ;;  %v5504_v24 = vpack.c.bf16 %v3231_v21, %v3230_v20  ;;  %v3269_v20 = vld [vmem:[%s6264_s19 + $0xe] sm:$0x3]  ;;  %v5603_v21 = vpack.c.bf16 %v3307_v17, %v3306_v16  ;;  %v3328_v16 = vld [vmem:[%s6211_s15 + $0x520] sm:$0xff] }
  0x48   : > { %5475 = vmatpush3.bf16.msra.mxu1 %v5474_v25  ;;  %5452 = vmatprep.subr.bf16.mxu0 %v6173_v0  ;;  %v5528_v25 = vpack.c.bf16 %v3249_v23, %v3248_v22  ;;  %v3290_v22 = vld [vmem:[%s6211_s15 + $0x410] sm:$0xff]  ;;  %v3291_v23 = vld [vmem:[%s6211_s15 + $0x418] sm:$0xff]  ;;  %v3329_v17 = vld [vmem:[%s6211_s15 + $0x528] sm:$0xff] }
  0x49   : > { %5476 = vmatprep.subr.bf16.mxu1 %v6173_v0 }
  0x4b   : > { %5454 = vmatpush3.bf16.msra.mxu0 %v5453_v30  ;;  %v3215_v30 = vld [vmem:[%s6264_s19 + $0x8] sm:$0x3] }
  0x4c   : > { %5478 = vmatpush3.bf16.msra.mxu1 %v5477_v31  ;;  %5455 = vmatprep.subr.bf16.mxu0 %v6173_v0  ;;  %v5531_v31 = vpack.c.bf16 %v3253_v27, %v3252_v26  ;;  %v5582_v26 = vpack.c.bf16 %v3291_v23, %v3290_v22  ;;  %v3330_v22 = vld [vmem:[%s6211_s15 + $0x530] sm:$0xff]  ;;  %v3331_v23 = vld [vmem:[%s6211_s15 + $0x538] sm:$0xff] }
  0x4d   : > { %5479 = vmatprep.subr.bf16.mxu1 %v6173_v0 }
  0x4f   : > { %5457 = vmatpush3.bf16.msra.mxu0 %v5456_v36  ;;  %v3272_v36 = vld [vmem:[%s6211_s15 + $0x390] sm:$0xff] }
  0x50   : > { %5481 = vmatpush3.bf16.msra.mxu1 %v5480_v37  ;;  %5482 = vmatprep.subr.bf16.mxu0 %v6173_v0  ;;  %v3273_v37 = vld [vmem:[%s6211_s15 + $0x398] sm:$0xff] }
  0x51   : > { %5506 = vmatprep.subr.bf16.mxu1 %v6173_v0  ;;  %v5558_v39 = vpack.c.bf16 %v3273_v37, %v3272_v36  ;;  %v3312_v36 = vld [vmem:[%s6211_s15 + $0x4b0] sm:$0xff]  ;;  %v3313_v37 = vld [vmem:[%s6211_s15 + $0x4b8] sm:$0xff] }
  0x52   : > { %4369 = vmatmul.mubr.f32.vlgmr.msra.gmra.mrb[2].mxu0 %v3179_v42  ;;  %v3274_v42 = vld [vmem:[%s6211_s15 + $0x3a0] sm:$0xff] }
  0x53   : > { %4404 = vmatmul.mubr.f32.vlgmr.msra.gmra.mrb[2].mxu1 %v3197_v44  ;;  %5484 = vmatpush3.bf16.msra.mxu0 %v5483_v43  ;;  %v3275_v43 = vld [vmem:[%s6211_s15 + $0x3a8] sm:$0xff]  ;;  %v5537_v44 = vpack.c.bf16 %v3257_v41, %v3256_v40  ;;  %v3296_v40 = vld [vmem:[%s6211_s15 + $0x440] sm:$0xff] }
  0x54   : > { %5508 = vmatpush3.bf16.msra.mxu1 %v5507_v45  ;;  %5485 = vmatprep.subr.bf16.mxu0 %v6173_v0  ;;  %v5561_v45 = vpack.c.bf16 %v3275_v43, %v3274_v42  ;;  %v3297_v41 = vld [vmem:[%s6211_s15 + $0x448] sm:$0xff]  ;;  %v3314_v42 = vld [vmem:[%s6211_s15 + $0x4c0] sm:$0xff] }
  0x55   : > { %5509 = vmatprep.subr.bf16.mxu1 %v6173_v0  ;;  %4438 = vmatprep.mubr.msk.f32.mxu0 %vm6174_vm0, %v6175_v1  ;;  %v3315_v43 = vld [vmem:[%s6211_s15 + $0x4c8] sm:$0xff] }
  0x56   : > { %4473 = vmatprep.mubr.msk.f32.mxu1 %vm6174_vm0, %v6175_v1 }
  0x57   : > { %5487 = vmatpush3.bf16.msra.mxu0 %v5486_v50  ;;  %v5540_v50 = vpack.c.bf16 %v3259_v47, %v3258_v46  ;;  %v3298_v46 = vld [vmem:[%s6211_s15 + $0x450] sm:$0xff]  ;;  %v3299_v47 = vld [vmem:[%s6211_s15 + $0x458] sm:$0xff] }
  0x58   : > { %5511 = vmatpush3.bf16.msra.mxu1 %v5510_v51  ;;  %5488 = vmatprep.subr.bf16.mxu0 %v6173_v0  ;;  %v5564_v51 = vpack.c.bf16 %v3277_v49, %v3276_v48  ;;  %v3316_v48 = vld [vmem:[%s6211_s15 + $0x4d0] sm:$0xff]  ;;  %v3317_v49 = vld [vmem:[%s6211_s15 + $0x4d8] sm:$0xff] }
  0x59   : > { %5512 = vmatprep.subr.bf16.mxu1 %v6173_v0 }
  0x5b   : > { %5490 = vmatpush3.bf16.msra.mxu0 %v5489_v56  ;;  %v5543_v56 = vpack.c.bf16 %v3261_v53, %v3260_v52  ;;  %v3300_v52 = vld [vmem:[%s6211_s15 + $0x460] sm:$0xff]  ;;  %v3301_v53 = vld [vmem:[%s6211_s15 + $0x468] sm:$0xff] }
  0x5c   : > { %5514 = vmatpush3.bf16.msra.mxu1 %v5513_v57  ;;  %5491 = vmatprep.subr.bf16.mxu0 %v6173_v0  ;;  %v5567_v57 = vpack.c.bf16 %v3279_v55, %v3278_v54  ;;  %v3318_v54 = vld [vmem:[%s6211_s15 + $0x4e0] sm:$0xff]  ;;  %v3319_v55 = vld [vmem:[%s6211_s15 + $0x4e8] sm:$0xff] }
  0x5d   : > { %5515 = vmatprep.subr.bf16.mxu1 %v6173_v0 }
  0x5f   : > { %5493 = vmatpush3.bf16.msra.mxu0 %v5492_v62  ;;  %v5546_v62 = vpack.c.bf16 %v3263_v59, %v3262_v58  ;;  %v3302_v58 = vld [vmem:[%s6211_s15 + $0x470] sm:$0xff]  ;;  %v3303_v59 = vld [vmem:[%s6211_s15 + $0x478] sm:$0xff] }
  0x60   : > { %5517 = vmatpush3.bf16.msra.mxu1 %v5516_v63  ;;  %5494 = vmatprep.subr.bf16.mxu0 %v6173_v0  ;;  %v5570_v63 = vpack.c.bf16 %v3281_v61, %v3280_v60  ;;  %v3320_v60 = vld [vmem:[%s6211_s15 + $0x4f0] sm:$0xff]  ;;  %v3321_v61 = vld [vmem:[%s6211_s15 + $0x4f8] sm:$0xff] }
  0x61   : > { %5518 = vmatprep.subr.bf16.mxu1 %v6173_v0 }
  0x63   : > { %5496 = vmatpush3.bf16.msra.mxu0 %v5495_v6  ;;  %v5549_v6 = vpack.c.bf16 %v3265_v3, %v3264_v2  ;;  %v3324_v2 = vld [vmem:[%s6211_s15 + $0x500] sm:$0xff]  ;;  %v3325_v3 = vld [vmem:[%s6211_s15 + $0x508] sm:$0xff] }
  0x64   : > { %5520 = vmatpush3.bf16.msra.mxu1 %v5519_v7  ;;  %5497 = vmatprep.subr.bf16.mxu0 %v6173_v0  ;;  %v5573_v7 = vpack.c.bf16 %v3283_v5, %v3282_v4  ;;  %v3342_v4 = vld [vmem:[%s6211_s15 + $0x580] sm:$0xff]  ;;  %v3343_v5 = vld [vmem:[%s6211_s15 + $0x588] sm:$0xff] }
  0x65   : > { %5521 = vmatprep.subr.bf16.mxu1 %v6173_v0 }
  0x67   : > { %5499 = vmatpush3.bf16.msra.mxu0 %v5498_v12  ;;  %v5552_v12 = vpack.c.bf16 %v3267_v9, %v3266_v8  ;;  %v3305_v8 = vld [vmem:[%s6264_s19 + $0x12] sm:$0x3]  ;;  %v5651_v9 = vpack.c.bf16 %v3343_v5, %v3342_v4  ;;  %v3364_v4 = vld [vmem:[%s6211_s15 + $0x620] sm:$0xff]  ;;  %v3365_v5 = vld [vmem:[%s6211_s15 + $0x628] sm:$0xff] }
  0x68   : > { %5523 = vmatpush3.bf16.msra.mxu1 %v5522_v13  ;;  %5500 = vmatprep.subr.bf16.mxu0 %v6173_v0  ;;  %v5576_v13 = vpack.c.bf16 %v3285_v11, %v3284_v10  ;;  %v3326_v10 = vld [vmem:[%s6211_s15 + $0x510] sm:$0xff]  ;;  %v3327_v11 = vld [vmem:[%s6211_s15 + $0x518] sm:$0xff] }
  0x69   : > { %5524 = vmatprep.subr.bf16.mxu1 %v6173_v0 }
  0x6b   : > { %5502 = vmatpush3.bf16.msra.mxu0 %v5501_v18  ;;  %v3251_v18 = vld [vmem:[%s6264_s19 + $0xc] sm:$0x3] }
  0x6c   : > { %5526 = vmatpush3.bf16.msra.mxu1 %v5525_v19  ;;  %5503 = vmatprep.subr.bf16.mxu0 %v6173_v0  ;;  %v5579_v19 = vpack.c.bf16 %v3289_v15, %v3288_v14  ;;  %v5630_v14 = vpack.c.bf16 %v3327_v11, %v3326_v10  ;;  %v3366_v10 = vld [vmem:[%s6211_s15 + $0x630] sm:$0xff]  ;;  %v3367_v11 = vld [vmem:[%s6211_s15 + $0x638] sm:$0xff] }
  0x6d   : > { %5527 = vmatprep.subr.bf16.mxu1 %v6173_v0 }
  0x6f   : > { %5505 = vmatpush3.bf16.msra.mxu0 %v5504_v24  ;;  %v3308_v24 = vld [vmem:[%s6211_s15 + $0x490] sm:$0xff] }
  0x70   : > { %5529 = vmatpush3.bf16.msra.mxu1 %v5528_v25  ;;  %5530 = vmatprep.subr.bf16.mxu0 %v6173_v0  ;;  %v3309_v25 = vld [vmem:[%s6211_s15 + $0x498] sm:$0xff] }
  0x71   : > { %5554 = vmatprep.subr.bf16.mxu1 %v6173_v0  ;;  %v5606_v27 = vpack.c.bf16 %v3309_v25, %v3308_v24  ;;  %v3348_v24 = vld [vmem:[%s6211_s15 + $0x5b0] sm:$0xff]  ;;  %v3349_v25 = vld [vmem:[%s6211_s15 + $0x5b8] sm:$0xff] }
  0x72   : > { %4439 = vmatmul.mubr.f32.vlgmr.msra.gmra.mrb[4].mxu0 %v3215_v30  ;;  %v3310_v30 = vld [vmem:[%s6211_s15 + $0x4a0] sm:$0xff] }
  0x73   : > { %4474 = vmatmul.mubr.f32.vlgmr.msra.gmra.mrb[4].mxu1 %v3233_v32  ;;  %5532 = vmatpush3.bf16.msra.mxu0 %v5531_v31  ;;  %v3311_v31 = vld [vmem:[%s6211_s15 + $0x4a8] sm:$0xff]  ;;  %v5585_v32 = vpack.c.bf16 %v3293_v29, %v3292_v28  ;;  %v3332_v28 = vld [vmem:[%s6211_s15 + $0x540] sm:$0xff] }
  0x74   : > { %5556 = vmatpush3.bf16.msra.mxu1 %v5555_v33  ;;  %5533 = vmatprep.subr.bf16.mxu0 %v6173_v0  ;;  %v5609_v33 = vpack.c.bf16 %v3311_v31, %v3310_v30  ;;  %v3333_v29 = vld [vmem:[%s6211_s15 + $0x548] sm:$0xff]  ;;  %v3350_v30 = vld [vmem:[%s6211_s15 + $0x5c0] sm:$0xff] }
  0x75   : > { %5557 = vmatprep.subr.bf16.mxu1 %v6173_v0  ;;  %4508 = vmatprep.mubr.msk.f32.mxu0 %vm6174_vm0, %v6175_v1  ;;  %v3351_v31 = vld [vmem:[%s6211_s15 + $0x5c8] sm:$0xff] }
  0x76   : > { %4543 = vmatprep.mubr.msk.f32.mxu1 %vm6174_vm0, %v6175_v1 }
  0x77   : > { %5535 = vmatpush3.bf16.msra.mxu0 %v5534_v38  ;;  %v5588_v38 = vpack.c.bf16 %v3295_v35, %v3294_v34  ;;  %v3334_v34 = vld [vmem:[%s6211_s15 + $0x550] sm:$0xff]  ;;  %v3335_v35 = vld [vmem:[%s6211_s15 + $0x558] sm:$0xff] }
  0x78   : > { %5559 = vmatpush3.bf16.msra.mxu1 %v5558_v39  ;;  %5536 = vmatprep.subr.bf16.mxu0 %v6173_v0  ;;  %v5612_v39 = vpack.c.bf16 %v3313_v37, %v3312_v36  ;;  %v3352_v36 = vld [vmem:[%s6211_s15 + $0x5d0] sm:$0xff]  ;;  %v3353_v37 = vld [vmem:[%s6211_s15 + $0x5d8] sm:$0xff] }
  0x79   : > { %5560 = vmatprep.subr.bf16.mxu1 %v6173_v0 }
  0x7b   : > { %5538 = vmatpush3.bf16.msra.mxu0 %v5537_v44  ;;  %v5591_v44 = vpack.c.bf16 %v3297_v41, %v3296_v40  ;;  %v3336_v40 = vld [vmem:[%s6211_s15 + $0x560] sm:$0xff]  ;;  %v3337_v41 = vld [vmem:[%s6211_s15 + $0x568] sm:$0xff] }
  0x7c   : > { %5562 = vmatpush3.bf16.msra.mxu1 %v5561_v45  ;;  %5539 = vmatprep.subr.bf16.mxu0 %v6173_v0  ;;  %v5615_v45 = vpack.c.bf16 %v3315_v43, %v3314_v42  ;;  %v3354_v42 = vld [vmem:[%s6211_s15 + $0x5e0] sm:$0xff]  ;;  %v3355_v43 = vld [vmem:[%s6211_s15 + $0x5e8] sm:$0xff] }
  0x7d   : > { %5563 = vmatprep.subr.bf16.mxu1 %v6173_v0 }
  0x7f   : > { %5541 = vmatpush3.bf16.msra.mxu0 %v5540_v50  ;;  %v5594_v50 = vpack.c.bf16 %v3299_v47, %v3298_v46  ;;  %v3338_v46 = vld [vmem:[%s6211_s15 + $0x570] sm:$0xff]  ;;  %v3339_v47 = vld [vmem:[%s6211_s15 + $0x578] sm:$0xff] }
  0x80   : > { %5565 = vmatpush3.bf16.msra.mxu1 %v5564_v51  ;;  %5542 = vmatprep.subr.bf16.mxu0 %v6173_v0  ;;  %v5618_v51 = vpack.c.bf16 %v3317_v49, %v3316_v48  ;;  %v3356_v48 = vld [vmem:[%s6211_s15 + $0x5f0] sm:$0xff]  ;;  %v3357_v49 = vld [vmem:[%s6211_s15 + $0x5f8] sm:$0xff] }
  0x81   : > { %5566 = vmatprep.subr.bf16.mxu1 %v6173_v0 }
  0x83   : > { %5544 = vmatpush3.bf16.msra.mxu0 %v5543_v56  ;;  %v5597_v56 = vpack.c.bf16 %v3301_v53, %v3300_v52  ;;  %v3360_v52 = vld [vmem:[%s6211_s15 + $0x600] sm:$0xff]  ;;  %v3361_v53 = vld [vmem:[%s6211_s15 + $0x608] sm:$0xff] }
  0x84   : > { %5568 = vmatpush3.bf16.msra.mxu1 %v5567_v57  ;;  %5545 = vmatprep.subr.bf16.mxu0 %v6173_v0  ;;  %v5621_v57 = vpack.c.bf16 %v3319_v55, %v3318_v54  ;;  %v3378_v54 = vld [vmem:[%s6211_s15 + $0x680] sm:$0xff]  ;;  %v3379_v55 = vld [vmem:[%s6211_s15 + $0x688] sm:$0xff] }
  0x85   : > { %5569 = vmatprep.subr.bf16.mxu1 %v6173_v0 }
  0x87   : > { %5547 = vmatpush3.bf16.msra.mxu0 %v5546_v62  ;;  %v5600_v62 = vpack.c.bf16 %v3303_v59, %v3302_v58  ;;  %v3341_v58 = vld [vmem:[%s6264_s19 + $0x16] sm:$0x3]  ;;  %v5699_v59 = vpack.c.bf16 %v3379_v55, %v3378_v54  ;;  %v3400_v54 = vld [vmem:[%s6211_s15 + $0x720] sm:$0xff]  ;;  %v3401_v55 = vld [vmem:[%s6211_s15 + $0x728] sm:$0xff] }
  0x88   : > { %5571 = vmatpush3.bf16.msra.mxu1 %v5570_v63  ;;  %5548 = vmatprep.subr.bf16.mxu0 %v6173_v0  ;;  %v5624_v63 = vpack.c.bf16 %v3321_v61, %v3320_v60  ;;  %v3362_v60 = vld [vmem:[%s6211_s15 + $0x610] sm:$0xff]  ;;  %v3363_v61 = vld [vmem:[%s6211_s15 + $0x618] sm:$0xff] }
  0x89   : > { %5572 = vmatprep.subr.bf16.mxu1 %v6173_v0 }
  0x8b   : > { %5550 = vmatpush3.bf16.msra.mxu0 %v5549_v6  ;;  %v3287_v6 = vld [vmem:[%s6264_s19 + $0x10] sm:$0x3] }
  0x8c   : > { %5574 = vmatpush3.bf16.msra.mxu1 %v5573_v7  ;;  %5551 = vmatprep.subr.bf16.mxu0 %v6173_v0  ;;  %v5627_v7 = vpack.c.bf16 %v3325_v3, %v3324_v2  ;;  %v5678_v2 = vpack.c.bf16 %v3363_v61, %v3362_v60  ;;  %v3402_v60 = vld [vmem:[%s6211_s15 + $0x730] sm:$0xff]  ;;  %v3403_v61 = vld [vmem:[%s6211_s15 + $0x738] sm:$0xff] }
  0x8d   : > { %5575 = vmatprep.subr.bf16.mxu1 %v6173_v0 }
  0x8f   : > { %5553 = vmatpush3.bf16.msra.mxu0 %v5552_v12  ;;  %v3344_v12 = vld [vmem:[%s6211_s15 + $0x590] sm:$0xff] }
  0x90   : > { %5577 = vmatpush3.bf16.msra.mxu1 %v5576_v13  ;;  %5578 = vmatprep.subr.bf16.mxu0 %v6173_v0  ;;  %v3345_v13 = vld [vmem:[%s6211_s15 + $0x598] sm:$0xff] }
  0x91   : > { %5602 = vmatprep.subr.bf16.mxu1 %v6173_v0  ;;  %v5654_v15 = vpack.c.bf16 %v3345_v13, %v3344_v12  ;;  %v3384_v12 = vld [vmem:[%s6211_s15 + $0x6b0] sm:$0xff]  ;;  %v3385_v13 = vld [vmem:[%s6211_s15 + $0x6b8] sm:$0xff] }
  0x92   : > { %4509 = vmatmul.mubr.f32.vlgmr.msra.gmra.mrb[6].mxu0 %v3251_v18  ;;  %v3346_v18 = vld [vmem:[%s6211_s15 + $0x5a0] sm:$0xff] }
  0x93   : > { %4544 = vmatmul.mubr.f32.vlgmr.msra.gmra.mrb[6].mxu1 %v3269_v20  ;;  %5580 = vmatpush3.bf16.msra.mxu0 %v5579_v19  ;;  %v3347_v19 = vld [vmem:[%s6211_s15 + $0x5a8] sm:$0xff]  ;;  %v5633_v20 = vpack.c.bf16 %v3329_v17, %v3328_v16  ;;  %v3368_v16 = vld [vmem:[%s6211_s15 + $0x640] sm:$0xff] }
  0x94   : > { %5604 = vmatpush3.bf16.msra.mxu1 %v5603_v21  ;;  %5581 = vmatprep.subr.bf16.mxu0 %v6173_v0  ;;  %v5657_v21 = vpack.c.bf16 %v3347_v19, %v3346_v18  ;;  %v3369_v17 = vld [vmem:[%s6211_s15 + $0x648] sm:$0xff]  ;;  %v3386_v18 = vld [vmem:[%s6211_s15 + $0x6c0] sm:$0xff] }
  0x95   : > { %5605 = vmatprep.subr.bf16.mxu1 %v6173_v0  ;;  %4578 = vmatprep.mubr.msk.f32.mxu0 %vm6174_vm0, %v6175_v1  ;;  %v3387_v19 = vld [vmem:[%s6211_s15 + $0x6c8] sm:$0xff] }
  0x96   : > { %4613 = vmatprep.mubr.msk.f32.mxu1 %vm6174_vm0, %v6175_v1 }
  0x97   : > { %5583 = vmatpush3.bf16.msra.mxu0 %v5582_v26  ;;  %v5636_v26 = vpack.c.bf16 %v3331_v23, %v3330_v22  ;;  %v3370_v22 = vld [vmem:[%s6211_s15 + $0x650] sm:$0xff]  ;;  %v3371_v23 = vld [vmem:[%s6211_s15 + $0x658] sm:$0xff] }
  0x98   : > { %5607 = vmatpush3.bf16.msra.mxu1 %v5606_v27  ;;  %5584 = vmatprep.subr.bf16.mxu0 %v6173_v0  ;;  %v5660_v27 = vpack.c.bf16 %v3349_v25, %v3348_v24  ;;  %v3388_v24 = vld [vmem:[%s6211_s15 + $0x6d0] sm:$0xff]  ;;  %v3389_v25 = vld [vmem:[%s6211_s15 + $0x6d8] sm:$0xff] }
  0x99   : > { %5608 = vmatprep.subr.bf16.mxu1 %v6173_v0 }
  0x9b   : > { %5586 = vmatpush3.bf16.msra.mxu0 %v5585_v32  ;;  %v5639_v32 = vpack.c.bf16 %v3333_v29, %v3332_v28  ;;  %v3372_v28 = vld [vmem:[%s6211_s15 + $0x660] sm:$0xff]  ;;  %v3373_v29 = vld [vmem:[%s6211_s15 + $0x668] sm:$0xff] }
  0x9c   : > { %5610 = vmatpush3.bf16.msra.mxu1 %v5609_v33  ;;  %5587 = vmatprep.subr.bf16.mxu0 %v6173_v0  ;;  %v5663_v33 = vpack.c.bf16 %v3351_v31, %v3350_v30  ;;  %v3390_v30 = vld [vmem:[%s6211_s15 + $0x6e0] sm:$0xff]  ;;  %v3391_v31 = vld [vmem:[%s6211_s15 + $0x6e8] sm:$0xff] }
  0x9d   : > { %5611 = vmatprep.subr.bf16.mxu1 %v6173_v0 }
  0x9f   : > { %5589 = vmatpush3.bf16.msra.mxu0 %v5588_v38  ;;  %v5642_v38 = vpack.c.bf16 %v3335_v35, %v3334_v34  ;;  %v3374_v34 = vld [vmem:[%s6211_s15 + $0x670] sm:$0xff]  ;;  %v3375_v35 = vld [vmem:[%s6211_s15 + $0x678] sm:$0xff] }
  0xa0   : > { %5613 = vmatpush3.bf16.msra.mxu1 %v5612_v39  ;;  %5590 = vmatprep.subr.bf16.mxu0 %v6173_v0  ;;  %v5666_v39 = vpack.c.bf16 %v3353_v37, %v3352_v36  ;;  %v3392_v36 = vld [vmem:[%s6211_s15 + $0x6f0] sm:$0xff]  ;;  %v3393_v37 = vld [vmem:[%s6211_s15 + $0x6f8] sm:$0xff] }
  0xa1   : > { %5614 = vmatprep.subr.bf16.mxu1 %v6173_v0 }
  0xa3   : > { %5592 = vmatpush3.bf16.msra.mxu0 %v5591_v44  ;;  %v5645_v44 = vpack.c.bf16 %v3337_v41, %v3336_v40  ;;  %v3396_v40 = vld [vmem:[%s6211_s15 + $0x700] sm:$0xff]  ;;  %v3397_v41 = vld [vmem:[%s6211_s15 + $0x708] sm:$0xff] }
  0xa4   : > { %5616 = vmatpush3.bf16.msra.mxu1 %v5615_v45  ;;  %5593 = vmatprep.subr.bf16.mxu0 %v6173_v0  ;;  %v5669_v45 = vpack.c.bf16 %v3355_v43, %v3354_v42  ;;  %v3414_v42 = vld [vmem:[%s6211_s15 + $0x780] sm:$0xff]  ;;  %v3415_v43 = vld [vmem:[%s6211_s15 + $0x788] sm:$0xff] }
  0xa5   : > { %5617 = vmatprep.subr.bf16.mxu1 %v6173_v0 }
  0xa7   : > { %5595 = vmatpush3.bf16.msra.mxu0 %v5594_v50  ;;  %v5648_v50 = vpack.c.bf16 %v3339_v47, %v3338_v46  ;;  %v3377_v46 = vld [vmem:[%s6264_s19 + $0x1a] sm:$0x3]  ;;  %v5747_v47 = vpack.c.bf16 %v3415_v43, %v3414_v42  ;;  %v3452_v42 = vld [vmem:[%s6211_s15 + $0x890] sm:$0xff] }
  0xa8   : > { %5619 = vmatpush3.bf16.msra.mxu1 %v5618_v51  ;;  %5596 = vmatprep.subr.bf16.mxu0 %v6173_v0  ;;  %v5672_v51 = vpack.c.bf16 %v3357_v49, %v3356_v48  ;;  %v3398_v48 = vld [vmem:[%s6211_s15 + $0x710] sm:$0xff]  ;;  %v3399_v49 = vld [vmem:[%s6211_s15 + $0x718] sm:$0xff] }
  0xa9   : > { %5620 = vmatprep.subr.bf16.mxu1 %v6173_v0  ;;  %v3453_v43 = vld [vmem:[%s6211_s15 + $0x898] sm:$0xff] }
  0xab   : > { %5598 = vmatpush3.bf16.msra.mxu0 %v5597_v56  ;;  %v3323_v56 = vld [vmem:[%s6264_s19 + $0x14] sm:$0x3] }
  0xac   : > { %5622 = vmatpush3.bf16.msra.mxu1 %v5621_v57  ;;  %5599 = vmatprep.subr.bf16.mxu0 %v6173_v0  ;;  %v5675_v57 = vpack.c.bf16 %v3361_v53, %v3360_v52  ;;  %v5726_v52 = vpack.c.bf16 %v3399_v49, %v3398_v48  ;;  %v3454_v48 = vld [vmem:[%s6211_s15 + $0x8a0] sm:$0xff]  ;;  %v3455_v49 = vld [vmem:[%s6211_s15 + $0x8a8] sm:$0xff] }
  0xad   : > { %5623 = vmatprep.subr.bf16.mxu1 %v6173_v0 }
  0xaf   : > { %5601 = vmatpush3.bf16.msra.mxu0 %v5600_v62  ;;  %v3380_v62 = vld [vmem:[%s6211_s15 + $0x690] sm:$0xff] }
  0xb0   : > { %5625 = vmatpush3.bf16.msra.mxu1 %v5624_v63  ;;  %5626 = vmatprep.subr.bf16.mxu0 %v6173_v0  ;;  %v3381_v63 = vld [vmem:[%s6211_s15 + $0x698] sm:$0xff] }
  0xb1   : > { %5650 = vmatprep.subr.bf16.mxu1 %v6173_v0  ;;  %v5702_v3 = vpack.c.bf16 %v3381_v63, %v3380_v62  ;;  %v3420_v62 = vld [vmem:[%s6211_s15 + $0x7b0] sm:$0xff]  ;;  %v3421_v63 = vld [vmem:[%s6211_s15 + $0x7b8] sm:$0xff] }
  0xb2   : > { %4579 = vmatmul.mubr.f32.vlgmr.msra.gmra.mrb[8].mxu0 %v3287_v6  ;;  %v3382_v6 = vld [vmem:[%s6211_s15 + $0x6a0] sm:$0xff] }
  0xb3   : > { %4614 = vmatmul.mubr.f32.vlgmr.msra.gmra.mrb[8].mxu1 %v3305_v8  ;;  %5628 = vmatpush3.bf16.msra.mxu0 %v5627_v7  ;;  %v3383_v7 = vld [vmem:[%s6211_s15 + $0x6a8] sm:$0xff]  ;;  %v5681_v8 = vpack.c.bf16 %v3365_v5, %v3364_v4  ;;  %v3404_v4 = vld [vmem:[%s6211_s15 + $0x740] sm:$0xff] }
  0xb4   : > { %5652 = vmatpush3.bf16.msra.mxu1 %v5651_v9  ;;  %5629 = vmatprep.subr.bf16.mxu0 %v6173_v0  ;;  %v5705_v9 = vpack.c.bf16 %v3383_v7, %v3382_v6  ;;  %v3405_v5 = vld [vmem:[%s6211_s15 + $0x748] sm:$0xff]  ;;  %v3422_v6 = vld [vmem:[%s6211_s15 + $0x7c0] sm:$0xff] }
  0xb5   : > { %5653 = vmatprep.subr.bf16.mxu1 %v6173_v0  ;;  %4648 = vmatprep.mubr.msk.f32.mxu0 %vm6174_vm0, %v6175_v1  ;;  %v3423_v7 = vld [vmem:[%s6211_s15 + $0x7c8] sm:$0xff] }
  0xb6   : > { %4683 = vmatprep.mubr.msk.f32.mxu1 %vm6174_vm0, %v6175_v1 }
  0xb7   : > { %5631 = vmatpush3.bf16.msra.mxu0 %v5630_v14  ;;  %v5684_v14 = vpack.c.bf16 %v3367_v11, %v3366_v10  ;;  %v3406_v10 = vld [vmem:[%s6211_s15 + $0x750] sm:$0xff]  ;;  %v3407_v11 = vld [vmem:[%s6211_s15 + $0x758] sm:$0xff] }
  0xb8   : > { %5655 = vmatpush3.bf16.msra.mxu1 %v5654_v15  ;;  %5632 = vmatprep.subr.bf16.mxu0 %v6173_v0  ;;  %v5708_v15 = vpack.c.bf16 %v3385_v13, %v3384_v12  ;;  %v3424_v12 = vld [vmem:[%s6211_s15 + $0x7d0] sm:$0xff]  ;;  %v3425_v13 = vld [vmem:[%s6211_s15 + $0x7d8] sm:$0xff] }
  0xb9   : > { %5656 = vmatprep.subr.bf16.mxu1 %v6173_v0 }
  0xbb   : > { %5634 = vmatpush3.bf16.msra.mxu0 %v5633_v20  ;;  %v5687_v20 = vpack.c.bf16 %v3369_v17, %v3368_v16  ;;  %v3408_v16 = vld [vmem:[%s6211_s15 + $0x760] sm:$0xff]  ;;  %v3409_v17 = vld [vmem:[%s6211_s15 + $0x768] sm:$0xff] }
  0xbc   : > { %5658 = vmatpush3.bf16.msra.mxu1 %v5657_v21  ;;  %5635 = vmatprep.subr.bf16.mxu0 %v6173_v0  ;;  %v5711_v21 = vpack.c.bf16 %v3387_v19, %v3386_v18  ;;  %v3426_v19 = vld [vmem:[%s6211_s15 + $0x7e0] sm:$0xff] }
  0xbd   : > { %5659 = vmatprep.subr.bf16.mxu1 %v6173_v0 }
  0xbf   : > { %5637 = vmatpush3.bf16.msra.mxu0 %v5636_v26  ;;  %v5690_v26 = vpack.c.bf16 %v3371_v23, %v3370_v22 }
  0xc0   : > { %5661 = vmatpush3.bf16.msra.mxu1 %v5660_v27  ;;  %5638 = vmatprep.subr.bf16.mxu0 %v6173_v0  ;;  %v5714_v27 = vpack.c.bf16 %v3389_v25, %v3388_v24  ;;  %v5741_v24 = vpack.c.bf16 %v3409_v17, %v3408_v16 }
  0xc1   : > { %5662 = vmatprep.subr.bf16.mxu1 %v6173_v0 }
  0xc3   : > { %5640 = vmatpush3.bf16.msra.mxu0 %v5639_v32  ;;  %v5693_v32 = vpack.c.bf16 %v3373_v29, %v3372_v28  ;;  %v3428_v28 = vld [vmem:[%s6211_s15 + $0x7f0] sm:$0xff]  ;;  %v3429_v29 = vld [vmem:[%s6211_s15 + $0x7f8] sm:$0xff] }
  0xc4   : > { %5664 = vmatpush3.bf16.msra.mxu1 %v5663_v33  ;;  %5641 = vmatprep.subr.bf16.mxu0 %v6173_v0  ;;  %v5717_v33 = vpack.c.bf16 %v3391_v31, %v3390_v30  ;;  %v5768_v31 = vpack.c.bf16 %v3429_v29, %v3428_v28  ;;  %v3431_v28 = vld [vmem:[%s6264_s19 + $0x20] sm:$0x3] }
  0xc5   : > { %5665 = vmatprep.subr.bf16.mxu1 %v6173_v0 }
  0xc7   : > { %5643 = vmatpush3.bf16.msra.mxu0 %v5642_v38  ;;  %v5696_v38 = vpack.c.bf16 %v3375_v35, %v3374_v34  ;;  %v3450_v34 = vld [vmem:[%s6211_s15 + $0x880] sm:$0xff]  ;;  %v3451_v35 = vld [vmem:[%s6211_s15 + $0x888] sm:$0xff] }
  0xc8   : > { %5667 = vmatpush3.bf16.msra.mxu1 %v5666_v39  ;;  %5644 = vmatprep.subr.bf16.mxu0 %v6173_v0  ;;  %v5720_v39 = vpack.c.bf16 %v3393_v37, %v3392_v36  ;;  %v3395_v36 = vld [vmem:[%s6264_s19 + $0x1c] sm:$0x3] }
  0xc9   : > { %5668 = vmatprep.subr.bf16.mxu1 %v6173_v0 }
  0xcb   : > { %5646 = vmatpush3.bf16.msra.mxu0 %v5645_v44  ;;  %v3359_v44 = vld [vmem:[%s6264_s19 + $0x18] sm:$0x3] }
  0xcc   : > { %5670 = vmatpush3.bf16.msra.mxu1 %v5669_v45  ;;  %5647 = vmatprep.subr.bf16.mxu0 %v6173_v0  ;;  %v5723_v45 = vpack.c.bf16 %v3397_v41, %v3396_v40  ;;  %v3434_v40 = vld [vmem:[%s6211_s15 + $0x810] sm:$0xff]  ;;  %v3435_v41 = vld [vmem:[%s6211_s15 + $0x818] sm:$0xff] }
  0xcd   : > { %5671 = vmatprep.subr.bf16.mxu1 %v6173_v0 }
  0xcf   : > { %5649 = vmatpush3.bf16.msra.mxu0 %v5648_v50  ;;  %v3416_v50 = vld [vmem:[%s6211_s15 + $0x790] sm:$0xff] }
  0xd0   : > { %5673 = vmatpush3.bf16.msra.mxu1 %v5672_v51  ;;  %5674 = vmatprep.subr.bf16.mxu0 %v6173_v0  ;;  %v3417_v51 = vld [vmem:[%s6211_s15 + $0x798] sm:$0xff] }
  0xd1   : > { %5698 = vmatprep.subr.bf16.mxu1 %v6173_v0  ;;  %v5750_v53 = vpack.c.bf16 %v3417_v51, %v3416_v50  ;;  %v5801_v51 = vpack.c.bf16 %v3455_v49, %v3454_v48 }
  0xd2   : > { %4649 = vmatmul.mubr.f32.vlgmr.msra.gmra.mrb[10].mxu0 %v3323_v56  ;;  %v3418_v56 = vld [vmem:[%s6211_s15 + $0x7a0] sm:$0xff] }
  0xd3   : > { %4684 = vmatmul.mubr.f32.vlgmr.msra.gmra.mrb[10].mxu1 %v3341_v58  ;;  %5676 = vmatpush3.bf16.msra.mxu0 %v5675_v57  ;;  %v3419_v57 = vld [vmem:[%s6211_s15 + $0x7a8] sm:$0xff]  ;;  %v5729_v58 = vpack.c.bf16 %v3401_v55, %v3400_v54  ;;  %v3456_v54 = vld [vmem:[%s6211_s15 + $0x8b0] sm:$0xff]  ;;  %v3457_v55 = vld [vmem:[%s6211_s15 + $0x8b8] sm:$0xff] }
  0xd4   : > { %5700 = vmatpush3.bf16.msra.mxu1 %v5699_v59  ;;  %5677 = vmatprep.subr.bf16.mxu0 %v6173_v0  ;;  %v5753_v59 = vpack.c.bf16 %v3419_v57, %v3418_v56  ;;  %v5804_v57 = vpack.c.bf16 %v3457_v55, %v3456_v54 }
  0xd5   : > { %5701 = vmatprep.subr.bf16.mxu1 %v6173_v0  ;;  %4718 = vmatprep.mubr.msk.f32.mxu0 %vm6174_vm0, %v6175_v1 }
  0xd6   : > { %4753 = vmatprep.mubr.msk.f32.mxu1 %vm6174_vm0, %v6175_v1 }
  0xd7   : > { %5679 = vmatpush3.bf16.msra.mxu0 %v5678_v2  ;;  %v5732_v2 = vpack.c.bf16 %v3403_v61, %v3402_v60  ;;  %v3458_v60 = vld [vmem:[%s6211_s15 + $0x8c0] sm:$0xff]  ;;  %v3459_v61 = vld [vmem:[%s6211_s15 + $0x8c8] sm:$0xff] }
  0xd8   : > { %5703 = vmatpush3.bf16.msra.mxu1 %v5702_v3  ;;  %5680 = vmatprep.subr.bf16.mxu0 %v6173_v0  ;;  %v5756_v3 = vpack.c.bf16 %v3421_v63, %v3420_v62  ;;  %v5807_v63 = vpack.c.bf16 %v3459_v61, %v3458_v60 }
  0xd9   : > { %5704 = vmatprep.subr.bf16.mxu1 %v6173_v0 }
  0xdb   : > { %5682 = vmatpush3.bf16.msra.mxu0 %v5681_v8  ;;  %v5735_v8 = vpack.c.bf16 %v3405_v5, %v3404_v4  ;;  %v3460_v4 = vld [vmem:[%s6211_s15 + $0x8d0] sm:$0xff]  ;;  %v3461_v5 = vld [vmem:[%s6211_s15 + $0x8d8] sm:$0xff] }
  0xdc   : > { %5706 = vmatpush3.bf16.msra.mxu1 %v5705_v9  ;;  %5683 = vmatprep.subr.bf16.mxu0 %v6173_v0  ;;  %v5759_v9 = vpack.c.bf16 %v3423_v7, %v3422_v6  ;;  %v5810_v7 = vpack.c.bf16 %v3461_v5, %v3460_v4  ;;  %v3499_v4 = vld [vmem:[%s6211_s15 + $0x9e8] sm:$0xff] }
  0xdd   : > { %5707 = vmatprep.subr.bf16.mxu1 %v6173_v0 }
  0xdf   : > { %5685 = vmatpush3.bf16.msra.mxu0 %v5684_v14  ;;  %v5738_v14 = vpack.c.bf16 %v3407_v11, %v3406_v10  ;;  %v3462_v11 = vld [vmem:[%s6211_s15 + $0x8e0] sm:$0xff] }
  0xe0   : > { %5709 = vmatpush3.bf16.msra.mxu1 %v5708_v15  ;;  %5686 = vmatprep.subr.bf16.mxu0 %v6173_v0  ;;  %v5762_v15 = vpack.c.bf16 %v3425_v13, %v3424_v12  ;;  %v3463_v12 = vld [vmem:[%s6211_s15 + $0x8e8] sm:$0xff] }
  0xe1   : > { %5710 = vmatprep.subr.bf16.mxu1 %v6173_v0  ;;  %v5813_v17 = vpack.c.bf16 %v3463_v12, %v3462_v11  ;;  %v3483_v11 = vld [vmem:[%s6211_s15 + $0x978] sm:$0xff]  ;;  %v3500_v12 = vld [vmem:[%s6211_s15 + $0x9f0] sm:$0xff] }
  0xe3   : > { %5688 = vmatpush3.bf16.msra.mxu0 %v5687_v20  ;;  %v3427_v20 = vld [vmem:[%s6211_s15 + $0x7e8] sm:$0xff] }
  0xe4   : > { %5712 = vmatpush3.bf16.msra.mxu1 %v5711_v21  ;;  %5689 = vmatprep.subr.bf16.mxu0 %v6173_v0  ;;  %v5765_v25 = vpack.c.bf16 %v3427_v20, %v3426_v19  ;;  %v3447_v19 = vld [vmem:[%s6211_s15 + $0x878] sm:$0xff]  ;;  %v3464_v20 = vld [vmem:[%s6211_s15 + $0x8f0] sm:$0xff] }
  0xe5   : > { %5713 = vmatprep.subr.bf16.mxu1 %v6173_v0 }
  0xe7   : > { %5691 = vmatpush3.bf16.msra.mxu0 %v5690_v26  ;;  %v3410_v26 = vld [vmem:[%s6211_s15 + $0x770] sm:$0xff] }
  0xe8   : > { %5715 = vmatpush3.bf16.msra.mxu1 %v5714_v27  ;;  %5692 = vmatprep.subr.bf16.mxu0 %v6173_v0  ;;  %v3411_v27 = vld [vmem:[%s6211_s15 + $0x778] sm:$0xff] }
  0xe9   : > { %5716 = vmatprep.subr.bf16.mxu1 %v6173_v0  ;;  %v5744_v30 = vpack.c.bf16 %v3411_v27, %v3410_v26  ;;  %v3486_v26 = vld [vmem:[%s6211_s15 + $0x980] sm:$0xff]  ;;  %v3487_v27 = vld [vmem:[%s6211_s15 + $0x988] sm:$0xff] }
  0xeb   : > { %5694 = vmatpush3.bf16.msra.mxu0 %v5693_v32  ;;  %v3432_v32 = vld [vmem:[%s6211_s15 + $0x800] sm:$0xff] }
  0xec   : > { %5718 = vmatpush3.bf16.msra.mxu1 %v5717_v33  ;;  %5695 = vmatprep.subr.bf16.mxu0 %v6173_v0  ;;  %v3433_v33 = vld [vmem:[%s6211_s15 + $0x808] sm:$0xff] }
  0xed   : > { %5719 = vmatprep.subr.bf16.mxu1 %v6173_v0  ;;  %v5771_v37 = vpack.c.bf16 %v3433_v33, %v3432_v32  ;;  %v3470_v32 = vld [vmem:[%s6211_s15 + $0x910] sm:$0xff]  ;;  %v3471_v33 = vld [vmem:[%s6211_s15 + $0x918] sm:$0xff] }
  0xef   : > { %5697 = vmatpush3.bf16.msra.mxu0 %v5696_v38  ;;  %v3413_v38 = vld [vmem:[%s6264_s19 + $0x1e] sm:$0x3] }
  0xf0   : > { %5721 = vmatpush3.bf16.msra.mxu1 %v5720_v39  ;;  %5722 = vmatprep.subr.bf16.mxu0 %v6173_v0  ;;  %v5795_v39 = vpack.c.bf16 %v3451_v35, %v3450_v34  ;;  %v3488_v34 = vld [vmem:[%s6211_s15 + $0x990] sm:$0xff]  ;;  %v3489_v35 = vld [vmem:[%s6211_s15 + $0x998] sm:$0xff] }
  0xf1   : > { %5746 = vmatprep.subr.bf16.mxu1 %v6173_v0 }
  0xf2   : > { %4719 = vmatmul.mubr.f32.vlgmr.msra.gmra.mrb[12].mxu0 %v3359_v44  ;;  %v5774_v44 = vpack.c.bf16 %v3435_v41, %v3434_v40  ;;  %v3490_v40 = vld [vmem:[%s6211_s15 + $0x9a0] sm:$0xff]  ;;  %v3491_v41 = vld [vmem:[%s6211_s15 + $0x9a8] sm:$0xff] }
  0xf3   : > { %4754 = vmatmul.mubr.f32.vlgmr.msra.gmra.mrb[12].mxu1 %v3377_v46  ;;  %5724 = vmatpush3.bf16.msra.mxu0 %v5723_v45  ;;  %v5798_v45 = vpack.c.bf16 %v3453_v43, %v3452_v42  ;;  %v3436_v46 = vld [vmem:[%s6211_s15 + $0x820] sm:$0xff]  ;;  %v5849_v43 = vpack.c.bf16 %v3491_v41, %v3490_v40 }
  0xf4   : > { %5748 = vmatpush3.bf16.msra.mxu1 %v5747_v47  ;;  %5725 = vmatprep.subr.bf16.mxu0 %v6173_v0  ;;  %v3437_v47 = vld [vmem:[%s6211_s15 + $0x828] sm:$0xff] }
  0xf5   : > { %5749 = vmatprep.subr.bf16.mxu1 %v6173_v0  ;;  %4788 = vmatprep.mubr.msk.f32.mxu0 %vm6174_vm0, %v6175_v1  ;;  %v5777_v50 = vpack.c.bf16 %v3437_v47, %v3436_v46  ;;  %v3492_v46 = vld [vmem:[%s6211_s15 + $0x9b0] sm:$0xff]  ;;  %v3493_v47 = vld [vmem:[%s6211_s15 + $0x9b8] sm:$0xff] }
  0xf6   : > { %4823 = vmatprep.mubr.msk.f32.mxu1 %vm6174_vm0, %v6175_v1  ;;  %v5852_v49 = vpack.c.bf16 %v3493_v47, %v3492_v46 }
  0xf7   : > { %5727 = vmatpush3.bf16.msra.mxu0 %v5726_v52  ;;  %v3438_v52 = vld [vmem:[%s6211_s15 + $0x830] sm:$0xff] }
  0xf8   : > { %5751 = vmatpush3.bf16.msra.mxu1 %v5750_v53  ;;  %5728 = vmatprep.subr.bf16.mxu0 %v6173_v0  ;;  %v3439_v53 = vld [vmem:[%s6211_s15 + $0x838] sm:$0xff] }
  0xf9   : > { %5752 = vmatprep.subr.bf16.mxu1 %v6173_v0  ;;  %v5780_v56 = vpack.c.bf16 %v3439_v53, %v3438_v52  ;;  %v3494_v52 = vld [vmem:[%s6211_s15 + $0x9c0] sm:$0xff]  ;;  %v3495_v53 = vld [vmem:[%s6211_s15 + $0x9c8] sm:$0xff] }
  0xfa   : > { %v5855_v55 = vpack.c.bf16 %v3495_v53, %v3494_v52 }
  0xfb   : > { %5730 = vmatpush3.bf16.msra.mxu0 %v5729_v58  ;;  %v3440_v58 = vld [vmem:[%s6211_s15 + $0x840] sm:$0xff] }
  0xfc   : > { %5754 = vmatpush3.bf16.msra.mxu1 %v5753_v59  ;;  %5731 = vmatprep.subr.bf16.mxu0 %v6173_v0  ;;  %v3441_v59 = vld [vmem:[%s6211_s15 + $0x848] sm:$0xff] }
  0xfd   : > { %5755 = vmatprep.subr.bf16.mxu1 %v6173_v0  ;;  %v5783_v62 = vpack.c.bf16 %v3441_v59, %v3440_v58  ;;  %v3496_v58 = vld [vmem:[%s6211_s15 + $0x9d0] sm:$0xff]  ;;  %v3497_v59 = vld [vmem:[%s6211_s15 + $0x9d8] sm:$0xff] }
  0xfe   : > { %v5858_v61 = vpack.c.bf16 %v3497_v59, %v3496_v58  ;;  %v3535_v58 = vld [vmem:[%s6211_s15 + $0xae8] sm:$0xff] }
  0xff   : > { %5733 = vmatpush3.bf16.msra.mxu0 %v5732_v2  ;;  %v3442_v2 = vld [vmem:[%s6211_s15 + $0x850] sm:$0xff] }
 0x100   : > { %5757 = vmatpush3.bf16.msra.mxu1 %v5756_v3  ;;  %5734 = vmatprep.subr.bf16.mxu0 %v6173_v0  ;;  %v3443_v3 = vld [vmem:[%s6211_s15 + $0x858] sm:$0xff] }
 0x101   : > { %5758 = vmatprep.subr.bf16.mxu1 %v6173_v0  ;;  %v5786_v6 = vpack.c.bf16 %v3443_v3, %v3442_v2  ;;  %v3498_v3 = vld [vmem:[%s6211_s15 + $0x9e0] sm:$0xff] }
 0x103   : > { %5736 = vmatpush3.bf16.msra.mxu0 %v5735_v8  ;;  %v3444_v8 = vld [vmem:[%s6211_s15 + $0x860] sm:$0xff] }
 0x104   : > { %5760 = vmatpush3.bf16.msra.mxu1 %v5759_v9  ;;  %5737 = vmatprep.subr.bf16.mxu0 %v6173_v0  ;;  %v3445_v9 = vld [vmem:[%s6211_s15 + $0x868] sm:$0xff] }
 0x105   : > { %v255_v18 = vpop.f32.mrb[0].mxu0  ;;  %5761 = vmatprep.subr.bf16.mxu1 %v6173_v0  ;;  %v5789_v16 = vpack.c.bf16 %v3445_v9, %v3444_v8  ;;  %v5861_v9 = vpack.c.bf16 %v3499_v4, %v3498_v3  ;;  %v3519_v3 = vld [vmem:[%s6211_s15 + $0xa78] sm:$0xff]  ;;  %v3536_v4 = vld [vmem:[%s6211_s15 + $0xaf0] sm:$0xff] }
 0x106   : > { %259 = vst [vmem:[%s6636_s22] sm:$0x3] %v255_v18  ;;  %v345_v21 = vpop.f32.mrb[0].mxu1  ;;  %v4300_v22 = vpop.f32.mrb[1].mxu0  ;;  %v3446_v18 = vld [vmem:[%s6211_s15 + $0x870] sm:$0xff] }
 0x107   : > { %3178 = vst [vmem:[%s6636_s22 + $0x2] sm:$0x3] %v345_v21  ;;  %v4335_v23 = vpop.f32.mrb[1].mxu1  ;;  %5739 = vmatpush3.bf16.msra.mxu0 %v5738_v14  ;;  %v3465_v21 = vld [vmem:[%s6211_s15 + $0x8f8] sm:$0xff]  ;;  %v5792_v22 = vpack.c.bf16 %v3447_v19, %v3446_v18  ;;  %v3522_v18 = vld [vmem:[%s6211_s15 + $0xa80] sm:$0xff]  ;;  %v3523_v19 = vld [vmem:[%s6211_s15 + $0xa88] sm:$0xff] }
 0x108   : > { %5763 = vmatpush3.bf16.msra.mxu1 %v5762_v15  ;;  %5740 = vmatprep.subr.bf16.mxu0 %v6173_v0  ;;  %v5816_v23 = vpack.c.bf16 %v3465_v21, %v3464_v20  ;;  %v3467_v20 = vld [vmem:[%s6264_s19 + $0x24] sm:$0x3] }
 0x109   : > { %5764 = vmatprep.subr.bf16.mxu1 %v6173_v0 }
 0x10b   : > { %5742 = vmatpush3.bf16.msra.mxu0 %v5741_v24  ;;  %v3468_v24 = vld [vmem:[%s6211_s15 + $0x900] sm:$0xff] }
 0x10c   : > { %5766 = vmatpush3.bf16.msra.mxu1 %v5765_v25  ;;  %5743 = vmatprep.subr.bf16.mxu0 %v6173_v0  ;;  %v3469_v25 = vld [vmem:[%s6211_s15 + $0x908] sm:$0xff] }
 0x10d   : > { %5767 = vmatprep.subr.bf16.mxu1 %v6173_v0  ;;  %v5819_v29 = vpack.c.bf16 %v3469_v25, %v3468_v24  ;;  %v3506_v24 = vld [vmem:[%s6211_s15 + $0xa10] sm:$0xff]  ;;  %v3507_v25 = vld [vmem:[%s6211_s15 + $0xa18] sm:$0xff] }
 0x10f   : > { %5745 = vmatpush3.bf16.msra.mxu0 %v5744_v30  ;;  %v3449_v30 = vld [vmem:[%s6264_s19 + $0x22] sm:$0x3] }
 0x110   : > { %5769 = vmatpush3.bf16.msra.mxu1 %v5768_v31  ;;  %5770 = vmatprep.subr.bf16.mxu0 %v6173_v0  ;;  %v5843_v31 = vpack.c.bf16 %v3487_v27, %v3486_v26  ;;  %v3524_v26 = vld [vmem:[%s6211_s15 + $0xa90] sm:$0xff]  ;;  %v3525_v27 = vld [vmem:[%s6211_s15 + $0xa98] sm:$0xff] }
 0x111   : > { %5794 = vmatprep.subr.bf16.mxu1 %v6173_v0 }
 0x112   : > { %4789 = vmatmul.mubr.f32.vlgmr.msra.gmra.mrb[14].mxu0 %v3395_v36  ;;  %v5822_v36 = vpack.c.bf16 %v3471_v33, %v3470_v32  ;;  %v3526_v32 = vld [vmem:[%s6211_s15 + $0xaa0] sm:$0xff]  ;;  %v3527_v33 = vld [vmem:[%s6211_s15 + $0xaa8] sm:$0xff] }
 0x113   : > { %4824 = vmatmul.mubr.f32.vlgmr.msra.gmra.mrb[14].mxu1 %v3413_v38  ;;  %5772 = vmatpush3.bf16.msra.mxu0 %v5771_v37  ;;  %v5846_v37 = vpack.c.bf16 %v3489_v35, %v3488_v34  ;;  %v3472_v38 = vld [vmem:[%s6211_s15 + $0x920] sm:$0xff]  ;;  %v5897_v35 = vpack.c.bf16 %v3527_v33, %v3526_v32 }
 0x114   : > { %5796 = vmatpush3.bf16.msra.mxu1 %v5795_v39  ;;  %5773 = vmatprep.subr.bf16.mxu0 %v6173_v0  ;;  %v3473_v39 = vld [vmem:[%s6211_s15 + $0x928] sm:$0xff] }
 0x115   : > { %5797 = vmatprep.subr.bf16.mxu1 %v6173_v0  ;;  %4858 = vmatprep.mubr.msk.f32.mxu0 %vm6174_vm0, %v6175_v1  ;;  %v5825_v42 = vpack.c.bf16 %v3473_v39, %v3472_v38  ;;  %v3528_v38 = vld [vmem:[%s6211_s15 + $0xab0] sm:$0xff]  ;;  %v3529_v39 = vld [vmem:[%s6211_s15 + $0xab8] sm:$0xff] }
 0x116   : > { %4893 = vmatprep.mubr.msk.f32.mxu1 %vm6174_vm0, %v6175_v1  ;;  %v5900_v41 = vpack.c.bf16 %v3529_v39, %v3528_v38 }
 0x117   : > { %5775 = vmatpush3.bf16.msra.mxu0 %v5774_v44  ;;  %v3474_v44 = vld [vmem:[%s6211_s15 + $0x930] sm:$0xff] }
 0x118   : > { %5799 = vmatpush3.bf16.msra.mxu1 %v5798_v45  ;;  %5776 = vmatprep.subr.bf16.mxu0 %v6173_v0  ;;  %v3475_v45 = vld [vmem:[%s6211_s15 + $0x938] sm:$0xff] }
 0x119   : > { %5800 = vmatprep.subr.bf16.mxu1 %v6173_v0  ;;  %v5828_v48 = vpack.c.bf16 %v3475_v45, %v3474_v44  ;;  %v3530_v44 = vld [vmem:[%s6211_s15 + $0xac0] sm:$0xff]  ;;  %v3531_v45 = vld [vmem:[%s6211_s15 + $0xac8] sm:$0xff] }
 0x11a   : > { %v5903_v47 = vpack.c.bf16 %v3531_v45, %v3530_v44 }
 0x11b   : > { %5778 = vmatpush3.bf16.msra.mxu0 %v5777_v50  ;;  %v3476_v50 = vld [vmem:[%s6211_s15 + $0x940] sm:$0xff] }
 0x11c   : > { %5802 = vmatpush3.bf16.msra.mxu1 %v5801_v51  ;;  %5779 = vmatprep.subr.bf16.mxu0 %v6173_v0  ;;  %v3477_v51 = vld [vmem:[%s6211_s15 + $0x948] sm:$0xff] }
 0x11d   : > { %5803 = vmatprep.subr.bf16.mxu1 %v6173_v0  ;;  %v5831_v54 = vpack.c.bf16 %v3477_v51, %v3476_v50  ;;  %v3532_v50 = vld [vmem:[%s6211_s15 + $0xad0] sm:$0xff]  ;;  %v3533_v51 = vld [vmem:[%s6211_s15 + $0xad8] sm:$0xff] }
 0x11e   : > { %v5906_v53 = vpack.c.bf16 %v3533_v51, %v3532_v50  ;;  %v3571_v50 = vld [vmem:[%s6211_s15 + $0xbe8] sm:$0xff] }
 0x11f   : > { %5781 = vmatpush3.bf16.msra.mxu0 %v5780_v56  ;;  %v3478_v56 = vld [vmem:[%s6211_s15 + $0x950] sm:$0xff] }
 0x120   : > { %5805 = vmatpush3.bf16.msra.mxu1 %v5804_v57  ;;  %5782 = vmatprep.subr.bf16.mxu0 %v6173_v0  ;;  %v3479_v57 = vld [vmem:[%s6211_s15 + $0x958] sm:$0xff] }
 0x121   : > { %5806 = vmatprep.subr.bf16.mxu1 %v6173_v0  ;;  %v5834_v60 = vpack.c.bf16 %v3479_v57, %v3478_v56  ;;  %v3534_v57 = vld [vmem:[%s6211_s15 + $0xae0] sm:$0xff] }
 0x123   : > { %5784 = vmatpush3.bf16.msra.mxu0 %v5783_v62  ;;  %v3480_v62 = vld [vmem:[%s6211_s15 + $0x960] sm:$0xff] }
 0x124   : > { %5808 = vmatpush3.bf16.msra.mxu1 %v5807_v63  ;;  %5785 = vmatprep.subr.bf16.mxu0 %v6173_v0  ;;  %v3481_v63 = vld [vmem:[%s6211_s15 + $0x968] sm:$0xff] }
 0x125   : > { %v436_v10 = vpop.f32.mrb[2].mxu0  ;;  %5809 = vmatprep.subr.bf16.mxu1 %v6173_v0  ;;  %v5837_v8 = vpack.c.bf16 %v3481_v63, %v3480_v62  ;;  %v5909_v63 = vpack.c.bf16 %v3535_v58, %v3534_v57  ;;  %v3555_v57 = vld [vmem:[%s6211_s15 + $0xb78] sm:$0xff]  ;;  %v3572_v58 = vld [vmem:[%s6211_s15 + $0xbf0] sm:$0xff] }
 0x126   : > { %3196 = vst [vmem:[%s6636_s22 + $0x4] sm:$0x3] %v436_v10  ;;  %v527_v13 = vpop.f32.mrb[2].mxu1  ;;  %v4370_v14 = vpop.f32.mrb[3].mxu0  ;;  %v3482_v10 = vld [vmem:[%s6211_s15 + $0x970] sm:$0xff] }
 0x127   : > { %3214 = vst [vmem:[%s6636_s22 + $0x6] sm:$0x3] %v527_v13  ;;  %v4405_v15 = vpop.f32.mrb[3].mxu1  ;;  %5787 = vmatpush3.bf16.msra.mxu0 %v5786_v6  ;;  %v3501_v13 = vld [vmem:[%s6211_s15 + $0x9f8] sm:$0xff]  ;;  %v5840_v14 = vpack.c.bf16 %v3483_v11, %v3482_v10  ;;  %v3558_v10 = vld [vmem:[%s6211_s15 + $0xb80] sm:$0xff]  ;;  %v3559_v11 = vld [vmem:[%s6211_s15 + $0xb88] sm:$0xff] }
 0x128   : > { %5811 = vmatpush3.bf16.msra.mxu1 %v5810_v7  ;;  %5788 = vmatprep.subr.bf16.mxu0 %v6173_v0  ;;  %v5864_v15 = vpack.c.bf16 %v3501_v13, %v3500_v12  ;;  %v3503_v12 = vld [vmem:[%s6264_s19 + $0x28] sm:$0x3] }
 0x129   : > { %5812 = vmatprep.subr.bf16.mxu1 %v6173_v0 }
 0x12b   : > { %5790 = vmatpush3.bf16.msra.mxu0 %v5789_v16  ;;  %v3504_v16 = vld [vmem:[%s6211_s15 + $0xa00] sm:$0xff] }
 0x12c   : > { %5814 = vmatpush3.bf16.msra.mxu1 %v5813_v17  ;;  %5791 = vmatprep.subr.bf16.mxu0 %v6173_v0  ;;  %v3505_v17 = vld [vmem:[%s6211_s15 + $0xa08] sm:$0xff] }
 0x12d   : > { %5815 = vmatprep.subr.bf16.mxu1 %v6173_v0  ;;  %v5867_v21 = vpack.c.bf16 %v3505_v17, %v3504_v16  ;;  %v3542_v16 = vld [vmem:[%s6211_s15 + $0xb10] sm:$0xff]  ;;  %v3543_v17 = vld [vmem:[%s6211_s15 + $0xb18] sm:$0xff] }
 0x12f   : > { %5793 = vmatpush3.bf16.msra.mxu0 %v5792_v22  ;;  %v3485_v22 = vld [vmem:[%s6264_s19 + $0x26] sm:$0x3] }
 0x130   : > { %5817 = vmatpush3.bf16.msra.mxu1 %v5816_v23  ;;  %5818 = vmatprep.subr.bf16.mxu0 %v6173_v0  ;;  %v5891_v23 = vpack.c.bf16 %v3523_v19, %v3522_v18  ;;  %v3560_v18 = vld [vmem:[%s6211_s15 + $0xb90] sm:$0xff]  ;;  %v3561_v19 = vld [vmem:[%s6211_s15 + $0xb98] sm:$0xff] }
 0x131   : > { %5842 = vmatprep.subr.bf16.mxu1 %v6173_v0 }
 0x132   : > { %4859 = vmatmul.mubr.f32.vlgmr.msra.gmra.mrb[16].mxu0 %v3431_v28  ;;  %v5870_v28 = vpack.c.bf16 %v3507_v25, %v3506_v24  ;;  %v3562_v24 = vld [vmem:[%s6211_s15 + $0xba0] sm:$0xff]  ;;  %v3563_v25 = vld [vmem:[%s6211_s15 + $0xba8] sm:$0xff] }
 0x133   : > { %4894 = vmatmul.mubr.f32.vlgmr.msra.gmra.mrb[16].mxu1 %v3449_v30  ;;  %5820 = vmatpush3.bf16.msra.mxu0 %v5819_v29  ;;  %v5894_v29 = vpack.c.bf16 %v3525_v27, %v3524_v26  ;;  %v3508_v30 = vld [vmem:[%s6211_s15 + $0xa20] sm:$0xff]  ;;  %v5945_v27 = vpack.c.bf16 %v3563_v25, %v3562_v24 }
 0x134   : > { %5844 = vmatpush3.bf16.msra.mxu1 %v5843_v31  ;;  %5821 = vmatprep.subr.bf16.mxu0 %v6173_v0  ;;  %v3509_v31 = vld [vmem:[%s6211_s15 + $0xa28] sm:$0xff] }
 0x135   : > { %5845 = vmatprep.subr.bf16.mxu1 %v6173_v0  ;;  %4928 = vmatprep.mubr.msk.f32.mxu0 %vm6174_vm0, %v6175_v1  ;;  %v5873_v34 = vpack.c.bf16 %v3509_v31, %v3508_v30  ;;  %v3564_v30 = vld [vmem:[%s6211_s15 + $0xbb0] sm:$0xff]  ;;  %v3565_v31 = vld [vmem:[%s6211_s15 + $0xbb8] sm:$0xff] }
 0x136   : > { %4963 = vmatprep.mubr.msk.f32.mxu1 %vm6174_vm0, %v6175_v1  ;;  %v5948_v33 = vpack.c.bf16 %v3565_v31, %v3564_v30 }
 0x137   : > { %5823 = vmatpush3.bf16.msra.mxu0 %v5822_v36  ;;  %v3510_v36 = vld [vmem:[%s6211_s15 + $0xa30] sm:$0xff] }
 0x138   : > { %5847 = vmatpush3.bf16.msra.mxu1 %v5846_v37  ;;  %5824 = vmatprep.subr.bf16.mxu0 %v6173_v0  ;;  %v3511_v37 = vld [vmem:[%s6211_s15 + $0xa38] sm:$0xff] }
 0x139   : > { %5848 = vmatprep.subr.bf16.mxu1 %v6173_v0  ;;  %v5876_v40 = vpack.c.bf16 %v3511_v37, %v3510_v36  ;;  %v3566_v36 = vld [vmem:[%s6211_s15 + $0xbc0] sm:$0xff]  ;;  %v3567_v37 = vld [vmem:[%s6211_s15 + $0xbc8] sm:$0xff] }
 0x13a   : > { %v5951_v39 = vpack.c.bf16 %v3567_v37, %v3566_v36 }
 0x13b   : > { %5826 = vmatpush3.bf16.msra.mxu0 %v5825_v42  ;;  %v3512_v42 = vld [vmem:[%s6211_s15 + $0xa40] sm:$0xff] }
 0x13c   : > { %5850 = vmatpush3.bf16.msra.mxu1 %v5849_v43  ;;  %5827 = vmatprep.subr.bf16.mxu0 %v6173_v0  ;;  %v3513_v43 = vld [vmem:[%s6211_s15 + $0xa48] sm:$0xff] }
 0x13d   : > { %5851 = vmatprep.subr.bf16.mxu1 %v6173_v0  ;;  %v5879_v46 = vpack.c.bf16 %v3513_v43, %v3512_v42  ;;  %v3568_v42 = vld [vmem:[%s6211_s15 + $0xbd0] sm:$0xff]  ;;  %v3569_v43 = vld [vmem:[%s6211_s15 + $0xbd8] sm:$0xff] }
 0x13e   : > { %v5954_v45 = vpack.c.bf16 %v3569_v43, %v3568_v42  ;;  %v3607_v42 = vld [vmem:[%s6211_s15 + $0xce8] sm:$0xff] }
 0x13f   : > { %5829 = vmatpush3.bf16.msra.mxu0 %v5828_v48  ;;  %v3514_v48 = vld [vmem:[%s6211_s15 + $0xa50] sm:$0xff] }
 0x140   : > { %5853 = vmatpush3.bf16.msra.mxu1 %v5852_v49  ;;  %5830 = vmatprep.subr.bf16.mxu0 %v6173_v0  ;;  %v3515_v49 = vld [vmem:[%s6211_s15 + $0xa58] sm:$0xff] }
 0x141   : > { %5854 = vmatprep.subr.bf16.mxu1 %v6173_v0  ;;  %v5882_v52 = vpack.c.bf16 %v3515_v49, %v3514_v48  ;;  %v3570_v49 = vld [vmem:[%s6211_s15 + $0xbe0] sm:$0xff] }
 0x143   : > { %5832 = vmatpush3.bf16.msra.mxu0 %v5831_v54  ;;  %v3516_v54 = vld [vmem:[%s6211_s15 + $0xa60] sm:$0xff] }
 0x144   : > { %5856 = vmatpush3.bf16.msra.mxu1 %v5855_v55  ;;  %5833 = vmatprep.subr.bf16.mxu0 %v6173_v0  ;;  %v3517_v55 = vld [vmem:[%s6211_s15 + $0xa68] sm:$0xff] }
 0x145   : > { %v618_v2 = vpop.f32.mrb[4].mxu0  ;;  %5857 = vmatprep.subr.bf16.mxu1 %v6173_v0  ;;  %v5885_v62 = vpack.c.bf16 %v3517_v55, %v3516_v54  ;;  %v5957_v55 = vpack.c.bf16 %v3571_v50, %v3570_v49  ;;  %v3591_v49 = vld [vmem:[%s6211_s15 + $0xc78] sm:$0xff]  ;;  %v3608_v50 = vld [vmem:[%s6211_s15 + $0xcf0] sm:$0xff] }
 0x146   : > { %3232 = vst [vmem:[%s6636_s22 + $0x8] sm:$0x3] %v618_v2  ;;  %v709_v5 = vpop.f32.mrb[4].mxu1  ;;  %v4440_v6 = vpop.f32.mrb[5].mxu0  ;;  %v3518_v2 = vld [vmem:[%s6211_s15 + $0xa70] sm:$0xff] }
 0x147   : > { %3250 = vst [vmem:[%s6636_s22 + $0xa] sm:$0x3] %v709_v5  ;;  %v4475_v7 = vpop.f32.mrb[5].mxu1  ;;  %5835 = vmatpush3.bf16.msra.mxu0 %v5834_v60  ;;  %v3537_v5 = vld [vmem:[%s6211_s15 + $0xaf8] sm:$0xff]  ;;  %v5888_v6 = vpack.c.bf16 %v3519_v3, %v3518_v2  ;;  %v3594_v2 = vld [vmem:[%s6211_s15 + $0xc80] sm:$0xff]  ;;  %v3595_v3 = vld [vmem:[%s6211_s15 + $0xc88] sm:$0xff] }
 0x148   : > { %5859 = vmatpush3.bf16.msra.mxu1 %v5858_v61  ;;  %5836 = vmatprep.subr.bf16.mxu0 %v6173_v0  ;;  %v5912_v7 = vpack.c.bf16 %v3537_v5, %v3536_v4  ;;  %v3539_v4 = vld [vmem:[%s6264_s19 + $0x2c] sm:$0x3] }
 0x149   : > { %5860 = vmatprep.subr.bf16.mxu1 %v6173_v0 }
 0x14b   : > { %5838 = vmatpush3.bf16.msra.mxu0 %v5837_v8  ;;  %v3540_v8 = vld [vmem:[%s6211_s15 + $0xb00] sm:$0xff] }
 0x14c   : > { %5862 = vmatpush3.bf16.msra.mxu1 %v5861_v9  ;;  %5839 = vmatprep.subr.bf16.mxu0 %v6173_v0  ;;  %v3541_v9 = vld [vmem:[%s6211_s15 + $0xb08] sm:$0xff] }
 0x14d   : > { %5863 = vmatprep.subr.bf16.mxu1 %v6173_v0  ;;  %v5915_v13 = vpack.c.bf16 %v3541_v9, %v3540_v8  ;;  %v3578_v8 = vld [vmem:[%s6211_s15 + $0xc10] sm:$0xff]  ;;  %v3579_v9 = vld [vmem:[%s6211_s15 + $0xc18] sm:$0xff] }
 0x14f   : > { %5841 = vmatpush3.bf16.msra.mxu0 %v5840_v14  ;;  %v3521_v14 = vld [vmem:[%s6264_s19 + $0x2a] sm:$0x3] }
 0x150   : > { %5865 = vmatpush3.bf16.msra.mxu1 %v5864_v15  ;;  %5866 = vmatprep.subr.bf16.mxu0 %v6173_v0  ;;  %v5939_v15 = vpack.c.bf16 %v3559_v11, %v3558_v10  ;;  %v3596_v10 = vld [vmem:[%s6211_s15 + $0xc90] sm:$0xff]  ;;  %v3597_v11 = vld [vmem:[%s6211_s15 + $0xc98] sm:$0xff] }
 0x151   : > { %5890 = vmatprep.subr.bf16.mxu1 %v6173_v0 }
 0x152   : > { %4929 = vmatmul.mubr.f32.vlgmr.msra.gmra.mrb[18].mxu0 %v3467_v20  ;;  %v5918_v20 = vpack.c.bf16 %v3543_v17, %v3542_v16  ;;  %v3598_v16 = vld [vmem:[%s6211_s15 + $0xca0] sm:$0xff]  ;;  %v3599_v17 = vld [vmem:[%s6211_s15 + $0xca8] sm:$0xff] }
 0x153   : > { %4964 = vmatmul.mubr.f32.vlgmr.msra.gmra.mrb[18].mxu1 %v3485_v22  ;;  %5868 = vmatpush3.bf16.msra.mxu0 %v5867_v21  ;;  %v5942_v21 = vpack.c.bf16 %v3561_v19, %v3560_v18  ;;  %v3544_v22 = vld [vmem:[%s6211_s15 + $0xb20] sm:$0xff]  ;;  %v5993_v19 = vpack.c.bf16 %v3599_v17, %v3598_v16 }
 0x154   : > { %5892 = vmatpush3.bf16.msra.mxu1 %v5891_v23  ;;  %5869 = vmatprep.subr.bf16.mxu0 %v6173_v0  ;;  %v3545_v23 = vld [vmem:[%s6211_s15 + $0xb28] sm:$0xff] }
 0x155   : > { %5893 = vmatprep.subr.bf16.mxu1 %v6173_v0  ;;  %4998 = vmatprep.mubr.msk.f32.mxu0 %vm6174_vm0, %v6175_v1  ;;  %v5921_v26 = vpack.c.bf16 %v3545_v23, %v3544_v22  ;;  %v3600_v22 = vld [vmem:[%s6211_s15 + $0xcb0] sm:$0xff]  ;;  %v3601_v23 = vld [vmem:[%s6211_s15 + $0xcb8] sm:$0xff] }
 0x156   : > { %5033 = vmatprep.mubr.msk.f32.mxu1 %vm6174_vm0, %v6175_v1  ;;  %v5996_v25 = vpack.c.bf16 %v3601_v23, %v3600_v22 }
 0x157   : > { %5871 = vmatpush3.bf16.msra.mxu0 %v5870_v28  ;;  %v3546_v28 = vld [vmem:[%s6211_s15 + $0xb30] sm:$0xff] }
 0x158   : > { %5895 = vmatpush3.bf16.msra.mxu1 %v5894_v29  ;;  %5872 = vmatprep.subr.bf16.mxu0 %v6173_v0  ;;  %v3547_v29 = vld [vmem:[%s6211_s15 + $0xb38] sm:$0xff] }
 0x159   : > { %5896 = vmatprep.subr.bf16.mxu1 %v6173_v0  ;;  %v5924_v32 = vpack.c.bf16 %v3547_v29, %v3546_v28  ;;  %v3602_v28 = vld [vmem:[%s6211_s15 + $0xcc0] sm:$0xff]  ;;  %v3603_v29 = vld [vmem:[%s6211_s15 + $0xcc8] sm:$0xff] }
 0x15a   : > { %v5999_v31 = vpack.c.bf16 %v3603_v29, %v3602_v28 }
 0x15b   : > { %5874 = vmatpush3.bf16.msra.mxu0 %v5873_v34  ;;  %v3548_v34 = vld [vmem:[%s6211_s15 + $0xb40] sm:$0xff] }
 0x15c   : > { %5898 = vmatpush3.bf16.msra.mxu1 %v5897_v35  ;;  %5875 = vmatprep.subr.bf16.mxu0 %v6173_v0  ;;  %v3549_v35 = vld [vmem:[%s6211_s15 + $0xb48] sm:$0xff] }
 0x15d   : > { %5899 = vmatprep.subr.bf16.mxu1 %v6173_v0  ;;  %v5927_v38 = vpack.c.bf16 %v3549_v35, %v3548_v34  ;;  %v3604_v34 = vld [vmem:[%s6211_s15 + $0xcd0] sm:$0xff]  ;;  %v3605_v35 = vld [vmem:[%s6211_s15 + $0xcd8] sm:$0xff] }
 0x15e   : > { %v6002_v37 = vpack.c.bf16 %v3605_v35, %v3604_v34  ;;  %v3643_v34 = vld [vmem:[%s6211_s15 + $0xde8] sm:$0xff] }
 0x15f   : > { %5877 = vmatpush3.bf16.msra.mxu0 %v5876_v40  ;;  %v3550_v40 = vld [vmem:[%s6211_s15 + $0xb50] sm:$0xff] }
 0x160   : > { %5901 = vmatpush3.bf16.msra.mxu1 %v5900_v41  ;;  %5878 = vmatprep.subr.bf16.mxu0 %v6173_v0  ;;  %v3551_v41 = vld [vmem:[%s6211_s15 + $0xb58] sm:$0xff] }
 0x161   : > { %5902 = vmatprep.subr.bf16.mxu1 %v6173_v0  ;;  %v5930_v44 = vpack.c.bf16 %v3551_v41, %v3550_v40  ;;  %v3606_v41 = vld [vmem:[%s6211_s15 + $0xce0] sm:$0xff] }
 0x163   : > { %5880 = vmatpush3.bf16.msra.mxu0 %v5879_v46  ;;  %v3552_v46 = vld [vmem:[%s6211_s15 + $0xb60] sm:$0xff] }
 0x164   : > { %5904 = vmatpush3.bf16.msra.mxu1 %v5903_v47  ;;  %5881 = vmatprep.subr.bf16.mxu0 %v6173_v0  ;;  %v3553_v47 = vld [vmem:[%s6211_s15 + $0xb68] sm:$0xff] }
 0x165   : > { %v800_v56 = vpop.f32.mrb[6].mxu0  ;;  %5905 = vmatprep.subr.bf16.mxu1 %v6173_v0  ;;  %v5933_v54 = vpack.c.bf16 %v3553_v47, %v3552_v46  ;;  %v6005_v47 = vpack.c.bf16 %v3607_v42, %v3606_v41  ;;  %v3627_v41 = vld [vmem:[%s6211_s15 + $0xd78] sm:$0xff]  ;;  %v3644_v42 = vld [vmem:[%s6211_s15 + $0xdf0] sm:$0xff] }
 0x166   : > { %3268 = vst [vmem:[%s6636_s22 + $0xc] sm:$0x3] %v800_v56  ;;  %v891_v59 = vpop.f32.mrb[6].mxu1  ;;  %v4510_v60 = vpop.f32.mrb[7].mxu0  ;;  %v3554_v56 = vld [vmem:[%s6211_s15 + $0xb70] sm:$0xff] }
 0x167   : > { %3286 = vst [vmem:[%s6636_s22 + $0xe] sm:$0x3] %v891_v59  ;;  %v4545_v61 = vpop.f32.mrb[7].mxu1  ;;  %5883 = vmatpush3.bf16.msra.mxu0 %v5882_v52  ;;  %v3573_v59 = vld [vmem:[%s6211_s15 + $0xbf8] sm:$0xff]  ;;  %v5936_v60 = vpack.c.bf16 %v3555_v57, %v3554_v56  ;;  %v3630_v56 = vld [vmem:[%s6211_s15 + $0xd80] sm:$0xff]  ;;  %v3631_v57 = vld [vmem:[%s6211_s15 + $0xd88] sm:$0xff] }
 0x168   : > { %5907 = vmatpush3.bf16.msra.mxu1 %v5906_v53  ;;  %5884 = vmatprep.subr.bf16.mxu0 %v6173_v0  ;;  %v5960_v61 = vpack.c.bf16 %v3573_v59, %v3572_v58  ;;  %v3575_v58 = vld [vmem:[%s6264_s19 + $0x30] sm:$0x3] }
 0x169   : > { %5908 = vmatprep.subr.bf16.mxu1 %v6173_v0 }
 0x16b   : > { %5886 = vmatpush3.bf16.msra.mxu0 %v5885_v62  ;;  %v3576_v62 = vld [vmem:[%s6211_s15 + $0xc00] sm:$0xff] }
 0x16c   : > { %5910 = vmatpush3.bf16.msra.mxu1 %v5909_v63  ;;  %5887 = vmatprep.subr.bf16.mxu0 %v6173_v0  ;;  %v3577_v63 = vld [vmem:[%s6211_s15 + $0xc08] sm:$0xff] }
 0x16d   : > { %5911 = vmatprep.subr.bf16.mxu1 %v6173_v0  ;;  %v5963_v5 = vpack.c.bf16 %v3577_v63, %v3576_v62  ;;  %v3614_v62 = vld [vmem:[%s6211_s15 + $0xd10] sm:$0xff]  ;;  %v3615_v63 = vld [vmem:[%s6211_s15 + $0xd18] sm:$0xff] }
 0x16f   : > { %5889 = vmatpush3.bf16.msra.mxu0 %v5888_v6  ;;  %v3557_v6 = vld [vmem:[%s6264_s19 + $0x2e] sm:$0x3] }
 0x170   : > { %5913 = vmatpush3.bf16.msra.mxu1 %v5912_v7  ;;  %5914 = vmatprep.subr.bf16.mxu0 %v6173_v0  ;;  %v5987_v7 = vpack.c.bf16 %v3595_v3, %v3594_v2  ;;  %v3632_v2 = vld [vmem:[%s6211_s15 + $0xd90] sm:$0xff]  ;;  %v3633_v3 = vld [vmem:[%s6211_s15 + $0xd98] sm:$0xff] }
 0x171   : > { %5938 = vmatprep.subr.bf16.mxu1 %v6173_v0 }
 0x172   : > { %4999 = vmatmul.mubr.f32.vlgmr.msra.gmra.mrb[20].mxu0 %v3503_v12  ;;  %v5966_v12 = vpack.c.bf16 %v3579_v9, %v3578_v8  ;;  %v3634_v8 = vld [vmem:[%s6211_s15 + $0xda0] sm:$0xff]  ;;  %v3635_v9 = vld [vmem:[%s6211_s15 + $0xda8] sm:$0xff] }
 0x173   : > { %5034 = vmatmul.mubr.f32.vlgmr.msra.gmra.mrb[20].mxu1 %v3521_v14  ;;  %5916 = vmatpush3.bf16.msra.mxu0 %v5915_v13  ;;  %v5990_v13 = vpack.c.bf16 %v3597_v11, %v3596_v10  ;;  %v3580_v14 = vld [vmem:[%s6211_s15 + $0xc20] sm:$0xff]  ;;  %v6041_v11 = vpack.c.bf16 %v3635_v9, %v3634_v8 }
 0x174   : > { %5940 = vmatpush3.bf16.msra.mxu1 %v5939_v15  ;;  %5917 = vmatprep.subr.bf16.mxu0 %v6173_v0  ;;  %v3581_v15 = vld [vmem:[%s6211_s15 + $0xc28] sm:$0xff] }
 0x175   : > { %5941 = vmatprep.subr.bf16.mxu1 %v6173_v0  ;;  %5068 = vmatprep.mubr.msk.f32.mxu0 %vm6174_vm0, %v6175_v1  ;;  %v5969_v18 = vpack.c.bf16 %v3581_v15, %v3580_v14  ;;  %v3636_v14 = vld [vmem:[%s6211_s15 + $0xdb0] sm:$0xff]  ;;  %v3637_v15 = vld [vmem:[%s6211_s15 + $0xdb8] sm:$0xff] }
 0x176   : > { %5103 = vmatprep.mubr.msk.f32.mxu1 %vm6174_vm0, %v6175_v1  ;;  %v6044_v17 = vpack.c.bf16 %v3637_v15, %v3636_v14 }
 0x177   : > { %5919 = vmatpush3.bf16.msra.mxu0 %v5918_v20  ;;  %v3582_v20 = vld [vmem:[%s6211_s15 + $0xc30] sm:$0xff] }
 0x178   : > { %5943 = vmatpush3.bf16.msra.mxu1 %v5942_v21  ;;  %5920 = vmatprep.subr.bf16.mxu0 %v6173_v0  ;;  %v3583_v21 = vld [vmem:[%s6211_s15 + $0xc38] sm:$0xff] }
 0x179   : > { %5944 = vmatprep.subr.bf16.mxu1 %v6173_v0  ;;  %v5972_v24 = vpack.c.bf16 %v3583_v21, %v3582_v20  ;;  %v3638_v20 = vld [vmem:[%s6211_s15 + $0xdc0] sm:$0xff]  ;;  %v3639_v21 = vld [vmem:[%s6211_s15 + $0xdc8] sm:$0xff] }
 0x17a   : > { %v6047_v23 = vpack.c.bf16 %v3639_v21, %v3638_v20 }
 0x17b   : > { %5922 = vmatpush3.bf16.msra.mxu0 %v5921_v26  ;;  %v3584_v26 = vld [vmem:[%s6211_s15 + $0xc40] sm:$0xff] }
 0x17c   : > { %5946 = vmatpush3.bf16.msra.mxu1 %v5945_v27  ;;  %5923 = vmatprep.subr.bf16.mxu0 %v6173_v0  ;;  %v3585_v27 = vld [vmem:[%s6211_s15 + $0xc48] sm:$0xff] }
 0x17d   : > { %5947 = vmatprep.subr.bf16.mxu1 %v6173_v0  ;;  %v5975_v30 = vpack.c.bf16 %v3585_v27, %v3584_v26  ;;  %v3640_v26 = vld [vmem:[%s6211_s15 + $0xdd0] sm:$0xff]  ;;  %v3641_v27 = vld [vmem:[%s6211_s15 + $0xdd8] sm:$0xff] }
 0x17e   : > { %v6050_v29 = vpack.c.bf16 %v3641_v27, %v3640_v26  ;;  %v3679_v26 = vld [vmem:[%s6211_s15 + $0xee8] sm:$0xff] }
 0x17f   : > { %5925 = vmatpush3.bf16.msra.mxu0 %v5924_v32  ;;  %v3586_v32 = vld [vmem:[%s6211_s15 + $0xc50] sm:$0xff] }
 0x180   : > { %5949 = vmatpush3.bf16.msra.mxu1 %v5948_v33  ;;  %5926 = vmatprep.subr.bf16.mxu0 %v6173_v0  ;;  %v3587_v33 = vld [vmem:[%s6211_s15 + $0xc58] sm:$0xff] }
 0x181   : > { %5950 = vmatprep.subr.bf16.mxu1 %v6173_v0  ;;  %v5978_v36 = vpack.c.bf16 %v3587_v33, %v3586_v32  ;;  %v3642_v33 = vld [vmem:[%s6211_s15 + $0xde0] sm:$0xff] }
 0x183   : > { %5928 = vmatpush3.bf16.msra.mxu0 %v5927_v38  ;;  %v3588_v38 = vld [vmem:[%s6211_s15 + $0xc60] sm:$0xff] }
 0x184   : > { %5952 = vmatpush3.bf16.msra.mxu1 %v5951_v39  ;;  %5929 = vmatprep.subr.bf16.mxu0 %v6173_v0  ;;  %v3589_v39 = vld [vmem:[%s6211_s15 + $0xc68] sm:$0xff] }
 0x185   : > { %v982_v48 = vpop.f32.mrb[8].mxu0  ;;  %5953 = vmatprep.subr.bf16.mxu1 %v6173_v0  ;;  %v5981_v46 = vpack.c.bf16 %v3589_v39, %v3588_v38  ;;  %v6053_v39 = vpack.c.bf16 %v3643_v34, %v3642_v33  ;;  %v3663_v33 = vld [vmem:[%s6211_s15 + $0xe78] sm:$0xff]  ;;  %v3680_v34 = vld [vmem:[%s6211_s15 + $0xef0] sm:$0xff] }
 0x186   : > { %3304 = vst [vmem:[%s6636_s22 + $0x10] sm:$0x3] %v982_v48  ;;  %v1073_v51 = vpop.f32.mrb[8].mxu1  ;;  %v4580_v52 = vpop.f32.mrb[9].mxu0  ;;  %v3590_v48 = vld [vmem:[%s6211_s15 + $0xc70] sm:$0xff] }
 0x187   : > { %3322 = vst [vmem:[%s6636_s22 + $0x12] sm:$0x3] %v1073_v51  ;;  %v4615_v53 = vpop.f32.mrb[9].mxu1  ;;  %5931 = vmatpush3.bf16.msra.mxu0 %v5930_v44  ;;  %v3609_v51 = vld [vmem:[%s6211_s15 + $0xcf8] sm:$0xff]  ;;  %v5984_v52 = vpack.c.bf16 %v3591_v49, %v3590_v48  ;;  %v3666_v48 = vld [vmem:[%s6211_s15 + $0xe80] sm:$0xff]  ;;  %v3667_v49 = vld [vmem:[%s6211_s15 + $0xe88] sm:$0xff] }
 0x188   : > { %5955 = vmatpush3.bf16.msra.mxu1 %v5954_v45  ;;  %5932 = vmatprep.subr.bf16.mxu0 %v6173_v0  ;;  %v6008_v53 = vpack.c.bf16 %v3609_v51, %v3608_v50  ;;  %v3611_v50 = vld [vmem:[%s6264_s19 + $0x34] sm:$0x3] }
 0x189   : > { %5956 = vmatprep.subr.bf16.mxu1 %v6173_v0 }
 0x18b   : > { %5934 = vmatpush3.bf16.msra.mxu0 %v5933_v54  ;;  %v3612_v54 = vld [vmem:[%s6211_s15 + $0xd00] sm:$0xff] }
 0x18c   : > { %5958 = vmatpush3.bf16.msra.mxu1 %v5957_v55  ;;  %5935 = vmatprep.subr.bf16.mxu0 %v6173_v0  ;;  %v3613_v55 = vld [vmem:[%s6211_s15 + $0xd08] sm:$0xff] }
 0x18d   : > { %5959 = vmatprep.subr.bf16.mxu1 %v6173_v0  ;;  %v6011_v59 = vpack.c.bf16 %v3613_v55, %v3612_v54  ;;  %v3650_v54 = vld [vmem:[%s6211_s15 + $0xe10] sm:$0xff]  ;;  %v3651_v55 = vld [vmem:[%s6211_s15 + $0xe18] sm:$0xff] }
 0x18f   : > { %5937 = vmatpush3.bf16.msra.mxu0 %v5936_v60  ;;  %v3593_v60 = vld [vmem:[%s6264_s19 + $0x32] sm:$0x3] }
 0x190   : > { %5961 = vmatpush3.bf16.msra.mxu1 %v5960_v61  ;;  %5962 = vmatprep.subr.bf16.mxu0 %v6173_v0  ;;  %v6035_v61 = vpack.c.bf16 %v3631_v57, %v3630_v56  ;;  %v3668_v56 = vld [vmem:[%s6211_s15 + $0xe90] sm:$0xff]  ;;  %v3669_v57 = vld [vmem:[%s6211_s15 + $0xe98] sm:$0xff] }
 0x191   : > { %5986 = vmatprep.subr.bf16.mxu1 %v6173_v0 }
 0x192   : > { %5069 = vmatmul.mubr.f32.vlgmr.msra.gmra.mrb[22].mxu0 %v3539_v4  ;;  %v6014_v4 = vpack.c.bf16 %v3615_v63, %v3614_v62  ;;  %v3670_v62 = vld [vmem:[%s6211_s15 + $0xea0] sm:$0xff]  ;;  %v3671_v63 = vld [vmem:[%s6211_s15 + $0xea8] sm:$0xff] }
 0x193   : > { %5104 = vmatmul.mubr.f32.vlgmr.msra.gmra.mrb[22].mxu1 %v3557_v6  ;;  %5964 = vmatpush3.bf16.msra.mxu0 %v5963_v5  ;;  %v6038_v5 = vpack.c.bf16 %v3633_v3, %v3632_v2  ;;  %v3616_v6 = vld [vmem:[%s6211_s15 + $0xd20] sm:$0xff]  ;;  %v6089_v3 = vpack.c.bf16 %v3671_v63, %v3670_v62 }
 0x194   : > { %5988 = vmatpush3.bf16.msra.mxu1 %v5987_v7  ;;  %5965 = vmatprep.subr.bf16.mxu0 %v6173_v0  ;;  %v3617_v7 = vld [vmem:[%s6211_s15 + $0xd28] sm:$0xff]  ;;  %v3692_v63 = vld [vmem:[%s6211_s15 + $0xf40] sm:$0xff] }
 0x195   : > { %5989 = vmatprep.subr.bf16.mxu1 %v6173_v0  ;;  %5138 = vmatprep.mubr.msk.f32.mxu0 %vm6174_vm0, %v6175_v1  ;;  %v6017_v10 = vpack.c.bf16 %v3617_v7, %v3616_v6  ;;  %v3672_v6 = vld [vmem:[%s6211_s15 + $0xeb0] sm:$0xff]  ;;  %v3673_v7 = vld [vmem:[%s6211_s15 + $0xeb8] sm:$0xff] }
 0x196   : > { %5173 = vmatprep.mubr.msk.f32.mxu1 %vm6174_vm0, %v6175_v1  ;;  %v6092_v9 = vpack.c.bf16 %v3673_v7, %v3672_v6  ;;  %v3694_v7 = vld [vmem:[%s6211_s15 + $0xf50] sm:$0xff] }
 0x197   : > { %5967 = vmatpush3.bf16.msra.mxu0 %v5966_v12  ;;  %v3618_v12 = vld [vmem:[%s6211_s15 + $0xd30] sm:$0xff] }
 0x198   : > { %5991 = vmatpush3.bf16.msra.mxu1 %v5990_v13  ;;  %5968 = vmatprep.subr.bf16.mxu0 %v6173_v0  ;;  %v3619_v13 = vld [vmem:[%s6211_s15 + $0xd38] sm:$0xff] }
 0x199   : > { %5992 = vmatprep.subr.bf16.mxu1 %v6173_v0  ;;  %v6020_v16 = vpack.c.bf16 %v3619_v13, %v3618_v12  ;;  %v3674_v12 = vld [vmem:[%s6211_s15 + $0xec0] sm:$0xff]  ;;  %v3675_v13 = vld [vmem:[%s6211_s15 + $0xec8] sm:$0xff] }
 0x19a   : > { %v6095_v15 = vpack.c.bf16 %v3675_v13, %v3674_v12  ;;  %v3696_v13 = vld [vmem:[%s6211_s15 + $0xf60] sm:$0xff] }
 0x19b   : > { %5970 = vmatpush3.bf16.msra.mxu0 %v5969_v18  ;;  %v3620_v18 = vld [vmem:[%s6211_s15 + $0xd40] sm:$0xff] }
 0x19c   : > { %5994 = vmatpush3.bf16.msra.mxu1 %v5993_v19  ;;  %5971 = vmatprep.subr.bf16.mxu0 %v6173_v0  ;;  %v3621_v19 = vld [vmem:[%s6211_s15 + $0xd48] sm:$0xff] }
 0x19d   : > { %5995 = vmatprep.subr.bf16.mxu1 %v6173_v0  ;;  %v6023_v22 = vpack.c.bf16 %v3621_v19, %v3620_v18  ;;  %v3676_v18 = vld [vmem:[%s6211_s15 + $0xed0] sm:$0xff]  ;;  %v3677_v19 = vld [vmem:[%s6211_s15 + $0xed8] sm:$0xff] }
 0x19e   : > { %v6098_v21 = vpack.c.bf16 %v3677_v19, %v3676_v18 }
 0x19f   : > { %5973 = vmatpush3.bf16.msra.mxu0 %v5972_v24  ;;  %v3622_v24 = vld [vmem:[%s6211_s15 + $0xd50] sm:$0xff] }
 0x1a0   : > { %5997 = vmatpush3.bf16.msra.mxu1 %v5996_v25  ;;  %5974 = vmatprep.subr.bf16.mxu0 %v6173_v0  ;;  %v3623_v25 = vld [vmem:[%s6211_s15 + $0xd58] sm:$0xff] }
 0x1a1   : > { %5998 = vmatprep.subr.bf16.mxu1 %v6173_v0  ;;  %v6026_v28 = vpack.c.bf16 %v3623_v25, %v3622_v24  ;;  %v3678_v25 = vld [vmem:[%s6211_s15 + $0xee0] sm:$0xff] }
 0x1a3   : > { %5976 = vmatpush3.bf16.msra.mxu0 %v5975_v30  ;;  %v3624_v30 = vld [vmem:[%s6211_s15 + $0xd60] sm:$0xff] }
 0x1a4   : > { %6000 = vmatpush3.bf16.msra.mxu1 %v5999_v31  ;;  %5977 = vmatprep.subr.bf16.mxu0 %v6173_v0  ;;  %v3625_v31 = vld [vmem:[%s6211_s15 + $0xd68] sm:$0xff] }
 0x1a5   : > { %v1164_v40 = vpop.f32.mrb[10].mxu0  ;;  %6001 = vmatprep.subr.bf16.mxu1 %v6173_v0  ;;  %v6029_v38 = vpack.c.bf16 %v3625_v31, %v3624_v30  ;;  %v6101_v31 = vpack.c.bf16 %v3679_v26, %v3678_v25  ;;  %v3716_v25 = vld [vmem:[%s6211_s15 + $0xff0] sm:$0xff]  ;;  %v3717_v26 = vld [vmem:[%s6211_s15 + $0xff8] sm:$0xff] }
 0x1a6   : > { %3340 = vst [vmem:[%s6636_s22 + $0x14] sm:$0x3] %v1164_v40  ;;  %v1255_v43 = vpop.f32.mrb[10].mxu1  ;;  %v4650_v44 = vpop.f32.mrb[11].mxu0  ;;  %v3626_v40 = vld [vmem:[%s6211_s15 + $0xd70] sm:$0xff] }
 0x1a7   : > { %3358 = vst [vmem:[%s6636_s22 + $0x16] sm:$0x3] %v1255_v43  ;;  %v4685_v45 = vpop.f32.mrb[11].mxu1  ;;  %5979 = vmatpush3.bf16.msra.mxu0 %v5978_v36  ;;  %v3645_v43 = vld [vmem:[%s6211_s15 + $0xdf8] sm:$0xff]  ;;  %v6032_v44 = vpack.c.bf16 %v3627_v41, %v3626_v40  ;;  %v3702_v40 = vld [vmem:[%s6211_s15 + $0xf80] sm:$0xff]  ;;  %v3703_v41 = vld [vmem:[%s6211_s15 + $0xf88] sm:$0xff] }
 0x1a8   : > { %6003 = vmatpush3.bf16.msra.mxu1 %v6002_v37  ;;  %5980 = vmatprep.subr.bf16.mxu0 %v6173_v0  ;;  %v6056_v45 = vpack.c.bf16 %v3645_v43, %v3644_v42  ;;  %v3647_v42 = vld [vmem:[%s6264_s19 + $0x38] sm:$0x3] }
 0x1a9   : > { %6004 = vmatprep.subr.bf16.mxu1 %v6173_v0 }
 0x1ab   : > { %5982 = vmatpush3.bf16.msra.mxu0 %v5981_v46  ;;  %v3648_v46 = vld [vmem:[%s6211_s15 + $0xe00] sm:$0xff] }
 0x1ac   : > { %6006 = vmatpush3.bf16.msra.mxu1 %v6005_v47  ;;  %5983 = vmatprep.subr.bf16.mxu0 %v6173_v0  ;;  %v3649_v47 = vld [vmem:[%s6211_s15 + $0xe08] sm:$0xff] }
 0x1ad   : > { %6007 = vmatprep.subr.bf16.mxu1 %v6173_v0  ;;  %v6059_v51 = vpack.c.bf16 %v3649_v47, %v3648_v46  ;;  %v3686_v46 = vld [vmem:[%s6211_s15 + $0xf10] sm:$0xff]  ;;  %v3687_v47 = vld [vmem:[%s6211_s15 + $0xf18] sm:$0xff] }
 0x1af   : > { %5985 = vmatpush3.bf16.msra.mxu0 %v5984_v52  ;;  %v3629_v52 = vld [vmem:[%s6264_s19 + $0x36] sm:$0x3] }
 0x1b0   : > { %6009 = vmatpush3.bf16.msra.mxu1 %v6008_v53  ;;  %6010 = vmatprep.subr.bf16.mxu0 %v6173_v0  ;;  %v6083_v53 = vpack.c.bf16 %v3667_v49, %v3666_v48  ;;  %v3704_v48 = vld [vmem:[%s6211_s15 + $0xf90] sm:$0xff]  ;;  %v3705_v49 = vld [vmem:[%s6211_s15 + $0xf98] sm:$0xff] }
 0x1b1   : > { %6034 = vmatprep.subr.bf16.mxu1 %v6173_v0 }
 0x1b2   : > { %5139 = vmatmul.mubr.f32.vlgmr.msra.gmra.mrb[24].mxu0 %v3575_v58  ;;  %v6062_v58 = vpack.c.bf16 %v3651_v55, %v3650_v54  ;;  %v3706_v54 = vld [vmem:[%s6211_s15 + $0xfa0] sm:$0xff]  ;;  %v3707_v55 = vld [vmem:[%s6211_s15 + $0xfa8] sm:$0xff] }
 0x1b3   : > { %5174 = vmatmul.mubr.f32.vlgmr.msra.gmra.mrb[24].mxu1 %v3593_v60  ;;  %6012 = vmatpush3.bf16.msra.mxu0 %v6011_v59  ;;  %v6086_v59 = vpack.c.bf16 %v3669_v57, %v3668_v56  ;;  %v3652_v60 = vld [vmem:[%s6211_s15 + $0xe20] sm:$0xff]  ;;  %v6137_v57 = vpack.c.bf16 %v3707_v55, %v3706_v54 }
 0x1b4   : > { %6036 = vmatpush3.bf16.msra.mxu1 %v6035_v61  ;;  %6013 = vmatprep.subr.bf16.mxu0 %v6173_v0  ;;  %v3653_v61 = vld [vmem:[%s6211_s15 + $0xe28] sm:$0xff] }
 0x1b5   : > { %6037 = vmatprep.subr.bf16.mxu1 %v6173_v0  ;;  %5208 = vmatprep.mubr.msk.f32.mxu0 %vm6174_vm0, %v6175_v1  ;;  %v6065_v2 = vpack.c.bf16 %v3653_v61, %v3652_v60  ;;  %v3708_v60 = vld [vmem:[%s6211_s15 + $0xfb0] sm:$0xff]  ;;  %v3709_v61 = vld [vmem:[%s6211_s15 + $0xfb8] sm:$0xff] }
 0x1b6   : > { %5243 = vmatprep.mubr.msk.f32.mxu1 %vm6174_vm0, %v6175_v1  ;;  %v6140_v62 = vpack.c.bf16 %v3709_v61, %v3708_v60 }
 0x1b7   : > { %6015 = vmatpush3.bf16.msra.mxu0 %v6014_v4  ;;  %v3654_v4 = vld [vmem:[%s6211_s15 + $0xe30] sm:$0xff] }
 0x1b8   : > { %6039 = vmatpush3.bf16.msra.mxu1 %v6038_v5  ;;  %6016 = vmatprep.subr.bf16.mxu0 %v6173_v0  ;;  %v3655_v5 = vld [vmem:[%s6211_s15 + $0xe38] sm:$0xff] }
 0x1b9   : > { %6040 = vmatprep.subr.bf16.mxu1 %v6173_v0  ;;  %v6068_v8 = vpack.c.bf16 %v3655_v5, %v3654_v4  ;;  %v3711_v4 = vld [vmem:[%s6211_s15 + $0xfc8] sm:$0xff] }
 0x1bb   : > { %6018 = vmatpush3.bf16.msra.mxu0 %v6017_v10  ;;  %v3656_v10 = vld [vmem:[%s6211_s15 + $0xe40] sm:$0xff] }
 0x1bc   : > { %6042 = vmatpush3.bf16.msra.mxu1 %v6041_v11  ;;  %6019 = vmatprep.subr.bf16.mxu0 %v6173_v0  ;;  %v3657_v11 = vld [vmem:[%s6211_s15 + $0xe48] sm:$0xff] }
 0x1bd   : > { %6043 = vmatprep.subr.bf16.mxu1 %v6173_v0  ;;  %v6071_v14 = vpack.c.bf16 %v3657_v11, %v3656_v10  ;;  %v3713_v10 = vld [vmem:[%s6211_s15 + $0xfd8] sm:$0xff] }
 0x1bf   : > { %6021 = vmatpush3.bf16.msra.mxu0 %v6020_v16  ;;  %v3658_v16 = vld [vmem:[%s6211_s15 + $0xe50] sm:$0xff] }
 0x1c0   : > { %6045 = vmatpush3.bf16.msra.mxu1 %v6044_v17  ;;  %6022 = vmatprep.subr.bf16.mxu0 %v6173_v0  ;;  %v3659_v17 = vld [vmem:[%s6211_s15 + $0xe58] sm:$0xff] }
 0x1c1   : > { %6046 = vmatprep.subr.bf16.mxu1 %v6173_v0  ;;  %v6074_v20 = vpack.c.bf16 %v3659_v17, %v3658_v16  ;;  %v3714_v16 = vld [vmem:[%s6211_s15 + $0xfe0] sm:$0xff]  ;;  %v3715_v17 = vld [vmem:[%s6211_s15 + $0xfe8] sm:$0xff] }
 0x1c3   : > { %6024 = vmatpush3.bf16.msra.mxu0 %v6023_v22  ;;  %v3660_v22 = vld [vmem:[%s6211_s15 + $0xe60] sm:$0xff] }
 0x1c4   : > { %6048 = vmatpush3.bf16.msra.mxu1 %v6047_v23  ;;  %6025 = vmatprep.subr.bf16.mxu0 %v6173_v0  ;;  %v3661_v23 = vld [vmem:[%s6211_s15 + $0xe68] sm:$0xff] }
 0x1c5   : > { %v1346_v32 = vpop.f32.mrb[12].mxu0  ;;  %6049 = vmatprep.subr.bf16.mxu1 %v6173_v0  ;;  %v6077_v30 = vpack.c.bf16 %v3661_v23, %v3660_v22  ;;  %v6149_v22 = vpack.c.bf16 %v3715_v17, %v3714_v16  ;;  %v3698_v23 = vld [vmem:[%s6211_s15 + $0xf70] sm:$0xff] }
 0x1c6   : > { %3376 = vst [vmem:[%s6636_s22 + $0x18] sm:$0x3] %v1346_v32  ;;  %v1437_v35 = vpop.f32.mrb[12].mxu1  ;;  %v4720_v36 = vpop.f32.mrb[13].mxu0  ;;  %v3662_v32 = vld [vmem:[%s6211_s15 + $0xe70] sm:$0xff] }
 0x1c7   : > { %3394 = vst [vmem:[%s6636_s22 + $0x1a] sm:$0x3] %v1437_v35  ;;  %v4755_v37 = vpop.f32.mrb[13].mxu1  ;;  %6027 = vmatpush3.bf16.msra.mxu0 %v6026_v28  ;;  %v3681_v35 = vld [vmem:[%s6211_s15 + $0xef8] sm:$0xff]  ;;  %v6080_v36 = vpack.c.bf16 %v3663_v33, %v3662_v32 }
 0x1c8   : > { %6051 = vmatpush3.bf16.msra.mxu1 %v6050_v29  ;;  %6028 = vmatprep.subr.bf16.mxu0 %v6173_v0  ;;  %v6104_v37 = vpack.c.bf16 %v3681_v35, %v3680_v34 }
 0x1c9   : > { %6052 = vmatprep.subr.bf16.mxu1 %v6173_v0 }
 0x1cb   : > { %6030 = vmatpush3.bf16.msra.mxu0 %v6029_v38  ;;  %v3684_v38 = vld [vmem:[%s6211_s15 + $0xf00] sm:$0xff] }
 0x1cc   : > { %6054 = vmatpush3.bf16.msra.mxu1 %v6053_v39  ;;  %6031 = vmatprep.subr.bf16.mxu0 %v6173_v0  ;;  %v3685_v39 = vld [vmem:[%s6211_s15 + $0xf08] sm:$0xff] }
 0x1cd   : > { %6055 = vmatprep.subr.bf16.mxu1 %v6173_v0  ;;  %v6107_v43 = vpack.c.bf16 %v3685_v39, %v3684_v38 }
 0x1cf   : > { %6033 = vmatpush3.bf16.msra.mxu0 %v6032_v44  ;;  %v3665_v44 = vld [vmem:[%s6264_s19 + $0x3a] sm:$0x3] }
 0x1d0   : > { %6057 = vmatpush3.bf16.msra.mxu1 %v6056_v45  ;;  %6058 = vmatprep.subr.bf16.mxu0 %v6173_v0  ;;  %v6131_v45 = vpack.c.bf16 %v3703_v41, %v3702_v40 }
 0x1d1   : > { %6082 = vmatprep.subr.bf16.mxu1 %v6173_v0 }
 0x1d2   : > { %5209 = vmatmul.mubr.f32.vlgmr.msra.gmra.mrb[26].mxu0 %v3611_v50  ;;  %v6110_v50 = vpack.c.bf16 %v3687_v47, %v3686_v46 }
 0x1d3   : > { %5244 = vmatmul.mubr.f32.vlgmr.msra.gmra.mrb[26].mxu1 %v3629_v52  ;;  %6060 = vmatpush3.bf16.msra.mxu0 %v6059_v51  ;;  %v6134_v51 = vpack.c.bf16 %v3705_v49, %v3704_v48  ;;  %v3688_v52 = vld [vmem:[%s6211_s15 + $0xf20] sm:$0xff] }
 0x1d4   : > { %6084 = vmatpush3.bf16.msra.mxu1 %v6083_v53  ;;  %6061 = vmatprep.subr.bf16.mxu0 %v6173_v0  ;;  %v3689_v53 = vld [vmem:[%s6211_s15 + $0xf28] sm:$0xff] }
 0x1d5   : > { %6085 = vmatprep.subr.bf16.mxu1 %v6173_v0  ;;  %5278 = vmatprep.mubr.msk.f32.mxu0 %vm6174_vm0, %v6175_v1  ;;  %v6113_v56 = vpack.c.bf16 %v3689_v53, %v3688_v52 }
 0x1d6   : > { %5313 = vmatprep.mubr.msk.f32.mxu1 %vm6174_vm0, %v6175_v1 }
 0x1d7   : > { %6063 = vmatpush3.bf16.msra.mxu0 %v6062_v58  ;;  %v3690_v58 = vld [vmem:[%s6211_s15 + $0xf30] sm:$0xff] }
 0x1d8   : > { %6087 = vmatpush3.bf16.msra.mxu1 %v6086_v59  ;;  %6064 = vmatprep.subr.bf16.mxu0 %v6173_v0  ;;  %v3691_v59 = vld [vmem:[%s6211_s15 + $0xf38] sm:$0xff] }
 0x1d9   : > { %6088 = vmatprep.subr.bf16.mxu1 %v6173_v0 }
 0x1db   : > { %6066 = vmatpush3.bf16.msra.mxu0 %v6065_v2  ;;  %v3693_v2 = vld [vmem:[%s6211_s15 + $0xf48] sm:$0xff] }
 0x1dc   : > { %6090 = vmatpush3.bf16.msra.mxu1 %v6089_v3  ;;  %6067 = vmatprep.subr.bf16.mxu0 %v6173_v0  ;;  %v3710_v3 = vld [vmem:[%s6211_s15 + $0xfc0] sm:$0xff]  ;;  %v6119_v5 = vpack.c.bf16 %v3693_v2, %v3692_v63 }
 0x1dd   : > { %6091 = vmatprep.subr.bf16.mxu1 %v6173_v0  ;;  %v6143_v6 = vpack.c.bf16 %v3711_v4, %v3710_v3 }
 0x1df   : > { %6069 = vmatpush3.bf16.msra.mxu0 %v6068_v8  ;;  %v3695_v8 = vld [vmem:[%s6211_s15 + $0xf58] sm:$0xff] }
 0x1e0   : > { %6093 = vmatpush3.bf16.msra.mxu1 %v6092_v9  ;;  %6070 = vmatprep.subr.bf16.mxu0 %v6173_v0  ;;  %v3712_v9 = vld [vmem:[%s6211_s15 + $0xfd0] sm:$0xff]  ;;  %v6122_v11 = vpack.c.bf16 %v3695_v8, %v3694_v7 }
 0x1e1   : > { %6094 = vmatprep.subr.bf16.mxu1 %v6173_v0  ;;  %v6146_v12 = vpack.c.bf16 %v3713_v10, %v3712_v9 }
 0x1e3   : > { %6072 = vmatpush3.bf16.msra.mxu0 %v6071_v14  ;;  %v3697_v14 = vld [vmem:[%s6211_s15 + $0xf68] sm:$0xff] }
 0x1e4   : > { %6096 = vmatpush3.bf16.msra.mxu1 %v6095_v15  ;;  %6073 = vmatprep.subr.bf16.mxu0 %v6173_v0 }
 0x1e5   : > { %v1528_v24 = vpop.f32.mrb[14].mxu0  ;;  %6097 = vmatprep.subr.bf16.mxu1 %v6173_v0 }
 0x1e6   : > { %3412 = vst [vmem:[%s6636_s22 + $0x1c] sm:$0x3] %v1528_v24  ;;  %v1619_v27 = vpop.f32.mrb[14].mxu1  ;;  %v4790_v28 = vpop.f32.mrb[15].mxu0  ;;  %v3699_v24 = vld [vmem:[%s6211_s15 + $0xf78] sm:$0xff] }
 0x1e7   : > { %3430 = vst [vmem:[%s6636_s22 + $0x1e] sm:$0x3] %v1619_v27  ;;  %v4825_v29 = vpop.f32.mrb[15].mxu1  ;;  %6075 = vmatpush3.bf16.msra.mxu0 %v6074_v20  ;;  %v6128_v27 = vpack.c.bf16 %v3699_v24, %v3698_v23  ;;  %v6152_v28 = vpack.c.bf16 %v3717_v26, %v3716_v25 }
 0x1e8   : > { %6099 = vmatpush3.bf16.msra.mxu1 %v6098_v21  ;;  %6076 = vmatprep.subr.bf16.mxu0 %v6173_v0  ;;  %v6125_v21 = vpack.c.bf16 %v3697_v14, %v3696_v13  ;;  %v3683_v29 = vld [vmem:[%s6264_s19 + $0x3c] sm:$0x3] }
 0x1e9   : > { %6100 = vmatprep.subr.bf16.mxu1 %v6173_v0 }
 0x1eb   : > { %6078 = vmatpush3.bf16.msra.mxu0 %v6077_v30  ;;  %v3701_v30 = vld [vmem:[%s6264_s19 + $0x3e] sm:$0x3] }
 0x1ec   : > { %6102 = vmatpush3.bf16.msra.mxu1 %v6101_v31  ;;  %6079 = vmatprep.subr.bf16.mxu0 %v6173_v0 }
 0x1ed   : > { %6103 = vmatprep.subr.bf16.mxu1 %v6173_v0 }
 0x1ef   : > { %6081 = vmatpush3.bf16.msra.mxu0 %v6080_v36 }
 0x1f0   : > { %6105 = vmatpush3.bf16.msra.mxu1 %v6104_v37  ;;  %6106 = vmatprep.subr.bf16.mxu0 %v6173_v0 }
 0x1f1   : > { %6130 = vmatprep.subr.bf16.mxu1 %v6173_v0 }
 0x1f2   : > { %5279 = vmatmul.mubr.f32.vlgmr.msra.gmra.mrb[28].mxu0 %v3647_v42 }
 0x1f3   : > { %5314 = vmatmul.mubr.f32.vlgmr.msra.gmra.mrb[28].mxu1 %v3665_v44  ;;  %6108 = vmatpush3.bf16.msra.mxu0 %v6107_v43 }
 0x1f4   : > { %6132 = vmatpush3.bf16.msra.mxu1 %v6131_v45  ;;  %6109 = vmatprep.subr.bf16.mxu0 %v6173_v0 }
 0x1f5   : > { %6133 = vmatprep.subr.bf16.mxu1 %v6173_v0  ;;  %5348 = vmatprep.mubr.msk.f32.mxu0 %vm6174_vm0, %v6175_v1 }
 0x1f6   : > { %5383 = vmatprep.mubr.msk.f32.mxu1 %vm6174_vm0, %v6175_v1  ;;  %v6116_v1 = vpack.c.bf16 %v3691_v59, %v3690_v58 }
 0x1f7   : > { %6111 = vmatpush3.bf16.msra.mxu0 %v6110_v50 }
 0x1f8   : > { %6135 = vmatpush3.bf16.msra.mxu1 %v6134_v51  ;;  %6112 = vmatprep.subr.bf16.mxu0 %v6173_v0 }
 0x1f9   : > { %6136 = vmatprep.subr.bf16.mxu1 %v6173_v0 }
 0x1fb   : > { %6114 = vmatpush3.bf16.msra.mxu0 %v6113_v56 }
 0x1fc   : > { %6138 = vmatpush3.bf16.msra.mxu1 %v6137_v57  ;;  %6115 = vmatprep.subr.bf16.mxu0 %v6173_v0 }
 0x1fd   : > { %6139 = vmatprep.subr.bf16.mxu1 %v6173_v0 }
 0x1ff   : > { %6117 = vmatpush3.bf16.msra.mxu0 %v6116_v1 }
 0x200   : > { %6141 = vmatpush3.bf16.msra.mxu1 %v6140_v62  ;;  %6118 = vmatprep.subr.bf16.mxu0 %v6173_v0 }
 0x201   : > { %6142 = vmatprep.subr.bf16.mxu1 %v6173_v0 }
 0x203   : > { %6120 = vmatpush3.bf16.msra.mxu0 %v6119_v5 }
 0x204   : > { %6144 = vmatpush3.bf16.msra.mxu1 %v6143_v6  ;;  %6121 = vmatprep.subr.bf16.mxu0 %v6173_v0 }
 0x205   : > { %v1710_v15 = vpop.f32.mrb[16].mxu0  ;;  %6145 = vmatprep.subr.bf16.mxu1 %v6173_v0 }
 0x206   : > { %3448 = vst [vmem:[%s6636_s22 + $0x20] sm:$0x3] %v1710_v15  ;;  %v1801_v18 = vpop.f32.mrb[16].mxu1  ;;  %v4860_v19 = vpop.f32.mrb[17].mxu0 }
 0x207   : > { %3466 = vst [vmem:[%s6636_s22 + $0x22] sm:$0x3] %v1801_v18  ;;  %v4895_v20 = vpop.f32.mrb[17].mxu1  ;;  %6123 = vmatpush3.bf16.msra.mxu0 %v6122_v11 }
 0x208   : > { %6147 = vmatpush3.bf16.msra.mxu1 %v6146_v12  ;;  %6124 = vmatprep.subr.bf16.mxu0 %v6173_v0 }
 0x209   : > { %6148 = vmatprep.subr.bf16.mxu1 %v6173_v0 }
 0x20b   : > { %6126 = vmatpush3.bf16.msra.mxu0 %v6125_v21 }
 0x20c   : > { %6150 = vmatpush3.bf16.msra.mxu1 %v6149_v22  ;;  %6127 = vmatprep.subr.bf16.mxu0 %v6173_v0 }
 0x20d   : > { %6151 = vmatprep.subr.bf16.mxu1 %v6173_v0 }
 0x20f   : > { %6129 = vmatpush3.bf16.msra.mxu0 %v6128_v27 }
 0x210   : > { %6153 = vmatpush3.bf16.msra.mxu1 %v6152_v28 }
 0x212   : > { %5349 = vmatmul.mubr.f32.vlgmr.msra.gmra.mrb[30].mxu0 %v3683_v29 }
 0x213   : > { %5384 = vmatmul.mubr.f32.vlgmr.msra.gmra.mrb[30].mxu1 %v3701_v30 }
 0x225   : > { %v1892_v31 = vpop.f32.mrb[18].mxu0 }
 0x226   : > { %3484 = vst [vmem:[%s6636_s22 + $0x24] sm:$0x3] %v1892_v31  ;;  %v1983_v32 = vpop.f32.mrb[18].mxu1  ;;  %v4930_v33 = vpop.f32.mrb[19].mxu0 }
 0x227   : > { %3502 = vst [vmem:[%s6636_s22 + $0x26] sm:$0x3] %v1983_v32  ;;  %v4965_v34 = vpop.f32.mrb[19].mxu1 }
 0x245   : > { %v2074_v35 = vpop.f32.mrb[20].mxu0 }
 0x246   : > { %3520 = vst [vmem:[%s6636_s22 + $0x28] sm:$0x3] %v2074_v35  ;;  %v2165_v0 = vpop.f32.mrb[20].mxu1  ;;  %v5000_v36 = vpop.f32.mrb[21].mxu0 }
 0x247   : > { %3538 = vst [vmem:[%s6636_s22 + $0x2a] sm:$0x3] %v2165_v0  ;;  %v5035_v37 = vpop.f32.mrb[21].mxu1 }
 0x265   : > { %v2256_v38 = vpop.f32.mrb[22].mxu0 }
 0x266   : > { %3556 = vst [vmem:[%s6636_s22 + $0x2c] sm:$0x3] %v2256_v38  ;;  %v2347_v39 = vpop.f32.mrb[22].mxu1  ;;  %v5070_v40 = vpop.f32.mrb[23].mxu0 }
 0x267   : > { %3574 = vst [vmem:[%s6636_s22 + $0x2e] sm:$0x3] %v2347_v39  ;;  %v5105_v41 = vpop.f32.mrb[23].mxu1 }
 0x285   : > { %v2438_v42 = vpop.f32.mrb[24].mxu0 }
 0x286   : > { %3592 = vst [vmem:[%s6636_s22 + $0x30] sm:$0x3] %v2438_v42  ;;  %v2529_v43 = vpop.f32.mrb[24].mxu1  ;;  %v5140_v44 = vpop.f32.mrb[25].mxu0 }
 0x287   : > { %3610 = vst [vmem:[%s6636_s22 + $0x32] sm:$0x3] %v2529_v43  ;;  %v5175_v45 = vpop.f32.mrb[25].mxu1 }
 0x2a5   : > { %v2620_v46 = vpop.f32.mrb[26].mxu0 }
 0x2a6   : > { %3628 = vst [vmem:[%s6636_s22 + $0x34] sm:$0x3] %v2620_v46  ;;  %v2711_v47 = vpop.f32.mrb[26].mxu1  ;;  %v5210_v48 = vpop.f32.mrb[27].mxu0 }
 0x2a7   : > { %3646 = vst [vmem:[%s6636_s22 + $0x36] sm:$0x3] %v2711_v47  ;;  %v5245_v49 = vpop.f32.mrb[27].mxu1 }
 0x2c5   : > { %v2802_v50 = vpop.f32.mrb[28].mxu0 }
 0x2c6   : > { %3664 = vst [vmem:[%s6636_s22 + $0x38] sm:$0x3] %v2802_v50  ;;  %v2893_v51 = vpop.f32.mrb[28].mxu1  ;;  %v5280_v52 = vpop.f32.mrb[29].mxu0 }
 0x2c7   : > { %3682 = vst [vmem:[%s6636_s22 + $0x3a] sm:$0x3] %v2893_v51  ;;  %v5315_v53 = vpop.f32.mrb[29].mxu1 }
 0x2e5   : > { %v2984_v54 = vpop.f32.mrb[30].mxu0 }
 0x2e6   : > { %3700 = vst [vmem:[%s6636_s22 + $0x3c] sm:$0x3] %v2984_v54  ;;  %v3075_v55 = vpop.f32.mrb[30].mxu1  ;;  %v5350_v56 = vpop.f32.mrb[31].mxu0 }
 0x2e7   : > { %3718 = vst [vmem:[%s6636_s22 + $0x3e] sm:$0x3] %v3075_v55  ;;  %v5385_v57 = vpop.f32.mrb[31].mxu1 }
 0x2e8 PF: > { %s12_s9 = sadd.s32 1, %s6171_s9  }
 0x2e9   : > { %p9_p4 = scmp.ge.s32.totalorder %s12_s9, 4  }
 0x2eb   :  { %11 = sbr.rel (!%p9_p4) target bundleno = 1 (0x1), region = 154 }

// kernel: reverse.8
= control target key start
LH: loop header
LB: loop body
LE: loop exit
PB: predicated region body
PF: predicated region fallthrough
CT: control target
= control target key end

     0   :  { %s584_s0 = inlined_call_operand.vmem [shape: f32[2,16,8,8,3], index: 0, kind: input, shape index: {}]   ;;  %s585_s1 = inlined_call_operand.vmem [shape: f32[2,16,8,8,3], index: 1, kind: output, shape index: {}]  }
   0x1   :  { %v192_v0 = vld [vmem:[%s584_s0 + $0x80] sm:$0xff]  ;;  %v202_v6 = vld [vmem:[%s584_s0 + $0x88] sm:$0xff]  ;;  %v214_v12 = vld [vmem:[%s584_s0 + $0x90] sm:$0xff] }
   0x2   :  { %v193_v1 = vld [vmem:[%s584_s0 + $0x140] sm:$0xff]  ;;  %4 = vst [vmem:[%s585_s1] sm:$0xff] %v192_v0  ;;  %v204_v7 = vld [vmem:[%s584_s0 + $0x148] sm:$0xff]  ;;  %203 = vst [vmem:[%s585_s1 + $0x8] sm:$0xff] %v202_v6 }
   0x3   :  { %v195_v2 = vld [vmem:[%s584_s0 + $0x40] sm:$0xff]  ;;  %194 = vst [vmem:[%s585_s1 + $0xc0] sm:$0xff] %v193_v1  ;;  %v206_v8 = vld [vmem:[%s584_s0 + $0x48] sm:$0xff]  ;;  %205 = vst [vmem:[%s585_s1 + $0xc8] sm:$0xff] %v204_v7 }
   0x4   :  { %196 = vst [vmem:[%s585_s1 + $0x40] sm:$0xff] %v195_v2  ;;  %v197_v3 = vld [vmem:[%s584_s0 + $0x100] sm:$0xff]  ;;  %207 = vst [vmem:[%s585_s1 + $0x48] sm:$0xff] %v206_v8  ;;  %v208_v9 = vld [vmem:[%s584_s0 + $0x108] sm:$0xff] }
   0x5   :  { %v17_v4 = vld [vmem:[%s584_s0] sm:$0xff]  ;;  %198 = vst [vmem:[%s585_s1 + $0x100] sm:$0xff] %v197_v3  ;;  %v210_v10 = vld [vmem:[%s584_s0 + $0x8] sm:$0xff]  ;;  %209 = vst [vmem:[%s585_s1 + $0x108] sm:$0xff] %v208_v9 }
   0x6   :  { %v200_v5 = vld [vmem:[%s584_s0 + $0xc0] sm:$0xff]  ;;  %199 = vst [vmem:[%s585_s1 + $0x80] sm:$0xff] %v17_v4  ;;  %v212_v11 = vld [vmem:[%s584_s0 + $0xc8] sm:$0xff]  ;;  %211 = vst [vmem:[%s585_s1 + $0x88] sm:$0xff] %v210_v10 }
   0x7   :  { %201 = vst [vmem:[%s585_s1 + $0x140] sm:$0xff] %v200_v5  ;;  %213 = vst [vmem:[%s585_s1 + $0x148] sm:$0xff] %v212_v11  ;;  %v216_v13 = vld [vmem:[%s584_s0 + $0x150] sm:$0xff]  ;;  %v226_v18 = vld [vmem:[%s584_s0 + $0x98] sm:$0xff] }
   0x8   :  { %v218_v14 = vld [vmem:[%s584_s0 + $0x50] sm:$0xff]  ;;  %215 = vst [vmem:[%s585_s1 + $0x10] sm:$0xff] %v214_v12  ;;  %217 = vst [vmem:[%s585_s1 + $0xd0] sm:$0xff] %v216_v13  ;;  %v228_v19 = vld [vmem:[%s584_s0 + $0x158] sm:$0xff] }
   0x9   :  { %219 = vst [vmem:[%s585_s1 + $0x50] sm:$0xff] %v218_v14  ;;  %v220_v15 = vld [vmem:[%s584_s0 + $0x110] sm:$0xff]  ;;  %v230_v20 = vld [vmem:[%s584_s0 + $0x58] sm:$0xff]  ;;  %227 = vst [vmem:[%s585_s1 + $0x18] sm:$0xff] %v226_v18 }
   0xa   :  { %v222_v16 = vld [vmem:[%s584_s0 + $0x10] sm:$0xff]  ;;  %221 = vst [vmem:[%s585_s1 + $0x110] sm:$0xff] %v220_v15  ;;  %229 = vst [vmem:[%s585_s1 + $0xd8] sm:$0xff] %v228_v19  ;;  %v232_v21 = vld [vmem:[%s584_s0 + $0x118] sm:$0xff] }
   0xb   :  { %v224_v17 = vld [vmem:[%s584_s0 + $0xd0] sm:$0xff]  ;;  %223 = vst [vmem:[%s585_s1 + $0x90] sm:$0xff] %v222_v16  ;;  %231 = vst [vmem:[%s585_s1 + $0x58] sm:$0xff] %v230_v20  ;;  %v234_v22 = vld [vmem:[%s584_s0 + $0x18] sm:$0xff] }
   0xc   :  { %225 = vst [vmem:[%s585_s1 + $0x150] sm:$0xff] %v224_v17  ;;  %v236_v23 = vld [vmem:[%s584_s0 + $0xd8] sm:$0xff]  ;;  %233 = vst [vmem:[%s585_s1 + $0x118] sm:$0xff] %v232_v21  ;;  %v238_v24 = vld [vmem:[%s584_s0 + $0xa0] sm:$0xff] }
   0xd   :  { %235 = vst [vmem:[%s585_s1 + $0x98] sm:$0xff] %v234_v22  ;;  %237 = vst [vmem:[%s585_s1 + $0x158] sm:$0xff] %v236_v23  ;;  %v240_v25 = vld [vmem:[%s584_s0 + $0x160] sm:$0xff]  ;;  %v250_v30 = vld [vmem:[%s584_s0 + $0xa8] sm:$0xff] }
   0xe   :  { %v242_v26 = vld [vmem:[%s584_s0 + $0x60] sm:$0xff]  ;;  %239 = vst [vmem:[%s585_s1 + $0x20] sm:$0xff] %v238_v24  ;;  %241 = vst [vmem:[%s585_s1 + $0xe0] sm:$0xff] %v240_v25  ;;  %v252_v31 = vld [vmem:[%s584_s0 + $0x168] sm:$0xff] }
   0xf   :  { %243 = vst [vmem:[%s585_s1 + $0x60] sm:$0xff] %v242_v26  ;;  %v244_v27 = vld [vmem:[%s584_s0 + $0x120] sm:$0xff]  ;;  %v254_v32 = vld [vmem:[%s584_s0 + $0x68] sm:$0xff]  ;;  %251 = vst [vmem:[%s585_s1 + $0x28] sm:$0xff] %v250_v30 }
  0x10   :  { %v246_v28 = vld [vmem:[%s584_s0 + $0x20] sm:$0xff]  ;;  %245 = vst [vmem:[%s585_s1 + $0x120] sm:$0xff] %v244_v27  ;;  %253 = vst [vmem:[%s585_s1 + $0xe8] sm:$0xff] %v252_v31  ;;  %v256_v33 = vld [vmem:[%s584_s0 + $0x128] sm:$0xff] }
  0x11   :  { %v248_v29 = vld [vmem:[%s584_s0 + $0xe0] sm:$0xff]  ;;  %247 = vst [vmem:[%s585_s1 + $0xa0] sm:$0xff] %v246_v28  ;;  %255 = vst [vmem:[%s585_s1 + $0x68] sm:$0xff] %v254_v32  ;;  %v258_v34 = vld [vmem:[%s584_s0 + $0x28] sm:$0xff] }
  0x12   :  { %249 = vst [vmem:[%s585_s1 + $0x160] sm:$0xff] %v248_v29  ;;  %v260_v35 = vld [vmem:[%s584_s0 + $0xe8] sm:$0xff]  ;;  %257 = vst [vmem:[%s585_s1 + $0x128] sm:$0xff] %v256_v33  ;;  %v262_v36 = vld [vmem:[%s584_s0 + $0xb0] sm:$0xff] }
  0x13   :  { %259 = vst [vmem:[%s585_s1 + $0xa8] sm:$0xff] %v258_v34  ;;  %261 = vst [vmem:[%s585_s1 + $0x168] sm:$0xff] %v260_v35  ;;  %v264_v37 = vld [vmem:[%s584_s0 + $0x170] sm:$0xff]  ;;  %v274_v42 = vld [vmem:[%s584_s0 + $0xb8] sm:$0xff] }
  0x14   :  { %v266_v38 = vld [vmem:[%s584_s0 + $0x70] sm:$0xff]  ;;  %263 = vst [vmem:[%s585_s1 + $0x30] sm:$0xff] %v262_v36  ;;  %265 = vst [vmem:[%s585_s1 + $0xf0] sm:$0xff] %v264_v37  ;;  %v276_v43 = vld [vmem:[%s584_s0 + $0x178] sm:$0xff] }
  0x15   :  { %267 = vst [vmem:[%s585_s1 + $0x70] sm:$0xff] %v266_v38  ;;  %v268_v39 = vld [vmem:[%s584_s0 + $0x130] sm:$0xff]  ;;  %v278_v44 = vld [vmem:[%s584_s0 + $0x78] sm:$0xff]  ;;  %275 = vst [vmem:[%s585_s1 + $0x38] sm:$0xff] %v274_v42 }
  0x16   :  { %v270_v40 = vld [vmem:[%s584_s0 + $0x30] sm:$0xff]  ;;  %269 = vst [vmem:[%s585_s1 + $0x130] sm:$0xff] %v268_v39  ;;  %277 = vst [vmem:[%s585_s1 + $0xf8] sm:$0xff] %v276_v43  ;;  %v280_v45 = vld [vmem:[%s584_s0 + $0x138] sm:$0xff] }
  0x17   :  { %v272_v41 = vld [vmem:[%s584_s0 + $0xf0] sm:$0xff]  ;;  %271 = vst [vmem:[%s585_s1 + $0xb0] sm:$0xff] %v270_v40  ;;  %279 = vst [vmem:[%s585_s1 + $0x78] sm:$0xff] %v278_v44  ;;  %v282_v46 = vld [vmem:[%s584_s0 + $0x38] sm:$0xff] }
  0x18   :  { %273 = vst [vmem:[%s585_s1 + $0x170] sm:$0xff] %v272_v41  ;;  %v284_v47 = vld [vmem:[%s584_s0 + $0xf8] sm:$0xff]  ;;  %281 = vst [vmem:[%s585_s1 + $0x138] sm:$0xff] %v280_v45 }
  0x19   :  { %283 = vst [vmem:[%s585_s1 + $0xb8] sm:$0xff] %v282_v46  ;;  %285 = vst [vmem:[%s585_s1 + $0x178] sm:$0xff] %v284_v47 }

// kernel: forward.12
= control target key start
LH: loop header
LB: loop body
LE: loop exit
PB: predicated region body
PF: predicated region fallthrough
CT: control target
= control target key end

     0   :  { %s630_s15 = smov 0   ;;  %s726_s0 = inlined_call_operand.vmem [shape: f32[128,128], index: 0, kind: input, shape index: {}]   ;;  %s727_s1 = inlined_call_operand.vmem [shape: f32[128,128], index: 1, kind: input, shape index: {}]   ;;  %s728_s2 = inlined_call_operand.vmem [shape: f32[128,128], index: 2, kind: input, shape index: {}]   ;;  %s729_s3 = inlined_call_operand.vmem [shape: f32[1,128], index: 3, kind: input, shape index: {}]   ;;  %s730_s4 = inlined_call_operand.vmem [shape: f32[128,128], index: 4, kind: output, shape index: {}]  }
   0x1 LB: > { %s459_s16 = sadd.s32 4294967295, %s603_s15   ;;  %p463_p0 = scmp.ge.s32.totalorder %s603_s15, 1  ;;  %s603_s15 = sphi %s630_s15, %s14_s15  }
   0x2   : > { %p174_p1 = scmp.lt.s32.totalorder %s603_s15, 3 }
   0x4   : > { %p175_p2 = pnand %p463_p0, %p174_p1 }
   0x5   : > { %v231_v0 = vld [vmem:[%s728_s2] sm:$0xff] (!%p175_p2)  ;;  %v232_v1 = vld [vmem:[%s728_s2 + $0x8] sm:$0xff] (!%p175_p2)  ;;  %v233_v2 = vld [vmem:[%s728_s2 + $0x10] sm:$0xff] (!%p175_p2)  ;;  %s464_s23 = sshll.u32 (!%p175_p2), %s459_s16, 3 }
   0x6   : > { %178 = sbr.rel (%p175_p2) target bundleno = 265 (0x109), region = 36  ;;  %v541_v3 = vpack.c.bf16 (!%p175_p2), %v232_v1, %v231_v0  ;;  %v234_v4 = vld [vmem:[%s728_s2 + $0x18] sm:$0xff] (!%p175_p2)  ;;  %p206_p3 = scmp.lt.s32.totalorder (!%p175_p2), %s464_s23, 15  ;;  %v235_v6 = vld [vmem:[%s728_s2 + $0x20] sm:$0xff] (!%p175_p2)  ;;  %v236_v7 = vld [vmem:[%s728_s2 + $0x28] sm:$0xff] (!%p175_p2) }
   0x7   : > { %v545_v5 = vpack.c.bf16 (!%p175_p2), %v234_v4, %v233_v2  ;;  %v549_v8 = vpack.c.bf16 (!%p175_p2), %v236_v7, %v235_v6  ;;  %v237_v9 = vld [vmem:[%s728_s2 + $0x30] sm:$0xff] (!%p175_p2)  ;;  %v238_v10 = vld [vmem:[%s728_s2 + $0x38] sm:$0xff] (!%p175_p2)  ;;  %v239_v14 = vld [vmem:[%s728_s2 + $0x40] sm:$0xff] (!%p175_p2) }
   0x8   : > { %542 = vmatprep.subr.bf16.mxu0 (!%p175_p2), %v541_v3  ;;  %573 = vmatprep.subr.bf16.mxu1 (!%p175_p2), %v541_v3  ;;  %v553_v13 = vpack.c.bf16 (!%p175_p2), %v238_v10, %v237_v9  ;;  %v240_v15 = vld [vmem:[%s728_s2 + $0x48] sm:$0xff] (!%p175_p2)  ;;  %v241_v17 = vld [vmem:[%s728_s2 + $0x50] sm:$0xff] (!%p175_p2)  ;;  %v242_v18 = vld [vmem:[%s728_s2 + $0x58] sm:$0xff] (!%p175_p2) }
   0x9   : > { %544 = vmatpush3.bf16.msra.mxu0 (!%p175_p2), %v541_v3  ;;  %581 = vmatpush3.bf16.msra.mxu1 (!%p175_p2), %v541_v3  ;;  %v557_v16 = vpack.c.bf16 (!%p175_p2), %v240_v15, %v239_v14  ;;  %v561_v19 = vpack.c.bf16 (!%p175_p2), %v242_v18, %v241_v17  ;;  %v243_v20 = vld [vmem:[%s728_s2 + $0x60] sm:$0xff] (!%p175_p2)  ;;  %v244_v21 = vld [vmem:[%s728_s2 + $0x68] sm:$0xff] (!%p175_p2)  ;;  %v245_v23 = vld [vmem:[%s728_s2 + $0x70] sm:$0xff] (!%p175_p2) }
   0xa   : > { %546 = vmatprep.subr.bf16.mxu0 (!%p175_p2), %v545_v5  ;;  %574 = vmatprep.subr.bf16.mxu1 (!%p175_p2), %v545_v5  ;;  %v565_v22 = vpack.c.bf16 (!%p175_p2), %v244_v21, %v243_v20  ;;  %v246_v24 = vld [vmem:[%s728_s2 + $0x78] sm:$0xff] (!%p175_p2)  ;;  %v470_v32 = vld [vmem:[%s729_s3] ss:$0 sm:$0xff] (!%p175_p2) }
   0xb   : > { %v569_v25 = vpack.c.bf16 (!%p175_p2), %v246_v24, %v245_v23 }
   0xd   : > { %s732_s23 = smov (!%p206_p3, %s464_s23), 15  ;;  %548 = vmatpush3.bf16.msra.mxu0 %v545_v5  ;;  %582 = vmatpush3.bf16.msra.mxu1 %v545_v5 }
   0xe   : > { %s656_s30 = sshll.u32 %s732_s23, 3  ;;  %550 = vmatprep.subr.bf16.mxu0 %v549_v8  ;;  %575 = vmatprep.subr.bf16.mxu1 %v549_v8 }
   0xf   : > { %s668_s11 = scalar_lea.vmem %s726_s0, %s656_s30  ;;  %s215_s6 = scalar_lea.vmem %s727_s1, %s656_s30 }
  0x10   : > { %v223_v11 = vld [vmem:[%s668_s11] sm:$0xff]  ;;  %v224_v26 = vld [vmem:[%s668_s11 + $0x8] sm:$0xff]  ;;  %v225_v28 = vld [vmem:[%s668_s11 + $0x10] sm:$0xff] }
  0x11   : > { %v227_v12 = vld [vmem:[%s668_s11 + $0x20] sm:$0xff]  ;;  %529 = vmatprep.mubr.f32.mxu0 %v223_v11  ;;  %552 = vmatpush3.bf16.msra.mxu0 %v549_v8  ;;  %v228_v27 = vld [vmem:[%s668_s11 + $0x28] sm:$0xff]  ;;  %v229_v29 = vld [vmem:[%s668_s11 + $0x30] sm:$0xff] }
  0x12   : > { %535 = vmatprep.mubr.f32.mxu1 %v227_v12  ;;  %583 = vmatpush3.bf16.msra.mxu1 %v549_v8  ;;  %v226_v30 = vld [vmem:[%s668_s11 + $0x18] sm:$0xff]  ;;  %v360_v34 = vld [vmem:[%s215_s6 + $0x8] sm:$0xff]  ;;  %v359_v40 = vld [vmem:[%s215_s6] sm:$0xff] }
  0x13   : > { %554 = vmatprep.subr.bf16.mxu0 %v553_v13  ;;  %576 = vmatprep.subr.bf16.mxu1 %v553_v13  ;;  %v230_v31 = vld [vmem:[%s668_s11 + $0x38] sm:$0xff]  ;;  %v364_v36 = vld [vmem:[%s215_s6 + $0x28] sm:$0xff]  ;;  %v363_v42 = vld [vmem:[%s215_s6 + $0x20] sm:$0xff]  ;;  %s713_s11 = scalar_lea.vmem %s730_s4, %s656_s30 }
  0x14   : > { %v362_v50 = vld [vmem:[%s215_s6 + $0x18] sm:$0xff]  ;;  %v361_v58 = vld [vmem:[%s215_s6 + $0x10] sm:$0xff] }
  0x15   : > { %556 = vmatpush3.bf16.msra.mxu0 %v553_v13  ;;  %v366_v52 = vld [vmem:[%s215_s6 + $0x38] sm:$0xff]  ;;  %v365_v60 = vld [vmem:[%s215_s6 + $0x30] sm:$0xff] }
  0x16   : > { %584 = vmatpush3.bf16.msra.mxu1 %v553_v13  ;;  %558 = vmatprep.subr.bf16.mxu0 %v557_v16 }
  0x17   : > { %577 = vmatprep.subr.bf16.mxu1 %v557_v16 }
  0x19   : > { %560 = vmatpush3.bf16.msra.mxu0 %v557_v16 }
  0x1a   : > { %585 = vmatpush3.bf16.msra.mxu1 %v557_v16  ;;  %562 = vmatprep.subr.bf16.mxu0 %v561_v19 }
  0x1b   : > { %578 = vmatprep.subr.bf16.mxu1 %v561_v19 }
  0x1d   : > { %564 = vmatpush3.bf16.msra.mxu0 %v561_v19 }
  0x1e   : > { %586 = vmatpush3.bf16.msra.mxu1 %v561_v19  ;;  %566 = vmatprep.subr.bf16.mxu0 %v565_v22 }
  0x1f   : > { %579 = vmatprep.subr.bf16.mxu1 %v565_v22 }
  0x21   : > { %568 = vmatpush3.bf16.msra.mxu0 %v565_v22 }
  0x22   : > { %587 = vmatpush3.bf16.msra.mxu1 %v565_v22  ;;  %570 = vmatprep.subr.bf16.mxu0 %v569_v25 }
  0x23   : > { %580 = vmatprep.subr.bf16.mxu1 %v569_v25 }
  0x25   : > { %572 = vmatpush3.bf16.msra.mxu0 %v569_v25 }
  0x26   : > { %588 = vmatpush3.bf16.msra.mxu1 %v569_v25 }
  0x28   : > { %530 = vmatmul.mubr.f32.vlgmr.msra.gmra.mrb[0].mxu0 %v224_v26 }
  0x29   : > { %536 = vmatmul.mubr.f32.vlgmr.msra.gmra.mrb[0].mxu1 %v228_v27  ;;  %532 = vmatprep.mubr.f32.mxu0 %v225_v28 }
  0x2a   : > { %538 = vmatprep.mubr.f32.mxu1 %v229_v29 }
  0x2c   : > { %533 = vmatmul.mubr.f32.gmra.mrb[2].mxu0 %v226_v30 }
  0x2d   : > { %539 = vmatmul.mubr.f32.gmra.mrb[2].mxu1 %v230_v31 }
  0xfb   : > { %v531_v33 = vpop.f32.mrb[0].mxu0 }
  0xfc   : > { %v537_v35 = vpop.f32.mrb[0].mxu1  ;;  %v326_v37 = vadd.f32 %v531_v33, %v470_v32  ;;  %v320_v39 = vpop.f32.mrb[1].mxu0 }
  0xfd   : > { %v346_v38 = vadd.f32 %v537_v35, %v470_v32  ;;  %v340_v41 = vpop.f32.mrb[1].mxu1  ;;  %v321_v43 = vadd.f32 %v470_v32, %v320_v39 }
  0xfe   : > { %v341_v44 = vadd.f32 %v470_v32, %v340_v41  ;;  %v368_v45 = vadd.f32 %v360_v34, %v326_v37 }
  0xff   : > { %v372_v46 = vadd.f32 %v364_v36, %v346_v38  ;;  %v367_v47 = vadd.f32 %v359_v40, %v321_v43  ;;  %v534_v49 = vpop.f32.mrb[2].mxu0 }
 0x100   : > { %v371_v48 = vadd.f32 %v363_v42, %v341_v44  ;;  %v540_v51 = vpop.f32.mrb[2].mxu1  ;;  %v376_v53 = vmax.f32 %v368_v45, 0.0  ;;  %v336_v55 = vadd.f32 %v534_v49, %v470_v32  ;;  %v330_v57 = vpop.f32.mrb[3].mxu0 }
 0x101   : > { %v380_v54 = vmax.f32 %v372_v46, 0.0  ;;  %v356_v56 = vadd.f32 %v540_v51, %v470_v32  ;;  %v350_v59 = vpop.f32.mrb[3].mxu1  ;;  %v375_v61 = vmax.f32 %v367_v47, 0.0  ;;  %v331_v63 = vadd.f32 %v470_v32, %v330_v57 }
 0x102   : > { %v379_v62 = vmax.f32 %v371_v48, 0.0  ;;  %v351_v0 = vadd.f32 %v470_v32, %v350_v59  ;;  %384 = vst [vmem:[%s713_s11 + $0x8] sm:$0xff] %v376_v53  ;;  %v370_v1 = vadd.f32 %v362_v50, %v336_v55 }
 0x103   : > { %388 = vst [vmem:[%s713_s11 + $0x28] sm:$0xff] %v380_v54  ;;  %v374_v2 = vadd.f32 %v366_v52, %v356_v56  ;;  %383 = vst [vmem:[%s713_s11] sm:$0xff] %v375_v61  ;;  %v369_v3 = vadd.f32 %v361_v58, %v331_v63 }
 0x104   : > { %387 = vst [vmem:[%s713_s11 + $0x20] sm:$0xff] %v379_v62  ;;  %v373_v4 = vadd.f32 %v365_v60, %v351_v0  ;;  %v378_v5 = vmax.f32 %v370_v1, 0.0 }
 0x105   : > { %v382_v6 = vmax.f32 %v374_v2, 0.0  ;;  %v377_v7 = vmax.f32 %v369_v3, 0.0 }
 0x106   : > { %v381_v8 = vmax.f32 %v373_v4, 0.0  ;;  %386 = vst [vmem:[%s713_s11 + $0x18] sm:$0xff] %v378_v5 }
 0x107   : > { %390 = vst [vmem:[%s713_s11 + $0x38] sm:$0xff] %v382_v6  ;;  %385 = vst [vmem:[%s713_s11 + $0x10] sm:$0xff] %v377_v7 }
 0x108   : > { %389 = vst [vmem:[%s713_s11 + $0x30] sm:$0xff] %v381_v8 }
 0x109 PF: > { %s14_s15 = sadd.s32 1, %s603_s15  }
 0x10a   : > { %p11_p4 = scmp.ge.s32.totalorder %s14_s15, 4  }
 0x10c   :  { %13 = sbr.rel (!%p11_p4) target bundleno = 1 (0x1), region = 69 }

// kernel: forward.18
= control target key start
LH: loop header
LB: loop body
LE: loop exit
PB: predicated region body
PF: predicated region fallthrough
CT: control target
= control target key end

     0   :  { %s622_s15 = smov 0   ;;  %s708_s0 = inlined_call_operand.vmem [shape: f32[128,128], index: 0, kind: input, shape index: {}]   ;;  %s709_s1 = inlined_call_operand.vmem [shape: f32[128,128], index: 1, kind: input, shape index: {}]   ;;  %s710_s2 = inlined_call_operand.vmem [shape: f32[128,128], index: 2, kind: input, shape index: {}]   ;;  %s711_s3 = inlined_call_operand.vmem [shape: f32[1,128], index: 3, kind: input, shape index: {}]   ;;  %s712_s4 = inlined_call_operand.vmem [shape: f32[128,128], index: 4, kind: output, shape index: {}]  }
   0x1 LB: > { %s451_s16 = sadd.s32 4294967295, %s595_s15   ;;  %p455_p0 = scmp.ge.s32.totalorder %s595_s15, 1  ;;  %s595_s15 = sphi %s622_s15, %s14_s15  }
   0x2   : > { %p174_p1 = scmp.lt.s32.totalorder %s595_s15, 3 }
   0x4   : > { %p175_p2 = pnand %p455_p0, %p174_p1 }
   0x5   : > { %v231_v0 = vld [vmem:[%s710_s2] sm:$0xff] (!%p175_p2)  ;;  %v232_v1 = vld [vmem:[%s710_s2 + $0x8] sm:$0xff] (!%p175_p2)  ;;  %v233_v2 = vld [vmem:[%s710_s2 + $0x10] sm:$0xff] (!%p175_p2)  ;;  %s456_s23 = sshll.u32 (!%p175_p2), %s451_s16, 3 }
   0x6   : > { %178 = sbr.rel (%p175_p2) target bundleno = 263 (0x107), region = 36  ;;  %v533_v3 = vpack.c.bf16 (!%p175_p2), %v232_v1, %v231_v0  ;;  %v234_v4 = vld [vmem:[%s710_s2 + $0x18] sm:$0xff] (!%p175_p2)  ;;  %p206_p3 = scmp.lt.s32.totalorder (!%p175_p2), %s456_s23, 15  ;;  %v235_v6 = vld [vmem:[%s710_s2 + $0x20] sm:$0xff] (!%p175_p2)  ;;  %v236_v7 = vld [vmem:[%s710_s2 + $0x28] sm:$0xff] (!%p175_p2) }
   0x7   : > { %v537_v5 = vpack.c.bf16 (!%p175_p2), %v234_v4, %v233_v2  ;;  %v541_v8 = vpack.c.bf16 (!%p175_p2), %v236_v7, %v235_v6  ;;  %v237_v9 = vld [vmem:[%s710_s2 + $0x30] sm:$0xff] (!%p175_p2)  ;;  %v238_v10 = vld [vmem:[%s710_s2 + $0x38] sm:$0xff] (!%p175_p2)  ;;  %v239_v14 = vld [vmem:[%s710_s2 + $0x40] sm:$0xff] (!%p175_p2) }
   0x8   : > { %534 = vmatprep.subr.bf16.mxu0 (!%p175_p2), %v533_v3  ;;  %565 = vmatprep.subr.bf16.mxu1 (!%p175_p2), %v533_v3  ;;  %v545_v13 = vpack.c.bf16 (!%p175_p2), %v238_v10, %v237_v9  ;;  %v240_v15 = vld [vmem:[%s710_s2 + $0x48] sm:$0xff] (!%p175_p2)  ;;  %v241_v17 = vld [vmem:[%s710_s2 + $0x50] sm:$0xff] (!%p175_p2)  ;;  %v242_v18 = vld [vmem:[%s710_s2 + $0x58] sm:$0xff] (!%p175_p2) }
   0x9   : > { %536 = vmatpush3.bf16.msra.mxu0 (!%p175_p2), %v533_v3  ;;  %573 = vmatpush3.bf16.msra.mxu1 (!%p175_p2), %v533_v3  ;;  %v549_v16 = vpack.c.bf16 (!%p175_p2), %v240_v15, %v239_v14  ;;  %v553_v19 = vpack.c.bf16 (!%p175_p2), %v242_v18, %v241_v17  ;;  %v243_v20 = vld [vmem:[%s710_s2 + $0x60] sm:$0xff] (!%p175_p2)  ;;  %v244_v21 = vld [vmem:[%s710_s2 + $0x68] sm:$0xff] (!%p175_p2)  ;;  %v245_v23 = vld [vmem:[%s710_s2 + $0x70] sm:$0xff] (!%p175_p2) }
   0xa   : > { %538 = vmatprep.subr.bf16.mxu0 (!%p175_p2), %v537_v5  ;;  %566 = vmatprep.subr.bf16.mxu1 (!%p175_p2), %v537_v5  ;;  %v557_v22 = vpack.c.bf16 (!%p175_p2), %v244_v21, %v243_v20  ;;  %v246_v24 = vld [vmem:[%s710_s2 + $0x78] sm:$0xff] (!%p175_p2)  ;;  %v462_v32 = vld [vmem:[%s711_s3] ss:$0 sm:$0xff] (!%p175_p2) }
   0xb   : > { %v561_v25 = vpack.c.bf16 (!%p175_p2), %v246_v24, %v245_v23 }
   0xd   : > { %s714_s23 = smov (!%p206_p3, %s456_s23), 15  ;;  %540 = vmatpush3.bf16.msra.mxu0 %v537_v5  ;;  %574 = vmatpush3.bf16.msra.mxu1 %v537_v5 }
   0xe   : > { %s648_s30 = sshll.u32 %s714_s23, 3  ;;  %542 = vmatprep.subr.bf16.mxu0 %v541_v8  ;;  %567 = vmatprep.subr.bf16.mxu1 %v541_v8 }
   0xf   : > { %s660_s11 = scalar_lea.vmem %s708_s0, %s648_s30  ;;  %s215_s6 = scalar_lea.vmem %s709_s1, %s648_s30 }
  0x10   : > { %v223_v11 = vld [vmem:[%s660_s11] sm:$0xff]  ;;  %v224_v26 = vld [vmem:[%s660_s11 + $0x8] sm:$0xff]  ;;  %v225_v28 = vld [vmem:[%s660_s11 + $0x10] sm:$0xff] }
  0x11   : > { %v227_v12 = vld [vmem:[%s660_s11 + $0x20] sm:$0xff]  ;;  %521 = vmatprep.mubr.f32.mxu0 %v223_v11  ;;  %544 = vmatpush3.bf16.msra.mxu0 %v541_v8  ;;  %v228_v27 = vld [vmem:[%s660_s11 + $0x28] sm:$0xff]  ;;  %v229_v29 = vld [vmem:[%s660_s11 + $0x30] sm:$0xff] }
  0x12   : > { %527 = vmatprep.mubr.f32.mxu1 %v227_v12  ;;  %575 = vmatpush3.bf16.msra.mxu1 %v541_v8  ;;  %v226_v30 = vld [vmem:[%s660_s11 + $0x18] sm:$0xff]  ;;  %v360_v34 = vld [vmem:[%s215_s6 + $0x8] sm:$0xff]  ;;  %v359_v40 = vld [vmem:[%s215_s6] sm:$0xff] }
  0x13   : > { %546 = vmatprep.subr.bf16.mxu0 %v545_v13  ;;  %568 = vmatprep.subr.bf16.mxu1 %v545_v13  ;;  %v230_v31 = vld [vmem:[%s660_s11 + $0x38] sm:$0xff]  ;;  %v364_v36 = vld [vmem:[%s215_s6 + $0x28] sm:$0xff]  ;;  %v363_v42 = vld [vmem:[%s215_s6 + $0x20] sm:$0xff]  ;;  %s221_s11 = scalar_lea.vmem %s712_s4, %s648_s30 }
  0x14   : > { %v362_v50 = vld [vmem:[%s215_s6 + $0x18] sm:$0xff]  ;;  %v361_v56 = vld [vmem:[%s215_s6 + $0x10] sm:$0xff] }
  0x15   : > { %548 = vmatpush3.bf16.msra.mxu0 %v545_v13  ;;  %v366_v52 = vld [vmem:[%s215_s6 + $0x38] sm:$0xff]  ;;  %v365_v58 = vld [vmem:[%s215_s6 + $0x30] sm:$0xff] }
  0x16   : > { %576 = vmatpush3.bf16.msra.mxu1 %v545_v13  ;;  %550 = vmatprep.subr.bf16.mxu0 %v549_v16 }
  0x17   : > { %569 = vmatprep.subr.bf16.mxu1 %v549_v16 }
  0x19   : > { %552 = vmatpush3.bf16.msra.mxu0 %v549_v16 }
  0x1a   : > { %577 = vmatpush3.bf16.msra.mxu1 %v549_v16  ;;  %554 = vmatprep.subr.bf16.mxu0 %v553_v19 }
  0x1b   : > { %570 = vmatprep.subr.bf16.mxu1 %v553_v19 }
  0x1d   : > { %556 = vmatpush3.bf16.msra.mxu0 %v553_v19 }
  0x1e   : > { %578 = vmatpush3.bf16.msra.mxu1 %v553_v19  ;;  %558 = vmatprep.subr.bf16.mxu0 %v557_v22 }
  0x1f   : > { %571 = vmatprep.subr.bf16.mxu1 %v557_v22 }
  0x21   : > { %560 = vmatpush3.bf16.msra.mxu0 %v557_v22 }
  0x22   : > { %579 = vmatpush3.bf16.msra.mxu1 %v557_v22  ;;  %562 = vmatprep.subr.bf16.mxu0 %v561_v25 }
  0x23   : > { %572 = vmatprep.subr.bf16.mxu1 %v561_v25 }
  0x25   : > { %564 = vmatpush3.bf16.msra.mxu0 %v561_v25 }
  0x26   : > { %580 = vmatpush3.bf16.msra.mxu1 %v561_v25 }
  0x28   : > { %522 = vmatmul.mubr.f32.vlgmr.msra.gmra.mrb[0].mxu0 %v224_v26 }
  0x29   : > { %528 = vmatmul.mubr.f32.vlgmr.msra.gmra.mrb[0].mxu1 %v228_v27  ;;  %524 = vmatprep.mubr.f32.mxu0 %v225_v28 }
  0x2a   : > { %530 = vmatprep.mubr.f32.mxu1 %v229_v29 }
  0x2c   : > { %525 = vmatmul.mubr.f32.gmra.mrb[2].mxu0 %v226_v30 }
  0x2d   : > { %531 = vmatmul.mubr.f32.gmra.mrb[2].mxu1 %v230_v31 }
  0xfb   : > { %v523_v33 = vpop.f32.mrb[0].mxu0 }
  0xfc   : > { %v529_v35 = vpop.f32.mrb[0].mxu1  ;;  %v326_v37 = vadd.f32 %v523_v33, %v462_v32  ;;  %v320_v39 = vpop.f32.mrb[1].mxu0 }
  0xfd   : > { %v346_v38 = vadd.f32 %v529_v35, %v462_v32  ;;  %v340_v41 = vpop.f32.mrb[1].mxu1  ;;  %v321_v43 = vadd.f32 %v462_v32, %v320_v39 }
  0xfe   : > { %v341_v44 = vadd.f32 %v462_v32, %v340_v41  ;;  %v368_v45 = vadd.f32 %v360_v34, %v326_v37 }
  0xff   : > { %v372_v46 = vadd.f32 %v364_v36, %v346_v38  ;;  %v367_v47 = vadd.f32 %v359_v40, %v321_v43  ;;  %v526_v49 = vpop.f32.mrb[2].mxu0 }
 0x100   : > { %v371_v48 = vadd.f32 %v363_v42, %v341_v44  ;;  %v532_v51 = vpop.f32.mrb[2].mxu1  ;;  %376 = vst [vmem:[%s221_s11 + $0x8] sm:$0xff] %v368_v45  ;;  %v336_v53 = vadd.f32 %v526_v49, %v462_v32  ;;  %v330_v55 = vpop.f32.mrb[3].mxu0 }
 0x101   : > { %380 = vst [vmem:[%s221_s11 + $0x28] sm:$0xff] %v372_v46  ;;  %v356_v54 = vadd.f32 %v532_v51, %v462_v32  ;;  %v350_v57 = vpop.f32.mrb[3].mxu1  ;;  %375 = vst [vmem:[%s221_s11] sm:$0xff] %v367_v47  ;;  %v331_v59 = vadd.f32 %v462_v32, %v330_v55 }
 0x102   : > { %379 = vst [vmem:[%s221_s11 + $0x20] sm:$0xff] %v371_v48  ;;  %v351_v60 = vadd.f32 %v462_v32, %v350_v57  ;;  %v370_v61 = vadd.f32 %v362_v50, %v336_v53 }
 0x103   : > { %v374_v62 = vadd.f32 %v366_v52, %v356_v54  ;;  %v369_v63 = vadd.f32 %v361_v56, %v331_v59 }
 0x104   : > { %v373_v0 = vadd.f32 %v365_v58, %v351_v60  ;;  %378 = vst [vmem:[%s221_s11 + $0x18] sm:$0xff] %v370_v61 }
 0x105   : > { %382 = vst [vmem:[%s221_s11 + $0x38] sm:$0xff] %v374_v62  ;;  %377 = vst [vmem:[%s221_s11 + $0x10] sm:$0xff] %v369_v63 }
 0x106   : > { %381 = vst [vmem:[%s221_s11 + $0x30] sm:$0xff] %v373_v0 }
 0x107 PF: > { %s14_s15 = sadd.s32 1, %s595_s15  }
 0x108   : > { %p11_p4 = scmp.ge.s32.totalorder %s14_s15, 4  }
 0x10a   :  { %13 = sbr.rel (!%p11_p4) target bundleno = 1 (0x1), region = 69 }

// kernel: forward.19
= control target key start
LH: loop header
LB: loop body
LE: loop exit
PB: predicated region body
PF: predicated region fallthrough
CT: control target
= control target key end

     0   :  { %s1680_s0 = inlined_call_operand.vmem [shape: f32[16,1024], index: 0, kind: input, shape index: {}]   ;;  %s1681_s1 = inlined_call_operand.vmem [shape: f32[128,16], index: 1, kind: input, shape index: {}]   ;;  %s1682_s2 = inlined_call_operand.vmem [shape: f32[128,1], index: 2, kind: input, shape index: {}]   ;;  %s1683_s3 = inlined_call_operand.vmem [shape: f32[128,1], index: 3, kind: input, shape index: {}]   ;;  %s1684_s4 = inlined_call_operand.<no memory space> [shape: f32[1,1], index: 4, kind: input, shape index: {}]   ;;  %s1685_s5 = inlined_call_operand.vmem [shape: f32[1,1024], index: 5, kind: output, shape index: {}]  }
   0x1   :  { %v10_v0 = vstv %s1684_s4 }
   0x2   :  { %11 = vst [vmem:[#allocation2] sm:$0x1] %v10_v0 }
   0x3   :  { %s1306_s20 = smov 0   ;;  %s1308_s21 = smov 0  }
   0x4   :  { %s1310_s22 = smov 0  }
   0x5 LB: > { %s1164_s4 = sadd.s32 4294967295, %s1268_s22   ;;  %s1323_s23 = sadd.s32 1, %s1268_s22   ;;  %s1268_s22 = sphi %s1310_s22, %s1688_s22   ;;  %s1264_s21 = sphi %s1308_s21, %s1687_s21   ;;  %s1260_s20 = sphi %s1306_s20, %s1686_s20  }
   0x6   : > { %s21_s24 = ssub.s32 %s1268_s22, %s1323_s23  ;;  %s24_s25 = sadd.s32 1, %s1264_s21 }
   0x7   : > { %p22_p0 = scmp.eq.s32.totalorder %s21_s24, 0  ;;  %p31_p1 = scmp.ne.s32.totalorder %s1264_s21, %s1260_s20 }
   0x8   : > { %p32_p2 = scmp.eq.s32.totalorder %s1268_s22, 0  ;;  %p1167_p4 = scmp.ge.s32.totalorder %s1268_s22, 2 }
   0x9   : > { %s1332_s26 = scalar_select %p22_p0, %s1264_s21, %s24_s25  }
   0xa   : > { %p33_p3 = por %p32_p2, %p31_p1  ;;  %179 = sbr.rel (%p1167_p4) target bundleno = 25 (0x19), region = 32 }
  0x11   : > { %182 = sbr.rel (!%p33_p3) target bundleno = 25 (0x19), region = 36  ;;  %s184_s27 = sand.u32 (%p33_p3), 1, %s1264_s21  }
  0x12   : > { %s1208_s28 = sshll.u32 (%p33_p3), %s1268_s22, 5  ;;  %s1168_s29 = sshll.u32 (%p33_p3), %s184_s27, 6 }
  0x13   : > { %s189_s7 = scalar_lea.vmem (%p33_p3), %s1680_s0, %s1208_s28  ;;  %s186_s8 = scalar_lea.vmem (%p33_p3), [#allocation3], %s1168_s29 }
  0x14   : > { %v202_v1 = vld [vmem:[%s189_s7] sm:$0xff] (%p33_p3)  ;;  %v204_v2 = vld [vmem:[%s189_s7 + $0x8] sm:$0xff] (%p33_p3)  ;;  %v206_v3 = vld [vmem:[%s189_s7 + $0x10] sm:$0xff] (%p33_p3) }
  0x15   : > { %203 = vst [vmem:[%s186_s8] sm:$0xff] (%p33_p3), %v202_v1  ;;  %205 = vst [vmem:[%s186_s8 + $0x8] sm:$0xff] (%p33_p3), %v204_v2  ;;  %v208_v4 = vld [vmem:[%s189_s7 + $0x18] sm:$0xff] (%p33_p3)  ;;  %v210_v5 = vld [vmem:[%s189_s7 + $0x40] sm:$0xff] (%p33_p3) }
  0x16   : > { %207 = vst [vmem:[%s186_s8 + $0x10] sm:$0xff] (%p33_p3), %v206_v3  ;;  %v212_v6 = vld [vmem:[%s189_s7 + $0x48] sm:$0xff] (%p33_p3)  ;;  %209 = vst [vmem:[%s186_s8 + $0x18] sm:$0xff] (%p33_p3), %v208_v4  ;;  %v214_v7 = vld [vmem:[%s189_s7 + $0x50] sm:$0xff] (%p33_p3) }
  0x17   : > { %211 = vst [vmem:[%s186_s8 + $0x20] sm:$0xff] (%p33_p3), %v210_v5  ;;  %213 = vst [vmem:[%s186_s8 + $0x28] sm:$0xff] (%p33_p3), %v212_v6  ;;  %v216_v8 = vld [vmem:[%s189_s7 + $0x58] sm:$0xff] (%p33_p3) }
  0x18   : > { %215 = vst [vmem:[%s186_s8 + $0x30] sm:$0xff] %v214_v7  ;;  %217 = vst [vmem:[%s186_s8 + $0x38] sm:$0xff] %v216_v8 }
  0x19 PF: > { %p1171_p5 = scmp.ge.s32.totalorder %s1268_s22, 1  ;;  %p222_p6 = scmp.lt.s32.totalorder %s1268_s22, 3 }
  0x1b   : > { %p223_p7 = pnand %p1171_p5, %p222_p6 }
  0x1c   : > { %s229_s9 = sand.u32 (!%p223_p7), 1, %s1260_s20   ;;  %v1270_v9 = vmov (!%p223_p7), 0.0   ;;  %v1271_v10 = vmov (!%p223_p7), 0   ;;  %v285_v11 = vld [vmem:[%s1682_s2] sm:$0xff] (!%p223_p7)  ;;  %v286_v23 = vld [vmem:[%s1682_s2 + $0x8] sm:$0xff] (!%p223_p7)  ;;  %v287_v25 = vld [vmem:[%s1682_s2 + $0x10] sm:$0xff] (!%p223_p7) }
  0x1d   : > { %226 = sbr.rel (%p223_p7) target bundleno = 344 (0x158), region = 59  ;;  %s1172_s10 = sshll.u32 (!%p223_p7), %s229_s9, 6  ;;  %494 = vmatprep.mubr.f32.mxu0 (!%p223_p7), %v1270_v9  ;;  %655 = vmatprep.mubr.f32.mxu1 (!%p223_p7), %v1270_v9  ;;  %v261_v26 = vld [vmem:[%s1681_s1] sm:$0xff] (!%p223_p7)  ;;  %vm381_vm0 = vcmask (!%p223_p7), 130048   ;;  %v288_v28 = vld [vmem:[%s1682_s2 + $0x18] sm:$0xff] (!%p223_p7)  ;;  %v262_v29 = vld [vmem:[%s1681_s1 + $0x8] sm:$0xff] (!%p223_p7) }
  0x1e   : > { %1244 = vset.pattern.permute.xlu0 (!%p223_p7), %v1271_v10  ;;  %1245 = vset.pattern.permute.xlu1 (!%p223_p7), %v1271_v10  ;;  %s231_s13 = scalar_lea.vmem (!%p223_p7), [#allocation3], %s1172_s10  ;;  %v816_v27 = vld [vmem:[%s1683_s3] sm:$0xff] (!%p223_p7)  ;;  %v817_v31 = vld [vmem:[%s1683_s3 + $0x8] sm:$0xff] (!%p223_p7)  ;;  %v263_v32 = vld [vmem:[%s1681_s1 + $0x10] sm:$0xff] (!%p223_p7)  ;;  %s1173_s28 = sshll.u32 (!%p223_p7), %s1164_s4, 2 }
  0x1f   : > { %v278_v12 = vld [vmem:[%s231_s13 + $0x8] sm:$0xff] (!%p223_p7)  ;;  %v280_v14 = vld [vmem:[%s231_s13 + $0x18] sm:$0xff] (!%p223_p7)  ;;  %303 = vperm.xlu0 (!%p223_p7), %1244, %v285_v11   ;;  %v277_v17 = vld [vmem:[%s231_s13] sm:$0xff] (!%p223_p7)  ;;  %313 = vperm.xlu1 (!%p223_p7), %1245, %v287_v25   ;;  %p257_p8 = scmp.lt.s32.totalorder (!%p223_p7), %s1173_s28, 7 }
  0x20   : > { %v282_v13 = vld [vmem:[%s231_s13 + $0x28] sm:$0xff] (!%p223_p7)  ;;  %v284_v16 = vld [vmem:[%s231_s13 + $0x38] sm:$0xff] (!%p223_p7)  ;;  %v281_v18 = vld [vmem:[%s231_s13 + $0x20] sm:$0xff] (!%p223_p7) }
  0x21   : > { %v1209_v15 = vpack.c.bf16 (!%p223_p7), %v282_v13, %v278_v12  ;;  %v1213_v19 = vpack.c.bf16 (!%p223_p7), %v284_v16, %v280_v14  ;;  %v1211_v20 = vpack.c.bf16 (!%p223_p7), %v281_v18, %v277_v17  ;;  %v279_v21 = vld [vmem:[%s231_s13 + $0x10] sm:$0xff] (!%p223_p7)  ;;  %v289_v30 = vld [vmem:[%s1682_s2 + $0x20] sm:$0xff] (!%p223_p7)  ;;  %v290_v33 = vld [vmem:[%s1682_s2 + $0x28] sm:$0xff] (!%p223_p7) }
  0x22   : > { %v283_v22 = vld [vmem:[%s231_s13 + $0x30] sm:$0xff] (!%p223_p7)  ;;  %v265_v38 = vld [vmem:[%s1681_s1 + $0x20] sm:$0xff] (!%p223_p7)  ;;  %v266_v41 = vld [vmem:[%s1681_s1 + $0x28] sm:$0xff] (!%p223_p7) }
  0x23   : > { %1210 = vmatprep.subr.bf16.mxu0 (!%p223_p7), %v1209_v15  ;;  %v1215_v24 = vpack.c.bf16 (!%p223_p7), %v283_v22, %v279_v21  ;;  %1214 = vmatprep.subr.bf16.mxu1 (!%p223_p7), %v1213_v19  ;;  %v818_v34 = vld [vmem:[%s1683_s3 + $0x10] sm:$0xff] (!%p223_p7)  ;;  %v264_v35 = vld [vmem:[%s1681_s1 + $0x18] sm:$0xff] (!%p223_p7)  ;;  %v820_v40 = vld [vmem:[%s1683_s3 + $0x20] sm:$0xff] (!%p223_p7) }
  0x24   : > { %1212 = vmatpush1.bf16.msra.mxu0 %v1211_v20  ;;  %308 = vperm.xlu0 %1244, %v286_v23   ;;  %v291_v36 = vld [vmem:[%s1682_s2 + $0x30] sm:$0xff]  ;;  %v819_v37 = vld [vmem:[%s1683_s3 + $0x18] sm:$0xff]  ;;  %v293_v42 = vld [vmem:[%s1682_s2 + $0x40] sm:$0xff]  ;;  %s1690_s28 = smov (!%p257_p8, %s1173_s28), 7 }
  0x25   : > { %1216 = vmatpush1.bf16.msra.mxu1 %v1215_v24  ;;  %318 = vperm.xlu1 %1245, %v288_v28   ;;  %v292_v39 = vld [vmem:[%s1682_s2 + $0x38] sm:$0xff]  ;;  %v821_v43 = vld [vmem:[%s1683_s3 + $0x28] sm:$0xff]  ;;  %v267_v44 = vld [vmem:[%s1681_s1 + $0x30] sm:$0xff]  ;;  %s259_s4 = scalar_lea.vmem %s1685_s5, %s1690_s28 }
  0x26   : > { %v294_v45 = vld [vmem:[%s1682_s2 + $0x48] sm:$0xff]  ;;  %v822_v46 = vld [vmem:[%s1683_s3 + $0x30] sm:$0xff]  ;;  %v268_v47 = vld [vmem:[%s1681_s1 + $0x38] sm:$0xff] }
  0x27   : > { %1174 = vmatmul.mubr.msk.f32.vlgmr.msra.gmra.mrb[0].mxu0 %vm381_vm0, %v261_v26  ;;  %v295_v48 = vld [vmem:[%s1682_s2 + $0x50] sm:$0xff]  ;;  %v823_v49 = vld [vmem:[%s1683_s3 + $0x38] sm:$0xff]  ;;  %v269_v50 = vld [vmem:[%s1681_s1 + $0x40] sm:$0xff] }
  0x28   : > { %1190 = vmatmul.mubr.msk.f32.vlgmr.msra.gmra.mrb[0].mxu1 %vm381_vm0, %v261_v26  ;;  %500 = vmatprep.mubr.f32.mxu0 %v1270_v9  ;;  %v296_v51 = vld [vmem:[%s1682_s2 + $0x58] sm:$0xff]  ;;  %v824_v52 = vld [vmem:[%s1683_s3 + $0x40] sm:$0xff]  ;;  %v270_v53 = vld [vmem:[%s1681_s1 + $0x48] sm:$0xff] }
  0x29   : > { %661 = vmatprep.mubr.f32.mxu1 %v1270_v9  ;;  %834 = vperm.xlu0 %1244, %v816_v27   ;;  %v297_v54 = vld [vmem:[%s1682_s2 + $0x60] sm:$0xff]  ;;  %v825_v55 = vld [vmem:[%s1683_s3 + $0x48] sm:$0xff]  ;;  %v271_v56 = vld [vmem:[%s1681_s1 + $0x50] sm:$0xff] }
  0x2a   : > { %839 = vperm.xlu1 %1245, %v817_v31   ;;  %v298_v57 = vld [vmem:[%s1682_s2 + $0x68] sm:$0xff]  ;;  %v826_v58 = vld [vmem:[%s1683_s3 + $0x50] sm:$0xff]  ;;  %v272_v59 = vld [vmem:[%s1681_s1 + $0x58] sm:$0xff] }
  0x2b   : > { %1175 = vmatmul.mubr.msk.f32.gmra.mrb[2].mxu0 %vm381_vm0, %v262_v29  ;;  %v299_v60 = vld [vmem:[%s1682_s2 + $0x70] sm:$0xff]  ;;  %v827_v61 = vld [vmem:[%s1683_s3 + $0x58] sm:$0xff]  ;;  %v273_v62 = vld [vmem:[%s1681_s1 + $0x60] sm:$0xff] }
  0x2c   : > { %1191 = vmatmul.mubr.msk.f32.gmra.mrb[2].mxu1 %vm381_vm0, %v262_v29  ;;  %506 = vmatprep.mubr.f32.mxu0 %v1270_v9  ;;  %v300_v63 = vld [vmem:[%s1682_s2 + $0x78] sm:$0xff]  ;;  %v828_v0 = vld [vmem:[%s1683_s3 + $0x60] sm:$0xff]  ;;  %v274_v1 = vld [vmem:[%s1681_s1 + $0x68] sm:$0xff] }
  0x2d   : > { %667 = vmatprep.mubr.f32.mxu1 %v1270_v9  ;;  %323 = vperm.xlu0 %1244, %v289_v30   ;;  %v830_v2 = vld [vmem:[%s1683_s3 + $0x70] sm:$0xff]  ;;  %v829_v3 = vld [vmem:[%s1683_s3 + $0x68] sm:$0xff]  ;;  %v1060_v5 = vld [vmem:[#allocation2] sm:$0x1] }
  0x2e   : > { %844 = vperm.xlu1 %1245, %v818_v34   ;;  %v275_v4 = vld [vmem:[%s1681_s1 + $0x70] sm:$0xff]  ;;  %v831_v6 = vld [vmem:[%s1683_s3 + $0x78] sm:$0xff] }
  0x2f   : > { %1176 = vmatmul.mubr.msk.f32.gmra.mrb[4].mxu0 %vm381_vm0, %v263_v32  ;;  %v276_v7 = vld [vmem:[%s1681_s1 + $0x78] sm:$0xff] }
  0x30   : > { %1192 = vmatmul.mubr.msk.f32.gmra.mrb[4].mxu1 %vm381_vm0, %v263_v32  ;;  %512 = vmatprep.mubr.f32.mxu0 %v1270_v9 }
  0x31   : > { %673 = vmatprep.mubr.f32.mxu1 %v1270_v9  ;;  %328 = vperm.xlu0 %1244, %v290_v33  }
  0x32   : > { %849 = vperm.xlu1 %1245, %v819_v37  }
  0x33   : > { %1177 = vmatmul.mubr.msk.f32.gmra.mrb[6].mxu0 %vm381_vm0, %v264_v35 }
  0x34   : > { %1193 = vmatmul.mubr.msk.f32.gmra.mrb[6].mxu1 %vm381_vm0, %v264_v35  ;;  %518 = vmatprep.mubr.f32.mxu0 %v1270_v9 }
  0x35   : > { %679 = vmatprep.mubr.f32.mxu1 %v1270_v9  ;;  %333 = vperm.xlu0 %1244, %v291_v36  }
  0x36   : > { %854 = vperm.xlu1 %1245, %v820_v40  }
  0x37   : > { %1178 = vmatmul.mubr.msk.f32.gmra.mrb[8].mxu0 %vm381_vm0, %v265_v38 }
  0x38   : > { %1194 = vmatmul.mubr.msk.f32.gmra.mrb[8].mxu1 %vm381_vm0, %v265_v38  ;;  %524 = vmatprep.mubr.f32.mxu0 %v1270_v9 }
  0x39   : > { %685 = vmatprep.mubr.f32.mxu1 %v1270_v9  ;;  %338 = vperm.xlu0 %1244, %v292_v39  }
  0x3a   : > { %859 = vperm.xlu1 %1245, %v821_v43  }
  0x3b   : > { %1179 = vmatmul.mubr.msk.f32.gmra.mrb[10].mxu0 %vm381_vm0, %v266_v41 }
  0x3c   : > { %1195 = vmatmul.mubr.msk.f32.gmra.mrb[10].mxu1 %vm381_vm0, %v266_v41  ;;  %530 = vmatprep.mubr.f32.mxu0 %v1270_v9 }
  0x3d   : > { %691 = vmatprep.mubr.f32.mxu1 %v1270_v9  ;;  %343 = vperm.xlu0 %1244, %v293_v42  }
  0x3e   : > { %864 = vperm.xlu1 %1245, %v822_v46  }
  0x3f   : > { %1180 = vmatmul.mubr.msk.f32.gmra.mrb[12].mxu0 %vm381_vm0, %v267_v44 }
  0x40   : > { %1196 = vmatmul.mubr.msk.f32.gmra.mrb[12].mxu1 %vm381_vm0, %v267_v44  ;;  %536 = vmatprep.mubr.f32.mxu0 %v1270_v9 }
  0x41   : > { %697 = vmatprep.mubr.f32.mxu1 %v1270_v9  ;;  %348 = vperm.xlu0 %1244, %v294_v45  }
  0x42   : > { %869 = vperm.xlu1 %1245, %v823_v49  }
  0x43   : > { %1181 = vmatmul.mubr.msk.f32.gmra.mrb[14].mxu0 %vm381_vm0, %v268_v47 }
  0x44   : > { %1197 = vmatmul.mubr.msk.f32.gmra.mrb[14].mxu1 %vm381_vm0, %v268_v47  ;;  %542 = vmatprep.mubr.f32.mxu0 %v1270_v9 }
  0x45   : > { %703 = vmatprep.mubr.f32.mxu1 %v1270_v9  ;;  %353 = vperm.xlu0 %1244, %v295_v48  }
  0x46   : > { %874 = vperm.xlu1 %1245, %v824_v52  }
  0x47   : > { %1182 = vmatmul.mubr.msk.f32.gmra.mrb[16].mxu0 %vm381_vm0, %v269_v50 }
  0x48   : > { %1198 = vmatmul.mubr.msk.f32.gmra.mrb[16].mxu1 %vm381_vm0, %v269_v50  ;;  %548 = vmatprep.mubr.f32.mxu0 %v1270_v9 }
  0x49   : > { %709 = vmatprep.mubr.f32.mxu1 %v1270_v9  ;;  %358 = vperm.xlu0 %1244, %v296_v51  }
  0x4a   : > { %879 = vperm.xlu1 %1245, %v825_v55  }
  0x4b   : > { %1183 = vmatmul.mubr.msk.f32.gmra.mrb[18].mxu0 %vm381_vm0, %v270_v53 }
  0x4c   : > { %1199 = vmatmul.mubr.msk.f32.gmra.mrb[18].mxu1 %vm381_vm0, %v270_v53  ;;  %554 = vmatprep.mubr.f32.mxu0 %v1270_v9 }
  0x4d   : > { %715 = vmatprep.mubr.f32.mxu1 %v1270_v9  ;;  %363 = vperm.xlu0 %1244, %v297_v54  }
  0x4e   : > { %884 = vperm.xlu1 %1245, %v826_v58  }
  0x4f   : > { %1184 = vmatmul.mubr.msk.f32.gmra.mrb[20].mxu0 %vm381_vm0, %v271_v56 }
  0x50   : > { %1200 = vmatmul.mubr.msk.f32.gmra.mrb[20].mxu1 %vm381_vm0, %v271_v56  ;;  %560 = vmatprep.mubr.f32.mxu0 %v1270_v9 }
  0x51   : > { %721 = vmatprep.mubr.f32.mxu1 %v1270_v9  ;;  %368 = vperm.xlu0 %1244, %v298_v57  }
  0x52   : > { %889 = vperm.xlu1 %1245, %v827_v61  }
  0x53   : > { %1185 = vmatmul.mubr.msk.f32.gmra.mrb[22].mxu0 %vm381_vm0, %v272_v59 }
  0x54   : > { %1201 = vmatmul.mubr.msk.f32.gmra.mrb[22].mxu1 %vm381_vm0, %v272_v59  ;;  %566 = vmatprep.mubr.f32.mxu0 %v1270_v9 }
  0x55   : > { %727 = vmatprep.mubr.f32.mxu1 %v1270_v9  ;;  %373 = vperm.xlu0 %1244, %v299_v60  }
  0x56   : > { %894 = vperm.xlu1 %1245, %v828_v0  }
  0x57   : > { %1186 = vmatmul.mubr.msk.f32.gmra.mrb[24].mxu0 %vm381_vm0, %v273_v62 }
  0x58   : > { %1202 = vmatmul.mubr.msk.f32.gmra.mrb[24].mxu1 %vm381_vm0, %v273_v62  ;;  %572 = vmatprep.mubr.f32.mxu0 %v1270_v9 }
  0x59   : > { %733 = vmatprep.mubr.f32.mxu1 %v1270_v9  ;;  %378 = vperm.xlu0 %1244, %v300_v63  }
  0x5a   : > { %899 = vperm.xlu1 %1245, %v829_v3  }
  0x5b   : > { %1187 = vmatmul.mubr.msk.f32.gmra.mrb[26].mxu0 %vm381_vm0, %v274_v1 }
  0x5c   : > { %1203 = vmatmul.mubr.msk.f32.gmra.mrb[26].mxu1 %vm381_vm0, %v274_v1  ;;  %578 = vmatprep.mubr.f32.mxu0 %v1270_v9 }
  0x5d   : > { %739 = vmatprep.mubr.f32.mxu1 %v1270_v9  ;;  %904 = vperm.xlu0 %1244, %v830_v2  }
  0x5e   : > { %909 = vperm.xlu1 %1245, %v831_v6  }
  0x5f   : > { %1188 = vmatmul.mubr.msk.f32.gmra.mrb[28].mxu0 %vm381_vm0, %v275_v4 }
  0x60   : > { %1204 = vmatmul.mubr.msk.f32.gmra.mrb[28].mxu1 %vm381_vm0, %v275_v4  ;;  %584 = vmatprep.mubr.f32.mxu0 %v1270_v9 }
  0x61   : > { %745 = vmatprep.mubr.f32.mxu1 %v1270_v9  ;;  %1063 = vperm.xlu0 %1244, %v1060_v5  }
  0x63   : > { %1189 = vmatmul.mubr.msk.f32.gmra.mrb[30].mxu0 %vm381_vm0, %v276_v7 }
  0x64   : > { %1205 = vmatmul.mubr.msk.f32.gmra.mrb[30].mxu1 %vm381_vm0, %v276_v7 }
  0x9e   : > { %v304_v8 = vpop.permute.xlu0 %303  ;;  %v314_v10 = vpop.permute.xlu1 %313 }
  0xa3   : > { %v309_v11 = vpop.permute.xlu0 %308 }
  0xa4   : > { %v1551_v12 = vpop.permute.xlu1 %318 }
  0xa8   : > { %v835_v13 = vpop.permute.xlu0 %834 }
  0xa9   : > { %v840_v14 = vpop.permute.xlu1 %839 }
  0xac   : > { %v1553_v15 = vpop.permute.xlu0 %323 }
  0xad   : > { %v1555_v16 = vpop.permute.xlu1 %844 }
  0xb0   : > { %v1557_v17 = vpop.permute.xlu0 %328 }
  0xb1   : > { %v1559_v9 = vpop.permute.xlu1 %849 }
  0xb4   : > { %v1561_v18 = vpop.permute.xlu0 %333 }
  0xb5   : > { %v1563_v23 = vpop.permute.xlu1 %854 }
  0xb8   : > { %v1565_v36 = vpop.permute.xlu0 %338 }
  0xb9   : > { %v1567_v43 = vpop.permute.xlu1 %859 }
  0xbc   : > { %v1569_v0 = vpop.permute.xlu0 %343 }
  0xfa   : > { %v496_v19 = vpop.f32.mrb[0].mxu0 }
  0xfb   : > { %v497_v20 = vadd.f32 %v496_v19, %v304_v8  ;;  %v657_v21 = vpop.f32.mrb[0].mxu1  ;;  %v498_v22 = vpop.f32.mrb[1].mxu0 }
  0xfc   : > { %v658_v24 = vadd.f32 %v657_v21, %v304_v8  ;;  %v499_v25 = vadd.f32 %v498_v22, %v304_v8  ;;  %v659_v26 = vpop.f32.mrb[1].mxu1 }
  0xfd   : > { %v752_v27 = vmax.f32 %v497_v20, 0.0  ;;  %v660_v28 = vadd.f32 %v659_v26, %v304_v8  ;;  %v1573_v20 = vpop.permute.xlu1 %864 }
  0xfe   : > { %v754_v29 = vmax.f32 %v658_v24, 0.0  ;;  %v753_v30 = vmax.f32 %v499_v25, 0.0  ;;  %v502_v31 = vpop.f32.mrb[2].mxu0 }
  0xff   : > { %v755_v32 = vmax.f32 %v660_v28, 0.0  ;;  %v503_v33 = vadd.f32 %v502_v31, %v309_v11  ;;  %v663_v34 = vpop.f32.mrb[2].mxu1  ;;  %v504_v35 = vpop.f32.mrb[3].mxu0  ;;  %v912_v40 = vmul.f32 %v835_v13, %v752_v27 }
 0x100   : > { %v664_v37 = vadd.f32 %v663_v34, %v309_v11  ;;  %v505_v38 = vadd.f32 %v504_v35, %v309_v11  ;;  %v665_v39 = vpop.f32.mrb[3].mxu1  ;;  %v914_v44 = vmul.f32 %v835_v13, %v754_v29  ;;  %v913_v45 = vmul.f32 %v835_v13, %v753_v30 }
 0x101   : > { %v756_v41 = vmax.f32 %v503_v33, 0.0  ;;  %v666_v42 = vadd.f32 %v665_v39, %v309_v11  ;;  %v915_v49 = vmul.f32 %v835_v13, %v755_v32 }
 0x102   : > { %v758_v46 = vmax.f32 %v664_v37, 0.0  ;;  %v757_v47 = vmax.f32 %v505_v38, 0.0  ;;  %v508_v48 = vpop.f32.mrb[4].mxu0 }
 0x103   : > { %v916_v50 = vmul.f32 %v840_v14, %v756_v41  ;;  %v759_v51 = vmax.f32 %v666_v42, 0.0  ;;  %v509_v52 = vadd.f32 %v508_v48, %v314_v10  ;;  %v669_v53 = vpop.f32.mrb[4].mxu1  ;;  %v510_v54 = vpop.f32.mrb[5].mxu0 }
 0x104   : > { %v918_v55 = vmul.f32 %v840_v14, %v758_v46  ;;  %v917_v56 = vmul.f32 %v840_v14, %v757_v47  ;;  %v670_v57 = vadd.f32 %v669_v53, %v314_v10  ;;  %v511_v58 = vadd.f32 %v510_v54, %v314_v10  ;;  %v671_v59 = vpop.f32.mrb[5].mxu1  ;;  %v1583_v41 = vpop.permute.xlu0 %348 }
 0x105   : > { %v976_v60 = vadd.f32 %v916_v50, %v912_v40  ;;  %v919_v61 = vmul.f32 %v840_v14, %v759_v51  ;;  %v760_v62 = vmax.f32 %v509_v52, 0.0  ;;  %v672_v63 = vadd.f32 %v671_v59, %v314_v10  ;;  %v1591_v50 = vpop.permute.xlu1 %869 }
 0x106   : > { %v1018_v1 = vadd.f32 %v918_v55, %v914_v44  ;;  %v997_v2 = vadd.f32 %v917_v56, %v913_v45  ;;  %v762_v3 = vmax.f32 %v670_v57, 0.0  ;;  %v761_v4 = vmax.f32 %v511_v58, 0.0  ;;  %v514_v5 = vpop.f32.mrb[6].mxu0 }
 0x107   : > { %v1039_v6 = vadd.f32 %v919_v61, %v915_v49  ;;  %v920_v7 = vmul.f32 %v1555_v16, %v760_v62  ;;  %v763_v8 = vmax.f32 %v672_v63, 0.0  ;;  %v515_v11 = vadd.f32 %v514_v5, %v1551_v12  ;;  %v675_v13 = vpop.f32.mrb[6].mxu1  ;;  %v516_v19 = vpop.f32.mrb[7].mxu0 }
 0x108   : > { %v922_v14 = vmul.f32 %v1555_v16, %v762_v3  ;;  %v921_v10 = vmul.f32 %v1555_v16, %v761_v4  ;;  %v676_v21 = vadd.f32 %v675_v13, %v1551_v12  ;;  %v517_v22 = vadd.f32 %v516_v19, %v1551_v12  ;;  %v677_v24 = vpop.f32.mrb[7].mxu1 }
 0x109   : > { %v977_v25 = vadd.f32 %v976_v60, %v920_v7  ;;  %v923_v26 = vmul.f32 %v1555_v16, %v763_v8  ;;  %v764_v27 = vmax.f32 %v515_v11, 0.0  ;;  %v678_v28 = vadd.f32 %v677_v24, %v1551_v12 }
 0x10a   : > { %v1019_v29 = vadd.f32 %v1018_v1, %v922_v14  ;;  %v998_v30 = vadd.f32 %v997_v2, %v921_v10  ;;  %v766_v31 = vmax.f32 %v676_v21, 0.0  ;;  %v765_v32 = vmax.f32 %v517_v22, 0.0  ;;  %v520_v33 = vpop.f32.mrb[8].mxu0 }
 0x10b   : > { %v1040_v34 = vadd.f32 %v1039_v6, %v923_v26  ;;  %v924_v35 = vmul.f32 %v1559_v9, %v764_v27  ;;  %v767_v37 = vmax.f32 %v678_v28, 0.0  ;;  %v521_v38 = vadd.f32 %v520_v33, %v1553_v15  ;;  %v681_v39 = vpop.f32.mrb[8].mxu1  ;;  %v522_v40 = vpop.f32.mrb[9].mxu0 }
 0x10c   : > { %v926_v16 = vmul.f32 %v1559_v9, %v766_v31  ;;  %v925_v42 = vmul.f32 %v1559_v9, %v765_v32  ;;  %v682_v12 = vadd.f32 %v681_v39, %v1553_v15  ;;  %v523_v44 = vadd.f32 %v522_v40, %v1553_v15  ;;  %v683_v45 = vpop.f32.mrb[9].mxu1  ;;  %v1601_v6 = vpop.permute.xlu0 %353 }
 0x10d   : > { %v978_v46 = vadd.f32 %v977_v25, %v924_v35  ;;  %v927_v47 = vmul.f32 %v1559_v9, %v767_v37  ;;  %v768_v48 = vmax.f32 %v521_v38, 0.0  ;;  %v684_v49 = vadd.f32 %v683_v45, %v1553_v15  ;;  %v1605_v26 = vpop.permute.xlu1 %874 }
 0x10e   : > { %v1020_v51 = vadd.f32 %v1019_v29, %v926_v16  ;;  %v999_v52 = vadd.f32 %v998_v30, %v925_v42  ;;  %v770_v53 = vmax.f32 %v682_v12, 0.0  ;;  %v769_v54 = vmax.f32 %v523_v44, 0.0  ;;  %v526_v55 = vpop.f32.mrb[10].mxu0 }
 0x10f   : > { %v1041_v56 = vadd.f32 %v1040_v34, %v927_v47  ;;  %v928_v57 = vmul.f32 %v1563_v23, %v768_v48  ;;  %v771_v58 = vmax.f32 %v684_v49, 0.0  ;;  %v527_v59 = vadd.f32 %v526_v55, %v1557_v17  ;;  %v687_v60 = vpop.f32.mrb[10].mxu1  ;;  %v528_v61 = vpop.f32.mrb[11].mxu0 }
 0x110   : > { %v930_v9 = vmul.f32 %v1563_v23, %v770_v53  ;;  %v929_v62 = vmul.f32 %v1563_v23, %v769_v54  ;;  %v688_v15 = vadd.f32 %v687_v60, %v1557_v17  ;;  %v529_v63 = vadd.f32 %v528_v61, %v1557_v17  ;;  %v689_v1 = vpop.f32.mrb[11].mxu1 }
 0x111   : > { %v979_v2 = vadd.f32 %v978_v46, %v928_v57  ;;  %v931_v3 = vmul.f32 %v1563_v23, %v771_v58  ;;  %v772_v4 = vmax.f32 %v527_v59, 0.0  ;;  %v690_v5 = vadd.f32 %v689_v1, %v1557_v17  ;;  %v1615_v46 = vpop.permute.xlu0 %358  ;;  %v880_v55 = vpop.permute.xlu1 %879 }
 0x112   : > { %v1021_v7 = vadd.f32 %v1020_v51, %v930_v9  ;;  %v1000_v8 = vadd.f32 %v999_v52, %v929_v62  ;;  %v774_v11 = vmax.f32 %v688_v15, 0.0  ;;  %v773_v13 = vmax.f32 %v529_v63, 0.0  ;;  %v532_v19 = vpop.f32.mrb[12].mxu0 }
 0x113   : > { %v1042_v14 = vadd.f32 %v1041_v56, %v931_v3  ;;  %v932_v10 = vmul.f32 %v1567_v43, %v772_v4  ;;  %v775_v21 = vmax.f32 %v690_v5, 0.0  ;;  %v533_v22 = vadd.f32 %v532_v19, %v1561_v18  ;;  %v693_v24 = vpop.f32.mrb[12].mxu1  ;;  %v534_v25 = vpop.f32.mrb[13].mxu0 }
 0x114   : > { %v934_v23 = vmul.f32 %v1567_v43, %v774_v11  ;;  %v933_v17 = vmul.f32 %v1567_v43, %v773_v13  ;;  %v694_v27 = vadd.f32 %v693_v24, %v1561_v18  ;;  %v535_v28 = vadd.f32 %v534_v25, %v1561_v18  ;;  %v695_v29 = vpop.f32.mrb[13].mxu1 }
 0x115   : > { %v980_v30 = vadd.f32 %v979_v2, %v932_v10  ;;  %v935_v31 = vmul.f32 %v1567_v43, %v775_v21  ;;  %v776_v32 = vmax.f32 %v533_v22, 0.0  ;;  %v696_v33 = vadd.f32 %v695_v29, %v1561_v18  ;;  %v1631_v13 = vpop.permute.xlu0 %363  ;;  %v885_v29 = vpop.permute.xlu1 %884 }
 0x116   : > { %v1022_v34 = vadd.f32 %v1021_v7, %v934_v23  ;;  %v1001_v35 = vadd.f32 %v1000_v8, %v933_v17  ;;  %v778_v37 = vmax.f32 %v694_v27, 0.0  ;;  %v777_v38 = vmax.f32 %v535_v28, 0.0  ;;  %v538_v39 = vpop.f32.mrb[14].mxu0 }
 0x117   : > { %v1043_v40 = vadd.f32 %v1042_v14, %v935_v31  ;;  %v936_v16 = vmul.f32 %v1573_v20, %v776_v32  ;;  %v779_v42 = vmax.f32 %v696_v33, 0.0  ;;  %v539_v12 = vadd.f32 %v538_v39, %v1565_v36  ;;  %v699_v44 = vpop.f32.mrb[14].mxu1  ;;  %v540_v45 = vpop.f32.mrb[15].mxu0 }
 0x118   : > { %v938_v43 = vmul.f32 %v1573_v20, %v778_v37  ;;  %v937_v47 = vmul.f32 %v1573_v20, %v777_v38  ;;  %v700_v18 = vadd.f32 %v699_v44, %v1565_v36  ;;  %v541_v48 = vadd.f32 %v540_v45, %v1565_v36  ;;  %v701_v49 = vpop.f32.mrb[15].mxu1 }
 0x119   : > { %v981_v51 = vadd.f32 %v980_v30, %v936_v16  ;;  %v939_v52 = vmul.f32 %v1573_v20, %v779_v42  ;;  %v780_v53 = vmax.f32 %v539_v12, 0.0  ;;  %v702_v54 = vadd.f32 %v701_v49, %v1565_v36 }
 0x11a   : > { %v1023_v56 = vadd.f32 %v1022_v34, %v938_v43  ;;  %v1002_v57 = vadd.f32 %v1001_v35, %v937_v47  ;;  %v782_v58 = vmax.f32 %v700_v18, 0.0  ;;  %v781_v59 = vmax.f32 %v541_v48, 0.0  ;;  %v544_v60 = vpop.f32.mrb[16].mxu0  ;;  %v1642_v48 = vpop.permute.xlu0 %368 }
 0x11b   : > { %v1044_v61 = vadd.f32 %v1043_v40, %v939_v52  ;;  %v940_v9 = vmul.f32 %v1591_v50, %v780_v53  ;;  %v783_v62 = vmax.f32 %v702_v54, 0.0  ;;  %v545_v15 = vadd.f32 %v544_v60, %v1569_v0  ;;  %v705_v63 = vpop.f32.mrb[16].mxu1  ;;  %v546_v1 = vpop.f32.mrb[17].mxu0 }
 0x11c   : > { %v942_v2 = vmul.f32 %v1591_v50, %v782_v58  ;;  %v941_v20 = vmul.f32 %v1591_v50, %v781_v59  ;;  %v706_v36 = vadd.f32 %v705_v63, %v1569_v0  ;;  %v547_v3 = vadd.f32 %v546_v1, %v1569_v0  ;;  %v707_v4 = vpop.f32.mrb[17].mxu1  ;;  %v890_v58 = vpop.permute.xlu1 %889 }
 0x11d   : > { %v982_v5 = vadd.f32 %v981_v51, %v940_v9  ;;  %v943_v7 = vmul.f32 %v1591_v50, %v783_v62  ;;  %v784_v8 = vmax.f32 %v545_v15, 0.0  ;;  %v708_v11 = vadd.f32 %v707_v4, %v1569_v0 }
 0x11e   : > { %v1024_v19 = vadd.f32 %v1023_v56, %v942_v2  ;;  %v1003_v14 = vadd.f32 %v1002_v57, %v941_v20  ;;  %v786_v10 = vmax.f32 %v706_v36, 0.0  ;;  %v785_v21 = vmax.f32 %v547_v3, 0.0  ;;  %v550_v22 = vpop.f32.mrb[18].mxu0 }
 0x11f   : > { %v1045_v24 = vadd.f32 %v1044_v61, %v943_v7  ;;  %v944_v25 = vmul.f32 %v1605_v26, %v784_v8  ;;  %v787_v23 = vmax.f32 %v708_v11, 0.0  ;;  %v551_v17 = vadd.f32 %v550_v22, %v1583_v41  ;;  %v711_v27 = vpop.f32.mrb[18].mxu1  ;;  %v552_v28 = vpop.f32.mrb[19].mxu0 }
 0x120   : > { %v946_v50 = vmul.f32 %v1605_v26, %v786_v10  ;;  %v945_v0 = vmul.f32 %v1605_v26, %v785_v21  ;;  %v712_v30 = vadd.f32 %v711_v27, %v1583_v41  ;;  %v553_v31 = vadd.f32 %v552_v28, %v1583_v41  ;;  %v713_v32 = vpop.f32.mrb[19].mxu1 }
 0x121   : > { %v983_v33 = vadd.f32 %v982_v5, %v944_v25  ;;  %v947_v34 = vmul.f32 %v1605_v26, %v787_v23  ;;  %v788_v35 = vmax.f32 %v551_v17, 0.0  ;;  %v714_v37 = vadd.f32 %v713_v32, %v1583_v41 }
 0x122   : > { %v1025_v38 = vadd.f32 %v1024_v19, %v946_v50  ;;  %v1004_v39 = vadd.f32 %v1003_v14, %v945_v0  ;;  %v790_v40 = vmax.f32 %v712_v30, 0.0  ;;  %v789_v16 = vmax.f32 %v553_v31, 0.0  ;;  %v556_v42 = vpop.f32.mrb[20].mxu0  ;;  %v1651_v14 = vpop.permute.xlu0 %373 }
 0x123   : > { %v1046_v12 = vadd.f32 %v1045_v24, %v947_v34  ;;  %v948_v44 = vmul.f32 %v880_v55, %v788_v35  ;;  %v791_v45 = vmax.f32 %v714_v37, 0.0  ;;  %v557_v43 = vadd.f32 %v556_v42, %v1601_v6  ;;  %v717_v47 = vpop.f32.mrb[20].mxu1  ;;  %v558_v18 = vpop.f32.mrb[21].mxu0 }
 0x124   : > { %v950_v49 = vmul.f32 %v880_v55, %v790_v40  ;;  %v949_v51 = vmul.f32 %v880_v55, %v789_v16  ;;  %v718_v26 = vadd.f32 %v717_v47, %v1601_v6  ;;  %v559_v41 = vadd.f32 %v558_v18, %v1601_v6  ;;  %v719_v52 = vpop.f32.mrb[21].mxu1  ;;  %v895_v30 = vpop.permute.xlu1 %894 }
 0x125   : > { %v984_v53 = vadd.f32 %v983_v33, %v948_v44  ;;  %v951_v54 = vmul.f32 %v880_v55, %v791_v45  ;;  %v792_v56 = vmax.f32 %v557_v43, 0.0  ;;  %v720_v57 = vadd.f32 %v719_v52, %v1601_v6 }
 0x126   : > { %v1026_v59 = vadd.f32 %v1025_v38, %v950_v49  ;;  %v1005_v60 = vadd.f32 %v1004_v39, %v949_v51  ;;  %v794_v61 = vmax.f32 %v718_v26, 0.0  ;;  %v793_v9 = vmax.f32 %v559_v41, 0.0  ;;  %v562_v62 = vpop.f32.mrb[22].mxu0  ;;  %v379_v51 = vpop.permute.xlu0 %378 }
 0x127   : > { %v1047_v15 = vadd.f32 %v1046_v12, %v951_v54  ;;  %v952_v63 = vmul.f32 %v885_v29, %v792_v56  ;;  %v795_v1 = vmax.f32 %v720_v57, 0.0  ;;  %v563_v2 = vadd.f32 %v562_v62, %v1615_v46  ;;  %v723_v20 = vpop.f32.mrb[22].mxu1  ;;  %v564_v36 = vpop.f32.mrb[23].mxu0 }
 0x128   : > { %v954_v3 = vmul.f32 %v885_v29, %v794_v61  ;;  %v953_v4 = vmul.f32 %v885_v29, %v793_v9  ;;  %v724_v55 = vadd.f32 %v723_v20, %v1615_v46  ;;  %v565_v5 = vadd.f32 %v564_v36, %v1615_v46  ;;  %v725_v6 = vpop.f32.mrb[23].mxu1 }
 0x129   : > { %v985_v7 = vadd.f32 %v984_v53, %v952_v63  ;;  %v955_v8 = vmul.f32 %v885_v29, %v795_v1  ;;  %v796_v11 = vmax.f32 %v563_v2, 0.0  ;;  %v726_v19 = vadd.f32 %v725_v6, %v1615_v46 }
 0x12a   : > { %v1027_v10 = vadd.f32 %v1026_v59, %v954_v3  ;;  %v1006_v21 = vadd.f32 %v1005_v60, %v953_v4  ;;  %v798_v22 = vmax.f32 %v724_v55, 0.0  ;;  %v797_v24 = vmax.f32 %v565_v5, 0.0  ;;  %v568_v25 = vpop.f32.mrb[24].mxu0  ;;  %v900_v59 = vpop.permute.xlu1 %899 }
 0x12b   : > { %v1048_v23 = vadd.f32 %v1047_v15, %v955_v8  ;;  %v956_v17 = vmul.f32 %v890_v58, %v796_v11  ;;  %v799_v27 = vmax.f32 %v726_v19, 0.0  ;;  %v569_v28 = vadd.f32 %v568_v25, %v1631_v13  ;;  %v729_v50 = vpop.f32.mrb[24].mxu1  ;;  %v570_v0 = vpop.f32.mrb[25].mxu0 }
 0x12c   : > { %v958_v31 = vmul.f32 %v890_v58, %v798_v22  ;;  %v957_v29 = vmul.f32 %v890_v58, %v797_v24  ;;  %v730_v32 = vadd.f32 %v729_v50, %v1631_v13  ;;  %v571_v46 = vadd.f32 %v570_v0, %v1631_v13  ;;  %v731_v33 = vpop.f32.mrb[25].mxu1 }
 0x12d   : > { %v986_v34 = vadd.f32 %v985_v7, %v956_v17  ;;  %v959_v35 = vmul.f32 %v890_v58, %v799_v27  ;;  %v800_v37 = vmax.f32 %v569_v28, 0.0  ;;  %v732_v38 = vadd.f32 %v731_v33, %v1631_v13 }
 0x12e   : > { %v1028_v39 = vadd.f32 %v1027_v10, %v958_v31  ;;  %v1007_v40 = vadd.f32 %v1006_v21, %v957_v29  ;;  %v802_v16 = vmax.f32 %v730_v32, 0.0  ;;  %v801_v42 = vmax.f32 %v571_v46, 0.0  ;;  %v574_v12 = vpop.f32.mrb[26].mxu0  ;;  %v905_v10 = vpop.permute.xlu0 %904 }
 0x12f   : > { %v1049_v44 = vadd.f32 %v1048_v23, %v959_v35  ;;  %v960_v45 = vmul.f32 %v895_v30, %v800_v37  ;;  %v803_v43 = vmax.f32 %v732_v38, 0.0  ;;  %v575_v47 = vadd.f32 %v574_v12, %v1642_v48  ;;  %v735_v18 = vpop.f32.mrb[26].mxu1  ;;  %v576_v49 = vpop.f32.mrb[27].mxu0 }
 0x130   : > { %v962_v26 = vmul.f32 %v895_v30, %v802_v16  ;;  %v961_v41 = vmul.f32 %v895_v30, %v801_v42  ;;  %v736_v52 = vadd.f32 %v735_v18, %v1642_v48  ;;  %v577_v53 = vadd.f32 %v576_v49, %v1642_v48  ;;  %v737_v13 = vpop.f32.mrb[27].mxu1  ;;  %v910_v38 = vpop.permute.xlu1 %909 }
 0x131   : > { %v987_v54 = vadd.f32 %v986_v34, %v960_v45  ;;  %v963_v56 = vmul.f32 %v895_v30, %v803_v43  ;;  %v804_v57 = vmax.f32 %v575_v47, 0.0  ;;  %v738_v58 = vadd.f32 %v737_v13, %v1642_v48 }
 0x132   : > { %v1029_v60 = vadd.f32 %v1028_v39, %v962_v26  ;;  %v1008_v61 = vadd.f32 %v1007_v40, %v961_v41  ;;  %v806_v9 = vmax.f32 %v736_v52, 0.0  ;;  %v805_v62 = vmax.f32 %v577_v53, 0.0  ;;  %v580_v15 = vpop.f32.mrb[28].mxu0 }
 0x133   : > { %v1050_v63 = vadd.f32 %v1049_v44, %v963_v56  ;;  %v964_v1 = vmul.f32 %v900_v59, %v804_v57  ;;  %v807_v2 = vmax.f32 %v738_v58, 0.0  ;;  %v581_v20 = vadd.f32 %v580_v15, %v1651_v14  ;;  %v741_v36 = vpop.f32.mrb[28].mxu1  ;;  %v582_v3 = vpop.f32.mrb[29].mxu0 }
 0x134   : > { %v966_v4 = vmul.f32 %v900_v59, %v806_v9  ;;  %v965_v55 = vmul.f32 %v900_v59, %v805_v62  ;;  %v742_v5 = vadd.f32 %v741_v36, %v1651_v14  ;;  %v583_v6 = vadd.f32 %v582_v3, %v1651_v14  ;;  %v743_v48 = vpop.f32.mrb[29].mxu1  ;;  %v1064_v3 = vpop.permute.xlu0 %1063 }
 0x135   : > { %v988_v7 = vadd.f32 %v987_v54, %v964_v1  ;;  %v967_v8 = vmul.f32 %v900_v59, %v807_v2  ;;  %v808_v11 = vmax.f32 %v581_v20, 0.0  ;;  %v744_v19 = vadd.f32 %v743_v48, %v1651_v14 }
 0x136   : > { %v1030_v21 = vadd.f32 %v1029_v60, %v966_v4  ;;  %v1009_v22 = vadd.f32 %v1008_v61, %v965_v55  ;;  %v810_v24 = vmax.f32 %v742_v5, 0.0  ;;  %v809_v25 = vmax.f32 %v583_v6, 0.0  ;;  %v586_v23 = vpop.f32.mrb[30].mxu0 }
 0x137   : > { %v1051_v17 = vadd.f32 %v1050_v63, %v967_v8  ;;  %v968_v27 = vmul.f32 %v905_v10, %v808_v11  ;;  %v811_v28 = vmax.f32 %v744_v19, 0.0  ;;  %v587_v50 = vadd.f32 %v586_v23, %v379_v51  ;;  %v747_v0 = vpop.f32.mrb[30].mxu1  ;;  %v588_v30 = vpop.f32.mrb[31].mxu0 }
 0x138   : > { %v970_v31 = vmul.f32 %v905_v10, %v810_v24  ;;  %v969_v29 = vmul.f32 %v905_v10, %v809_v25  ;;  %v748_v32 = vadd.f32 %v747_v0, %v379_v51  ;;  %v589_v46 = vadd.f32 %v588_v30, %v379_v51  ;;  %v749_v33 = vpop.f32.mrb[31].mxu1 }
 0x139   : > { %v989_v34 = vadd.f32 %v988_v7, %v968_v27  ;;  %v971_v35 = vmul.f32 %v905_v10, %v811_v28  ;;  %v812_v14 = vmax.f32 %v587_v50, 0.0  ;;  %v750_v37 = vadd.f32 %v749_v33, %v379_v51 }
 0x13a   : > { %v1031_v39 = vadd.f32 %v1030_v21, %v970_v31  ;;  %v1010_v40 = vadd.f32 %v1009_v22, %v969_v29  ;;  %v814_v16 = vmax.f32 %v748_v32, 0.0  ;;  %v813_v42 = vmax.f32 %v589_v46, 0.0 }
 0x13b   : > { %v1052_v12 = vadd.f32 %v1051_v17, %v971_v35  ;;  %v972_v44 = vmul.f32 %v910_v38, %v812_v14  ;;  %v815_v45 = vmax.f32 %v750_v37, 0.0  ;;  %v1066_v18 = vlaneseq }
 0x13c   : > { %v974_v43 = vmul.f32 %v910_v38, %v814_v16  ;;  %v973_v47 = vmul.f32 %v910_v38, %v813_v42  ;;  %v1272_v62 = vmov 1966171168  }
 0x13d   : > { %v990_v49 = vadd.f32 %v989_v34, %v972_v44  ;;  %v975_v26 = vmul.f32 %v910_v38, %v815_v45  ;;  %v1067_v51 = vshrl.u32 %v1066_v18, 7  ;;  %v1081_v15 = vunpack.c.l.s4 %v1272_v62 }
 0x13e   : > { %v1032_v41 = vadd.f32 %v1031_v39, %v974_v43  ;;  %v1011_v52 = vadd.f32 %v1010_v40, %v973_v47  ;;  %vm1105_vm1 = vcmp.lt.s32.totalorder %v1066_v18, 512 }
 0x13f   : > { %v991_v53 = vrot.slane %v990_v49, 4  ;;  %v1053_v13 = vadd.f32 %v1052_v12, %v975_v26  ;;  %v1068_v2 = vsub.s32 0, %v1067_v51  ;;  %v1082_v48 = vunpack.c.0.s8 %v1081_v15 }
 0x140   : > { %v1033_v54 = vrot.slane %v1032_v41, 4  ;;  %v1012_v56 = vrot.slane %v1011_v52, 4 }
 0x141   : > { %v992_v57 = vadd.f32 %v991_v53, %v990_v49  ;;  %v1054_v58 = vrot.slane %v1053_v13, 4  ;;  %v1069_v11 = vrot.slane %v1064_v3, %v1068_v2  ;;  %v1085_v23 = vsub.s32 %v1082_v48, %v1067_v51 }
 0x142   : > { %v1034_v59 = vadd.f32 %v1033_v54, %v1032_v41  ;;  %v1013_v60 = vadd.f32 %v1012_v56, %v1011_v52 }
 0x143   : > { %v993_v61 = vrot.slane %v992_v57, 2  ;;  %v1055_v9 = vadd.f32 %v1054_v58, %v1053_v13 }
 0x144   : > { %v1035_v63 = vrot.slane %v1034_v59, 2  ;;  %v1014_v1 = vrot.slane %v1013_v60, 2 }
 0x145   : > { %v994_v20 = vadd.f32 %v993_v61, %v992_v57  ;;  %v1056_v36 = vrot.slane %v1055_v9, 2 }
 0x146   : > { %v1036_v4 = vadd.f32 %v1035_v63, %v1034_v59  ;;  %v1015_v55 = vadd.f32 %v1014_v1, %v1013_v60 }
 0x147   : > { %v995_v5 = vrot.slane %v994_v20, 1  ;;  %v1057_v6 = vadd.f32 %v1056_v36, %v1055_v9 }
 0x148   : > { %v1037_v7 = vrot.slane %v1036_v4, 1  ;;  %v1016_v8 = vrot.slane %v1015_v55, 1 }
 0x149   : > { %v996_v19 = vadd.f32 %v995_v5, %v994_v20  ;;  %v1058_v10 = vrot.slane %v1057_v6, 1 }
 0x14a   : > { %v1038_v21 = vadd.f32 %v1037_v7, %v1036_v4  ;;  %v1017_v22 = vadd.f32 %v1016_v8, %v1015_v55 }
 0x14b   : > { %v1070_v24 = vadd.f32 %v1069_v11, %v996_v19  ;;  %v1059_v25 = vadd.f32 %v1058_v10, %v1057_v6 }
 0x14c   : > { %v1072_v17 = vadd.f32 %v1069_v11, %v1038_v21  ;;  %v1071_v27 = vadd.f32 %v1069_v11, %v1017_v22 }
 0x14d   : > { %v1073_v28 = vadd.f32 %v1069_v11, %v1059_v25 }
 0x14e   : > { %v1078_v50 = vcombine.low %v1070_v24, %v1071_v27 }
 0x14f   : > { %v1079_v0 = vcombine.low %v1072_v17, %v1073_v28 }
 0x150   : > { %v1086_v30 = vrot.slane %v1078_v50, %v1085_v23 }
 0x151   : > { %v1093_v31 = vrot.slane %v1079_v0, %v1085_v23 }
 0x153   : > { %v1094_v29 = vcombine.low %v1086_v30, %v1093_v31 }
 0x155   : > { %v1101_v32 = vrot.slane %v1094_v29, %v1085_v23 }
 0x157   : > { %1107 = vst.msk [vmem:[%s259_s4] sm:$0xf] %vm1105_vm1, %v1101_v32 }
 0x158 PF: > { %p14_p9 = scmp.ge.s32.totalorder %s1323_s23, 4   ;;  %s1686_s20 = smov %s1264_s21 }
 0x159   : > { %s1687_s21 = smov %s1332_s26  ;;  %s1688_s22 = smov %s1323_s23 }
 0x15a   :  { %16 = sbr.rel (!%p14_p9) target bundleno = 5 (0x5), region = 98 }

</bundles_post_ra>
